<compile_context>
chip_gen: v7x
topology: tpu7x:2x2x1
jax: 0.10.0
libtpu: 0.0.40
codegen_flags: <defaults>
</compile_context>

<pallas_src>
import functools

import jax
import jax.numpy as jnp
from jax.experimental import pallas as pl
from jax.experimental.pallas import tpu as pltpu


# MXU operand dtype (bf16 operands + fp32 accumulation is the fast path on v5e/v6e/v7x).
MATMUL_DTYPE = jnp.bfloat16
# Inter-kernel activation dtype kept in HBM; LN/softmax/GELU math is always fp32 in-kernel.
ACT_DTYPE = jnp.bfloat16

_ROW_TILE = 256        # rows per grid step for M-tiled kernels (multiple of 8)
_DH_TILE_MAX = 2048    # max MLP hidden-dim tile (bounds W1/W2 + intermediate VMEM)


def _row_block(m):
    return m if m <= _ROW_TILE else _ROW_TILE


def _dh_block(dh):
    if dh <= _DH_TILE_MAX:
        return dh
    for t in (2048, 1536, 1024, 768, 512, 384, 256, 128):
        if dh % t == 0:
            return t
    return dh


def _heavy_vmem_limit():
    cap = 64 * 1024 * 1024
    try:
        cap = int(getattr(pltpu.get_tpu_info(), "vmem_capacity_bytes", cap))
    except Exception:
        pass
    # v5e/v6e (128 MiB physical) -> ~96-100 MiB; v7x (64 MiB physical) -> ~48 MiB.
    return min(100 * 1024 * 1024, (cap * 3) // 4)


_HEAVY_VMEM_LIMIT = _heavy_vmem_limit()


def _cparams(dims, heavy=False):
    if heavy:
        return pltpu.CompilerParams(dimension_semantics=dims,
                                    vmem_limit_bytes=_HEAVY_VMEM_LIMIT)
    return pltpu.CompilerParams(dimension_semantics=dims)


def _resident_spec(shape, index_map):
    # Grid-invariant operand (weights/biases with a constant index_map): single-buffer it
    # so it does not cost 2x its size in VMEM.  Falls back to the default double-buffered
    # spec if this jax build does not expose pipeline_mode / Buffered.
    if hasattr(pl, "Buffered"):
        try:
            return pl.BlockSpec(shape, index_map, pipeline_mode=pl.Buffered(1))
        except (TypeError, ValueError):
            pass
    return pl.BlockSpec(shape, index_map)


def _ce(flops, bytes_accessed, transcendentals=0):
    return pl.CostEstimate(flops=int(flops), transcendentals=int(transcendentals),
                           bytes_accessed=int(bytes_accessed))


# ----------------------------- Pallas kernels ------------------------------

def _matmul_kernel(x_ref, w_ref, o_ref):
    y = jnp.dot(x_ref[...].astype(MATMUL_DTYPE), w_ref[...].astype(MATMUL_DTYPE),
                preferred_element_type=jnp.float32)
    o_ref[...] = y.astype(o_ref.dtype)


def _linear_kernel(x_ref, w_ref, b_ref, o_ref):
    y = jnp.dot(x_ref[...].astype(MATMUL_DTYPE), w_ref[...].astype(MATMUL_DTYPE),
                preferred_element_type=jnp.float32)
    o_ref[...] = (y + b_ref[...].astype(jnp.float32)).astype(o_ref.dtype)


def _linear_residual_kernel(x_ref, w_ref, b_ref, r_ref, o_ref):
    # Fused out-projection + residual add (residual read in bf16, added in fp32).
    y = jnp.dot(x_ref[...].astype(MATMUL_DTYPE), w_ref[...].astype(MATMUL_DTYPE),
                preferred_element_type=jnp.float32)
    y = y + b_ref[...].astype(jnp.float32) + r_ref[...].astype(jnp.float32)
    o_ref[...] = y.astype(o_ref.dtype)


def _ln(x_f32, g_ref, b_ref, eps):
    mean = jnp.mean(x_f32, axis=-1, keepdims=True)
    var = jnp.mean((x_f32 - mean) ** 2, axis=-1, keepdims=True)
    y = (x_f32 - mean) * jax.lax.rsqrt(var + eps)
    return y * g_ref[...].astype(jnp.float32) + b_ref[...].astype(jnp.float32)


def _layernorm_kernel(x_ref, g_ref, b_ref, o_ref, *, eps):
    o_ref[...] = _ln(x_ref[...].astype(jnp.float32), g_ref, b_ref, eps).astype(o_ref.dtype)


def _addpos_ln_kernel(x_ref, pos_ref, g_ref, b_ref, o_ref, *, eps):
    # Fused positional-embedding add + ln_pre (one HBM pass over the sequence).
    x = x_ref[0].astype(jnp.float32) + pos_ref[...].astype(jnp.float32)   # (S, D)
    o_ref[0] = _ln(x, g_ref, b_ref, eps).astype(o_ref.dtype)


def _ln_linear_kernel(x_ref, g_ref, bb_ref, w_ref, b_ref, o_ref, *, eps):
    # Fused LayerNorm (fp32) -> Linear (bf16 MXU, fp32 accumulate).
    h = _ln(x_ref[...].astype(jnp.float32), g_ref, bb_ref, eps)
    y = jnp.dot(h.astype(MATMUL_DTYPE), w_ref[...].astype(MATMUL_DTYPE),
                preferred_element_type=jnp.float32)
    o_ref[...] = (y + b_ref[...].astype(jnp.float32)).astype(o_ref.dtype)


def _ln_mlp_residual_kernel(x_ref, g_ref, bb_ref, w1_ref, b1_ref, w2_ref, b2_ref,
                            o_ref, h_sc, acc_sc, *, eps):
    # Fused LayerNorm -> Linear -> QuickGELU -> Linear -> (+ residual),
    # tiled over the hidden dim (grid axis 1, "arbitrary") with a fp32 accumulator.
    t = pl.program_id(1)

    @pl.when(t == 0)
    def _():
        h_sc[...] = _ln(x_ref[...].astype(jnp.float32), g_ref, bb_ref,
                        eps).astype(h_sc.dtype)
        acc_sc[...] = jnp.zeros_like(acc_sc)

    a = jnp.dot(h_sc[...], w1_ref[...].astype(MATMUL_DTYPE),
                preferred_element_type=jnp.float32)
    a = a + b1_ref[...].astype(jnp.float32)
    a = a * jax.nn.sigmoid(1.702 * a)                         # QuickGELU in fp32
    acc_sc[...] += jnp.dot(a.astype(MATMUL_DTYPE), w2_ref[...].astype(MATMUL_DTYPE),
                           preferred_element_type=jnp.float32)

    @pl.when(t == pl.num_programs(1) - 1)
    def _():
        y = acc_sc[...] + b2_ref[...].astype(jnp.float32) + x_ref[...].astype(jnp.float32)
        o_ref[...] = y.astype(o_ref.dtype)


def _attn_kernel(qkv_ref, o_ref, *, n_head, head_dim):
    # One batch element per grid step.  q/k/v are sliced straight out of the fused QKV
    # projection ((S, 3*D), head-major within each D chunk) and the per-head outputs are
    # written into the (S, D) merged-head layout, so no XLA head split/merge transposes
    # are needed around this kernel.  The 1/sqrt(head_dim) scale is pre-folded into W_q.
    # TODO(synk): hd < 128 under-fills the 256-wide MXU columns on v6e/v7x; packing head
    #             pairs or a flash-style query-tiled fori_loop would lift MXU utilization
    #             and bound the (S,S) score live range further.  A (B, H) grid would also
    #             feed v7x's two TensorCores better.
    D = n_head * head_dim
    for h in range(n_head):
        q = qkv_ref[0, :, h * head_dim:(h + 1) * head_dim].astype(MATMUL_DTYPE)
        k = qkv_ref[0, :, D + h * head_dim:D + (h + 1) * head_dim].astype(MATMUL_DTYPE)
        v = qkv_ref[0, :, 2 * D + h * head_dim:2 * D + (h + 1) * head_dim].astype(MATMUL_DTYPE)
        s = jax.lax.dot_general(q, k, (((1,), (1,)), ((), ())),
                                preferred_element_type=jnp.float32)      # (S, S), no k.T
        s = s - jnp.max(s, axis=-1, keepdims=True)
        p = jnp.exp(s)
        p = p * pl.reciprocal(jnp.sum(p, axis=-1, keepdims=True), approx=True)
        o = jnp.dot(p.astype(MATMUL_DTYPE), v, preferred_element_type=jnp.float32)
        o_ref[0, :, h * head_dim:(h + 1) * head_dim] = o.astype(o_ref.dtype)


def _linear_softmax_kernel(x_ref, w_ref, b_ref, o_ref):
    logits = jnp.dot(x_ref[...].astype(MATMUL_DTYPE), w_ref[...].astype(MATMUL_DTYPE),
                     preferred_element_type=jnp.float32)
    logits = logits + b_ref[...].astype(jnp.float32)
    logits = logits - jnp.max(logits, axis=-1, keepdims=True)
    e = jnp.exp(logits)
    o_ref[...] = (e / jnp.sum(e, axis=-1, keepdims=True)).astype(o_ref.dtype)


# ----------------------------- kernel wrappers ------------------------------

def matmul(x, w, out_dtype=None):
    M, K = x.shape
    N = w.shape[1]
    bm = _row_block(M)
    out_dtype = x.dtype if out_dtype is None else out_dtype
    return pl.pallas_call(
        _matmul_kernel,
        out_shape=jax.ShapeDtypeStruct((M, N), out_dtype),
        grid=(pl.cdiv(M, bm),),
        in_specs=[pl.BlockSpec((bm, K), lambda i: (i, 0)),
                  _resident_spec((K, N), lambda i: (0, 0))],
        out_specs=pl.BlockSpec((bm, N), lambda i: (i, 0)),
        compiler_params=_cparams(("parallel",)),
        cost_estimate=_ce(2 * M * K * N, (M * K + M * N) * 4 + K * N * 2),
    )(x, w)


def linear(x, w, b, out_dtype=None):
    M, K = x.shape
    N = w.shape[1]
    bm = _row_block(M)
    out_dtype = x.dtype if out_dtype is None else out_dtype
    return pl.pallas_call(
        _linear_kernel,
        out_shape=jax.ShapeDtypeStruct((M, N), out_dtype),
        grid=(pl.cdiv(M, bm),),
        in_specs=[pl.BlockSpec((bm, K), lambda i: (i, 0)),
                  _resident_spec((K, N), lambda i: (0, 0)),
                  _resident_spec((1, N), lambda i: (0, 0))],
        out_specs=pl.BlockSpec((bm, N), lambda i: (i, 0)),
        compiler_params=_cparams(("parallel",)),
        cost_estimate=_ce(2 * M * K * N, (M * K + M * N) * 4 + K * N * 2),
    )(x, w, b.reshape(1, N))


def linear_residual(x, w, b, res, out_dtype=None):
    M, K = x.shape
    N = w.shape[1]
    bm = _row_block(M)
    out_dtype = res.dtype if out_dtype is None else out_dtype
    return pl.pallas_call(
        _linear_residual_kernel,
        out_shape=jax.ShapeDtypeStruct((M, N), out_dtype),
        grid=(pl.cdiv(M, bm),),
        in_specs=[pl.BlockSpec((bm, K), lambda i: (i, 0)),
                  _resident_spec((K, N), lambda i: (0, 0)),
                  _resident_spec((1, N), lambda i: (0, 0)),
                  pl.BlockSpec((bm, N), lambda i: (i, 0))],
        out_specs=pl.BlockSpec((bm, N), lambda i: (i, 0)),
        compiler_params=_cparams(("parallel",), heavy=True),
        cost_estimate=_ce(2 * M * K * N, (M * K + 2 * M * N) * 4 + K * N * 2),
    )(x, w, b.reshape(1, N), res)


def layernorm(x, gamma, beta, eps=1e-5, out_dtype=None):
    M, D = x.shape
    bm = _row_block(M)
    out_dtype = x.dtype if out_dtype is None else out_dtype
    return pl.pallas_call(
        functools.partial(_layernorm_kernel, eps=eps),
        out_shape=jax.ShapeDtypeStruct((M, D), out_dtype),
        grid=(pl.cdiv(M, bm),),
        in_specs=[pl.BlockSpec((bm, D), lambda i: (i, 0)),
                  _resident_spec((1, D), lambda i: (0, 0)),
                  _resident_spec((1, D), lambda i: (0, 0))],
        out_specs=pl.BlockSpec((bm, D), lambda i: (i, 0)),
        compiler_params=_cparams(("parallel",)),
    )(x, gamma.reshape(1, D), beta.reshape(1, D))


def addpos_ln(xseq, pos, gamma, beta, eps=1e-5, out_dtype=None):
    # xseq: (B, S, D); pos: (S, D).  Fused pos-add + ln_pre, grid over batch.
    B, S, D = xseq.shape
    out_dtype = xseq.dtype if out_dtype is None else out_dtype
    return pl.pallas_call(
        functools.partial(_addpos_ln_kernel, eps=eps),
        out_shape=jax.ShapeDtypeStruct((B, S, D), out_dtype),
        grid=(B,),
        in_specs=[pl.BlockSpec((1, S, D), lambda b: (b, 0, 0)),
                  _resident_spec((S, D), lambda b: (0, 0)),
                  _resident_spec((1, D), lambda b: (0, 0)),
                  _resident_spec((1, D), lambda b: (0, 0))],
        out_specs=pl.BlockSpec((1, S, D), lambda b: (b, 0, 0)),
        compiler_params=_cparams(("parallel",)),
    )(xseq, pos, gamma.reshape(1, D), beta.reshape(1, D))


def ln_linear(x, gamma, beta, w, b, eps=1e-5, out_dtype=None):
    M, D = x.shape
    N = w.shape[1]
    bm = _row_block(M)
    out_dtype = x.dtype if out_dtype is None else out_dtype
    return pl.pallas_call(
        functools.partial(_ln_linear_kernel, eps=eps),
        out_shape=jax.ShapeDtypeStruct((M, N), out_dtype),
        grid=(pl.cdiv(M, bm),),
        in_specs=[pl.BlockSpec((bm, D), lambda i: (i, 0)),
                  _resident_spec((1, D), lambda i: (0, 0)),
                  _resident_spec((1, D), lambda i: (0, 0)),
                  _resident_spec((D, N), lambda i: (0, 0)),
                  _resident_spec((1, N), lambda i: (0, 0))],
        out_specs=pl.BlockSpec((bm, N), lambda i: (i, 0)),
        compiler_params=_cparams(("parallel",), heavy=True),
        cost_estimate=_ce(2 * M * D * N, (M * D + M * N) * 4 + D * N * 2),
    )(x, gamma.reshape(1, D), beta.reshape(1, D), w, b.reshape(1, N))


def ln_mlp_residual(x, gamma, beta, w1, b1, w2, b2, eps=1e-5, out_dtype=None):
    M, D = x.shape
    Dh = w1.shape[1]
    bm = _row_block(M)
    bdh = _dh_block(Dh)
    out_dtype = x.dtype if out_dtype is None else out_dtype
    return pl.pallas_call(
        functools.partial(_ln_mlp_residual_kernel, eps=eps),
        out_shape=jax.ShapeDtypeStruct((M, D), out_dtype),
        grid=(pl.cdiv(M, bm), pl.cdiv(Dh, bdh)),
        in_specs=[pl.BlockSpec((bm, D), lambda i, t: (i, 0)),
                  _resident_spec((1, D), lambda i, t: (0, 0)),
                  _resident_spec((1, D), lambda i, t: (0, 0)),
                  pl.BlockSpec((D, bdh), lambda i, t: (0, t)),     # W1 tile streams over t
                  pl.BlockSpec((1, bdh), lambda i, t: (0, t)),
                  pl.BlockSpec((bdh, D), lambda i, t: (t, 0)),     # W2 tile streams over t
                  _resident_spec((1, D), lambda i, t: (0, 0))],
        out_specs=pl.BlockSpec((bm, D), lambda i, t: (i, 0)),
        scratch_shapes=[pltpu.VMEM((bm, D), MATMUL_DTYPE),         # cached LN(x)
                        pltpu.VMEM((bm, D), jnp.float32)],         # fp32 accumulator
        compiler_params=_cparams(("parallel", "arbitrary"), heavy=True),
        cost_estimate=_ce(4 * M * D * Dh, 2 * M * D * 4 + 2 * D * Dh * 2,
                          transcendentals=M * Dh),
    )(x, gamma.reshape(1, D), beta.reshape(1, D), w1, b1.reshape(1, Dh),
      w2, b2.reshape(1, D))


def sdpa_fused_heads(qkv, n_head, head_dim, out_dtype=None):
    # qkv: (B, S, 3*D) straight from the QKV projection (head-major within each D chunk).
    B, S, threeD = qkv.shape
    D = n_head * head_dim
    assert threeD == 3 * D
    out_dtype = qkv.dtype if out_dtype is None else out_dtype
    return pl.pallas_call(
        functools.partial(_attn_kernel, n_head=n_head, head_dim=head_dim),
        out_shape=jax.ShapeDtypeStruct((B, S, D), out_dtype),
        grid=(B,),
        in_specs=[pl.BlockSpec((1, S, 3 * D), lambda b: (b, 0, 0))],
        out_specs=pl.BlockSpec((1, S, D), lambda b: (b, 0, 0)),
        compiler_params=_cparams(("parallel",), heavy=True),
        cost_estimate=_ce(4 * B * n_head * S * S * head_dim, B * S * 4 * D * 2,
                          transcendentals=B * n_head * S * S),
    )(qkv)


def linear_softmax(x, w, b, out_dtype=None):
    M, K = x.shape
    N = w.shape[1]
    bm = _row_block(M)
    out_dtype = x.dtype if out_dtype is None else out_dtype
    return pl.pallas_call(
        _linear_softmax_kernel,
        out_shape=jax.ShapeDtypeStruct((M, N), out_dtype),
        grid=(pl.cdiv(M, bm),),
        in_specs=[pl.BlockSpec((bm, K), lambda i: (i, 0)),
                  _resident_spec((K, N), lambda i: (0, 0)),
                  _resident_spec((1, N), lambda i: (0, 0))],
        out_specs=pl.BlockSpec((bm, N), lambda i: (i, 0)),
        compiler_params=_cparams(("parallel",)),
        cost_estimate=_ce(2 * M * K * N, (M * K + M * N) * 4 + K * N * 2,
                          transcendentals=M * N),
    )(x, w, b.reshape(1, N))


def classifier_softmax(x, w, b):
    # Pad the logits width to a lane-dense multiple of 128; padded columns get a huge
    # negative bias so they take zero softmax mass, and are sliced off afterwards.
    N = w.shape[1]
    n_pad = (-N) % 128
    if n_pad:
        w = jnp.pad(w, ((0, 0), (0, n_pad)))
        b = jnp.pad(b, (0, n_pad), constant_values=-1e30)
    probs = linear_softmax(x, w, b, out_dtype=jnp.float32)
    return probs[:, :N]


# ------------------------------ model wrapper -------------------------------

def residual_attention_block(x2d, p, B, S, n_head):
    # x2d: (B*S, D) bf16, row = b*S + s.  Identical math to PyTorch's (seq, batch, width)
    # layout since every op is per-row or per-(batch, head).
    D = x2d.shape[1]
    hd = D // n_head

    # --- attention branch: fused LN1 + QKV projection (1/sqrt(hd) pre-folded into W_q) ---
    qkv = ln_linear(x2d, p["ln1_g"], p["ln1_b"], p["in_proj_w"], p["in_proj_b"],
                    out_dtype=ACT_DTYPE)                       # (B*S, 3D)
    qkv = qkv.reshape(B, S, 3 * D)                             # free (row-major split)
    o = sdpa_fused_heads(qkv, n_head, hd, out_dtype=ACT_DTYPE)  # (B, S, D), heads merged
    o = o.reshape(B * S, D)                                    # free
    # fused out-projection + residual add
    x2d = linear_residual(o, p["out_proj_w"], p["out_proj_b"], x2d, out_dtype=ACT_DTYPE)

    # --- MLP branch: fused LN2 + fc + QuickGELU + proj + residual, tiled over Dh ---
    x2d = ln_mlp_residual(x2d, p["ln2_g"], p["ln2_b"],
                          p["fc_w"], p["fc_b"], p["proj_w"], p["proj_b"],
                          out_dtype=ACT_DTYPE)
    return x2d


def vit_forward(params, x, cluster, *, patch_size, heads):
    # x: (B, 3, H, W) NCHW, like the PyTorch module.
    B, C, H, W = x.shape
    p = patch_size
    gh, gw = H // p, W // p
    D = params["class_embedding"].shape[0]

    # conv1 (kernel=stride=patch) == im2col + bias-less matmul; pad the contraction
    # dim to a multiple of 128 for lane-aligned MXU operands.
    patches = x.reshape(B, C, gh, p, gw, p)
    patches = patches.transpose(0, 2, 4, 1, 3, 5).reshape(B * gh * gw, C * p * p)
    K = C * p * p
    k_pad = (-K) % 128
    conv_w = params["conv1_w"]
    if k_pad:
        patches = jnp.pad(patches, ((0, 0), (0, k_pad)))
        conv_w = jnp.pad(conv_w, ((0, k_pad), (0, 0)))
    emb = matmul(patches, conv_w, out_dtype=ACT_DTYPE).reshape(B, gh * gw, D)

    # prepend class token (XLA concat), then fused pos-embedding add + ln_pre kernel.
    # TODO(synk): the class-token concat could also be folded into addpos_ln to save
    #             one more (B,S,D) HBM write.
    cls = jnp.broadcast_to(params["class_embedding"].astype(ACT_DTYPE).reshape(1, 1, D),
                           (B, 1, D))
    xseq = jnp.concatenate([cls, emb], axis=1)                 # (B, S, D) bf16
    S = xseq.shape[1]
    xseq = addpos_ln(xseq, params["positional_embedding"],
                     params["ln_pre_g"], params["ln_pre_b"], out_dtype=ACT_DTYPE)

    # transformer in (B*S, D) row-major layout, bf16 residual stream.
    x2d = xseq.reshape(B * S, D)
    for lp in params["layers"]:
        x2d = residual_attention_block(x2d, lp, B, S, heads)
    xseq = x2d.reshape(B, S, D)

    # ln_post on the CLS token (features returned in fp32, like the fp32 torch module).
    feats = layernorm(xseq[:, 0, :], params["ln_post_g"], params["ln_post_b"],
                      out_dtype=jnp.float32)

    # classifier + softmax (fused, lane-dense padded logits).
    hard_labels = classifier_softmax(feats, params["cls_w"], params["cls_b"])

    # cluster projection (cluster must have clu_w.shape[0] == output_dim features).
    projected_cluster = None
    if cluster is not None:
        assert cluster.shape[-1] == params["clu_w"].shape[0]
        projected_cluster = linear(cluster, params["clu_w"], params["clu_b"],
                                   out_dtype=jnp.float32)

    return feats, hard_labels, projected_cluster


# ------------------------------ parameter init ------------------------------

def init_params(key, *, input_resolution, patch_size, width, layers, heads,
                num_classes, output_dim=-1):
    D = width
    n_patches = (input_resolution // patch_size) ** 2
    out_dim = D if output_dim == -1 else output_dim
    emb_scale = D ** -0.5
    attn_scale = (D // heads) ** -0.5

    k_conv, k_cls, k_pos, k_head, k_clu, k_layers = jax.random.split(key, 6)

    def nrm(k, shape, s=0.02):
        # big matmul weights are stored directly in the MXU operand dtype (bf16);
        # no fp32 master copy is kept (inference-only demo).
        return (s * jax.random.normal(k, shape)).astype(MATMUL_DTYPE)

    params = {
        # conv weight stored pre-transposed for matmul: (3*p*p, D)
        "conv1_w": nrm(k_conv, (3 * patch_size * patch_size, D)),
        "class_embedding": (emb_scale * jax.random.normal(k_cls, (D,))).astype(jnp.float32),
        "positional_embedding": (emb_scale * jax.random.normal(
            k_pos, (n_patches + 1, D))).astype(jnp.float32),
        "ln_pre_g": jnp.ones((D,), jnp.float32),
        "ln_pre_b": jnp.zeros((D,), jnp.float32),
        "ln_post_g": jnp.ones((D,), jnp.float32),
        "ln_post_b": jnp.zeros((D,), jnp.float32),
        "cls_w": nrm(k_head, (D, num_classes)),
        "cls_b": jnp.zeros((num_classes,), jnp.float32),
        "clu_w": nrm(k_clu, (out_dim, D)),
        "clu_b": jnp.zeros((D,), jnp.float32),
        "layers": [],
    }
    for lk in jax.random.split(k_layers, layers):
        k1, k2, k3, k4 = jax.random.split(lk, 4)
        # Fold the 1/sqrt(head_dim) attention scale into the Q slice of the QKV
        # projection weight and bias (apply the same fold when importing torch weights).
        w_qkv = 0.02 * jax.random.normal(k1, (D, 3 * D))
        w_qkv = w_qkv.at[:, :D].multiply(attn_scale)
        b_qkv = jnp.zeros((3 * D,), jnp.float32).at[:D].multiply(attn_scale)
        lp = {
            "ln1_g": jnp.ones((D,), jnp.float32),
            "ln1_b": jnp.zeros((D,), jnp.float32),
            "ln2_g": jnp.ones((D,), jnp.float32),
            "ln2_b": jnp.zeros((D,), jnp.float32),
            # stored as (in, out), i.e. already transposed vs torch's (out, in)
            "in_proj_w": w_qkv.astype(MATMUL_DTYPE),
            "in_proj_b": b_qkv,
            "out_proj_w": nrm(k2, (D, D)),
            "out_proj_b": jnp.zeros((D,), jnp.float32),
            "fc_w": nrm(k3, (D, 4 * D)),
            "fc_b": jnp.zeros((4 * D,), jnp.float32),
            "proj_w": nrm(k4, (4 * D, D)),
            "proj_b": jnp.zeros((D,), jnp.float32),
        }
        params["layers"].append(lp)
    return params


# ---------------------------------- main ------------------------------------

if __name__ == "__main__":
    B = 2
    input_resolution = 16
    patch_size = 4
    width = 32
    layers = 2
    heads = 4
    num_classes = 10

    root = jax.random.PRNGKey(0)
    k_x, k_cluster, k_params = jax.random.split(root, 3)

    x = jax.random.normal(k_x, (B, 3, input_resolution, input_resolution),
                          dtype=jnp.float32)
    cluster = jax.random.normal(k_cluster, (B, width), dtype=jnp.float32)

    params = init_params(k_params,
                         input_resolution=input_resolution,
                         patch_size=patch_size, width=width,
                         layers=layers, heads=heads,
                         num_classes=num_classes, output_dim=-1)

    fwd = jax.jit(functools.partial(vit_forward, patch_size=patch_size, heads=heads))
    feats, hard_labels, projected_cluster = fwd(params, x, cluster)
    jax.block_until_ready((feats, hard_labels, projected_cluster))

    assert feats.shape == (B, width)
    assert hard_labels.shape == (B, num_classes)
    assert projected_cluster.shape == (B, width)
    assert bool(jnp.all(jnp.isfinite(feats)))
    assert bool(jnp.allclose(jnp.sum(hard_labels, axis=-1), 1.0, atol=1e-2))
    print("KERNEL_OK")
</pallas_src>

<mosaic_0001>
module attributes {stable_mosaic.version = 11 : i64} {
  func.func @_addpos_ln_kernel(%arg0: i32, %arg1: memref<1x17x32xbf16, #tpu.memory_space<vmem>>, %arg2: memref<17x32xf32, #tpu.memory_space<vmem>>, %arg3: memref<1x32xf32, #tpu.memory_space<vmem>>, %arg4: memref<1x32xf32, #tpu.memory_space<vmem>>, %arg5: memref<1x17x32xbf16, #tpu.memory_space<vmem>>) attributes {dimension_semantics = [#tpu.dimension_semantics<parallel>], iteration_bounds = array<i64: 2>, scalar_prefetch = 0 : i64, scratch_operands = 0 : i64, tpu.core_type = #tpu.core_type<tc>, window_params = [{transform_indices = @transform_0, window_bounds = array<i64: 1, 17, 32>}, {pipeline_mode = #tpu.pipeline_mode<synchronous>, transform_indices = @transform_1, window_bounds = array<i64: 17, 32>}, {pipeline_mode = #tpu.pipeline_mode<synchronous>, transform_indices = @transform_2, window_bounds = array<i64: 1, 32>}, {pipeline_mode = #tpu.pipeline_mode<synchronous>, transform_indices = @transform_3, window_bounds = array<i64: 1, 32>}, {transform_indices = @transform_4, window_bounds = array<i64: 1, 17, 32>}]} {
    %c0 = arith.constant 0 : index
    %c0_0 = arith.constant 0 : index
    %c0_1 = arith.constant 0 : index
    %0 = vector.load %arg1[%c0, %c0_0, %c0_1] : memref<1x17x32xbf16, #tpu.memory_space<vmem>>, vector<1x17x32xbf16>
    %1 = vector.shape_cast %0 : vector<1x17x32xbf16> to vector<17x32xbf16>
    %2 = arith.extf %1 : vector<17x32xbf16> to vector<17x32xf32>
    %c0_2 = arith.constant 0 : index
    %c0_3 = arith.constant 0 : index
    %3 = vector.load %arg2[%c0_2, %c0_3] : memref<17x32xf32, #tpu.memory_space<vmem>>, vector<17x32xf32>
    %4 = arith.addf %2, %3 : vector<17x32xf32>
    %cst = arith.constant dense<0.000000e+00> : vector<17xf32>
    %5 = vector.multi_reduction <add>, %4, %cst [1] : vector<17x32xf32> to vector<17xf32>
    %6 = vector.shape_cast %5 : vector<17xf32> to vector<17x1xf32>
    %cst_4 = arith.constant 3.200000e+01 : f32
    %7 = vector.broadcast %cst_4 : f32 to vector<17x1xf32>
    %8 = arith.divf %6, %7 : vector<17x1xf32>
    %9 = vector.broadcast %8 : vector<17x1xf32> to vector<17x32xf32>
    %10 = arith.subf %4, %9 : vector<17x32xf32>
    %11 = arith.mulf %10, %10 : vector<17x32xf32>
    %cst_5 = arith.constant dense<0.000000e+00> : vector<17xf32>
    %12 = vector.multi_reduction <add>, %11, %cst_5 [1] : vector<17x32xf32> to vector<17xf32>
    %13 = vector.shape_cast %12 : vector<17xf32> to vector<17x1xf32>
    %cst_6 = arith.constant 3.200000e+01 : f32
    %14 = vector.broadcast %cst_6 : f32 to vector<17x1xf32>
    %15 = arith.divf %13, %14 : vector<17x1xf32>
    %16 = vector.broadcast %8 : vector<17x1xf32> to vector<17x32xf32>
    %17 = arith.subf %4, %16 : vector<17x32xf32>
    %cst_7 = arith.constant 9.99999974E-6 : f32
    %18 = vector.broadcast %cst_7 : f32 to vector<17x1xf32>
    %19 = arith.addf %15, %18 : vector<17x1xf32>
    %20 = math.rsqrt %19 : vector<17x1xf32>
    %21 = vector.broadcast %20 : vector<17x1xf32> to vector<17x32xf32>
    %22 = arith.mulf %17, %21 : vector<17x32xf32>
    %c0_8 = arith.constant 0 : index
    %c0_9 = arith.constant 0 : index
    %23 = vector.load %arg3[%c0_8, %c0_9] : memref<1x32xf32, #tpu.memory_space<vmem>>, vector<1x32xf32>
    %24 = vector.broadcast %23 : vector<1x32xf32> to vector<17x32xf32>
    %25 = arith.mulf %22, %24 : vector<17x32xf32>
    %c0_10 = arith.constant 0 : index
    %c0_11 = arith.constant 0 : index
    %26 = vector.load %arg4[%c0_10, %c0_11] : memref<1x32xf32, #tpu.memory_space<vmem>>, vector<1x32xf32>
    %27 = vector.broadcast %26 : vector<1x32xf32> to vector<17x32xf32>
    %28 = arith.addf %25, %27 : vector<17x32xf32>
    %29 = arith.truncf %28 : vector<17x32xf32> to vector<17x32xbf16>
    %c0_12 = arith.constant 0 : index
    %c0_13 = arith.constant 0 : index
    %c0_14 = arith.constant 0 : index
    %30 = vector.load %arg5[%c0_12, %c0_13, %c0_14] : memref<1x17x32xbf16, #tpu.memory_space<vmem>>, vector<1x17x32xbf16>
    %31 = vector.shape_cast %30 : vector<1x17x32xbf16> to vector<17x32xbf16>
    %32 = vector.shape_cast %29 : vector<17x32xbf16> to vector<1x17x32xbf16>
    tpu.vector_store %arg5[%c0_12, %c0_13, %c0_14], %32 {strides = array<i32>} : memref<1x17x32xbf16, #tpu.memory_space<vmem>>, vector<1x17x32xbf16>,
    return
  }
  func.func @transform_0(%arg0: i32) -> (i32, i32, i32) {
    %c0_i32 = arith.constant 0 : i32
    %c0_i32_0 = arith.constant 0 : i32
    %c0_i32_1 = arith.constant 0 : i32
    return %arg0, %c0_i32, %c0_i32_0 : i32, i32, i32
  }
  func.func @transform_1(%arg0: i32) -> (i32, i32) {
    %c0_i32 = arith.constant 0 : i32
    %c0_i32_0 = arith.constant 0 : i32
    %c0_i32_1 = arith.constant 0 : i32
    return %c0_i32, %c0_i32_0 : i32, i32
  }
  func.func @transform_2(%arg0: i32) -> (i32, i32) {
    %c0_i32 = arith.constant 0 : i32
    %c0_i32_0 = arith.constant 0 : i32
    %c0_i32_1 = arith.constant 0 : i32
    return %c0_i32, %c0_i32_0 : i32, i32
  }
  func.func @transform_3(%arg0: i32) -> (i32, i32) {
    %c0_i32 = arith.constant 0 : i32
    %c0_i32_0 = arith.constant 0 : i32
    %c0_i32_1 = arith.constant 0 : i32
    return %c0_i32, %c0_i32_0 : i32, i32
  }
  func.func @transform_4(%arg0: i32) -> (i32, i32, i32) {
    %c0_i32 = arith.constant 0 : i32
    %c0_i32_0 = arith.constant 0 : i32
    %c0_i32_1 = arith.constant 0 : i32
    return %arg0, %c0_i32, %c0_i32_0 : i32, i32, i32
  }
}

module attributes {stable_mosaic.version = 11 : i64} {
  func.func @_matmul_kernel(%arg0: i32, %arg1: memref<32x128xf32, #tpu.memory_space<vmem>>, %arg2: memref<128x32xbf16, #tpu.memory_space<vmem>>, %arg3: memref<32x32xbf16, #tpu.memory_space<vmem>>) attributes {dimension_semantics = [#tpu.dimension_semantics<parallel>], iteration_bounds = array<i64: 1>, scalar_prefetch = 0 : i64, scratch_operands = 0 : i64, tpu.core_type = #tpu.core_type<tc>, window_params = [{transform_indices = @transform_0, window_bounds = array<i64: 32, 128>}, {pipeline_mode = #tpu.pipeline_mode<synchronous>, transform_indices = @transform_1, window_bounds = array<i64: 128, 32>}, {transform_indices = @transform_2, window_bounds = array<i64: 32, 32>}]} {
    %c0 = arith.constant 0 : index
    %c0_0 = arith.constant 0 : index
    %0 = vector.load %arg1[%c0, %c0_0] : memref<32x128xf32, #tpu.memory_space<vmem>>, vector<32x128xf32>
    %1 = arith.truncf %0 : vector<32x128xf32> to vector<32x128xbf16>
    %c0_1 = arith.constant 0 : index
    %c0_2 = arith.constant 0 : index
    %2 = vector.load %arg2[%c0_1, %c0_2] : memref<128x32xbf16, #tpu.memory_space<vmem>>, vector<128x32xbf16>
    %cst = arith.constant dense<0.000000e+00> : vector<32x32xf32>
    %3 = tpu.matmul %1, %2, %cst {dimension_numbers = #tpu.dot_dimension_numbers<[1], [0], [0], [1], [0, 0, 1, 1], [], []>} : vector<32x128xbf16>, vector<128x32xbf16>, vector<32x32xf32> -> vector<32x32xf32>
    %4 = arith.truncf %3 : vector<32x32xf32> to vector<32x32xbf16>
    %c0_3 = arith.constant 0 : index
    %c0_4 = arith.constant 0 : index
    %5 = vector.load %arg3[%c0_3, %c0_4] : memref<32x32xbf16, #tpu.memory_space<vmem>>, vector<32x32xbf16>
    tpu.vector_store %arg3[%c0_3, %c0_4], %4 {strides = array<i32>} : memref<32x32xbf16, #tpu.memory_space<vmem>>, vector<32x32xbf16>,
    return
  }
  func.func @transform_0(%arg0: i32) -> (i32, i32) {
    %c0_i32 = arith.constant 0 : i32
    %c0_i32_0 = arith.constant 0 : i32
    return %arg0, %c0_i32 : i32, i32
  }
  func.func @transform_1(%arg0: i32) -> (i32, i32) {
    %c0_i32 = arith.constant 0 : i32
    %c0_i32_0 = arith.constant 0 : i32
    %c0_i32_1 = arith.constant 0 : i32
    return %c0_i32, %c0_i32_0 : i32, i32
  }
  func.func @transform_2(%arg0: i32) -> (i32, i32) {
    %c0_i32 = arith.constant 0 : i32
    %c0_i32_0 = arith.constant 0 : i32
    return %arg0, %c0_i32 : i32, i32
  }
}

module attributes {stable_mosaic.version = 11 : i64} {
  func.func @_ln_linear_kernel(%arg0: i32, %arg1: memref<34x32xbf16, #tpu.memory_space<vmem>>, %arg2: memref<1x32xf32, #tpu.memory_space<vmem>>, %arg3: memref<1x32xf32, #tpu.memory_space<vmem>>, %arg4: memref<32x96xbf16, #tpu.memory_space<vmem>>, %arg5: memref<1x96xf32, #tpu.memory_space<vmem>>, %arg6: memref<34x96xbf16, #tpu.memory_space<vmem>>) attributes {dimension_semantics = [#tpu.dimension_semantics<parallel>], iteration_bounds = array<i64: 1>, scalar_prefetch = 0 : i64, scratch_operands = 0 : i64, tpu.core_type = #tpu.core_type<tc>, window_params = [{transform_indices = @transform_0, window_bounds = array<i64: 34, 32>}, {pipeline_mode = #tpu.pipeline_mode<synchronous>, transform_indices = @transform_1, window_bounds = array<i64: 1, 32>}, {pipeline_mode = #tpu.pipeline_mode<synchronous>, transform_indices = @transform_2, window_bounds = array<i64: 1, 32>}, {pipeline_mode = #tpu.pipeline_mode<synchronous>, transform_indices = @transform_3, window_bounds = array<i64: 32, 96>}, {pipeline_mode = #tpu.pipeline_mode<synchronous>, transform_indices = @transform_4, window_bounds = array<i64: 1, 96>}, {transform_indices = @transform_5, window_bounds = array<i64: 34, 96>}]} {
    %c0 = arith.constant 0 : index
    %c0_0 = arith.constant 0 : index
    %0 = vector.load %arg1[%c0, %c0_0] : memref<34x32xbf16, #tpu.memory_space<vmem>>, vector<34x32xbf16>
    %1 = arith.extf %0 : vector<34x32xbf16> to vector<34x32xf32>
    %cst = arith.constant dense<0.000000e+00> : vector<34xf32>
    %2 = vector.multi_reduction <add>, %1, %cst [1] : vector<34x32xf32> to vector<34xf32>
    %3 = vector.shape_cast %2 : vector<34xf32> to vector<34x1xf32>
    %cst_1 = arith.constant 3.200000e+01 : f32
    %4 = vector.broadcast %cst_1 : f32 to vector<34x1xf32>
    %5 = arith.divf %3, %4 : vector<34x1xf32>
    %6 = vector.broadcast %5 : vector<34x1xf32> to vector<34x32xf32>
    %7 = arith.subf %1, %6 : vector<34x32xf32>
    %8 = arith.mulf %7, %7 : vector<34x32xf32>
    %cst_2 = arith.constant dense<0.000000e+00> : vector<34xf32>
    %9 = vector.multi_reduction <add>, %8, %cst_2 [1] : vector<34x32xf32> to vector<34xf32>
    %10 = vector.shape_cast %9 : vector<34xf32> to vector<34x1xf32>
    %cst_3 = arith.constant 3.200000e+01 : f32
    %11 = vector.broadcast %cst_3 : f32 to vector<34x1xf32>
    %12 = arith.divf %10, %11 : vector<34x1xf32>
    %13 = vector.broadcast %5 : vector<34x1xf32> to vector<34x32xf32>
    %14 = arith.subf %1, %13 : vector<34x32xf32>
    %cst_4 = arith.constant 9.99999974E-6 : f32
    %15 = vector.broadcast %cst_4 : f32 to vector<34x1xf32>
    %16 = arith.addf %12, %15 : vector<34x1xf32>
    %17 = math.rsqrt %16 : vector<34x1xf32>
    %18 = vector.broadcast %17 : vector<34x1xf32> to vector<34x32xf32>
    %19 = arith.mulf %14, %18 : vector<34x32xf32>
    %c0_5 = arith.constant 0 : index
    %c0_6 = arith.constant 0 : index
    %20 = vector.load %arg2[%c0_5, %c0_6] : memref<1x32xf32, #tpu.memory_space<vmem>>, vector<1x32xf32>
    %21 = vector.broadcast %20 : vector<1x32xf32> to vector<34x32xf32>
    %22 = arith.mulf %19, %21 : vector<34x32xf32>
    %c0_7 = arith.constant 0 : index
    %c0_8 = arith.constant 0 : index
    %23 = vector.load %arg3[%c0_7, %c0_8] : memref<1x32xf32, #tpu.memory_space<vmem>>, vector<1x32xf32>
    %24 = vector.broadcast %23 : vector<1x32xf32> to vector<34x32xf32>
    %25 = arith.addf %22, %24 : vector<34x32xf32>
    %26 = arith.truncf %25 : vector<34x32xf32> to vector<34x32xbf16>
    %c0_9 = arith.constant 0 : index
    %c0_10 = arith.constant 0 : index
    %27 = vector.load %arg4[%c0_9, %c0_10] : memref<32x96xbf16, #tpu.memory_space<vmem>>, vector<32x96xbf16>
    %cst_11 = arith.constant dense<0.000000e+00> : vector<34x96xf32>
    %28 = tpu.matmul %26, %27, %cst_11 {dimension_numbers = #tpu.dot_dimension_numbers<[1], [0], [0], [1], [0, 0, 1, 1], [], []>} : vector<34x32xbf16>, vector<32x96xbf16>, vector<34x96xf32> -> vector<34x96xf32>
    %c0_12 = arith.constant 0 : index
    %c0_13 = arith.constant 0 : index
    %29 = vector.load %arg5[%c0_12, %c0_13] : memref<1x96xf32, #tpu.memory_space<vmem>>, vector<1x96xf32>
    %30 = vector.broadcast %29 : vector<1x96xf32> to vector<34x96xf32>
    %31 = arith.addf %28, %30 : vector<34x96xf32>
    %32 = arith.truncf %31 : vector<34x96xf32> to vector<34x96xbf16>
    %c0_14 = arith.constant 0 : index
    %c0_15 = arith.constant 0 : index
    %33 = vector.load %arg6[%c0_14, %c0_15] : memref<34x96xbf16, #tpu.memory_space<vmem>>, vector<34x96xbf16>
    tpu.vector_store %arg6[%c0_14, %c0_15], %32 {strides = array<i32>} : memref<34x96xbf16, #tpu.memory_space<vmem>>, vector<34x96xbf16>,
    return
  }
  func.func @transform_0(%arg0: i32) -> (i32, i32) {
    %c0_i32 = arith.constant 0 : i32
    %c0_i32_0 = arith.constant 0 : i32
    return %arg0, %c0_i32 : i32, i32
  }
  func.func @transform_1(%arg0: i32) -> (i32, i32) {
    %c0_i32 = arith.constant 0 : i32
    %c0_i32_0 = arith.constant 0 : i32
    %c0_i32_1 = arith.constant 0 : i32
    return %c0_i32, %c0_i32_0 : i32, i32
  }
  func.func @transform_2(%arg0: i32) -> (i32, i32) {
    %c0_i32 = arith.constant 0 : i32
    %c0_i32_0 = arith.constant 0 : i32
    %c0_i32_1 = arith.constant 0 : i32
    return %c0_i32, %c0_i32_0 : i32, i32
  }
  func.func @transform_3(%arg0: i32) -> (i32, i32) {
    %c0_i32 = arith.constant 0 : i32
    %c0_i32_0 = arith.constant 0 : i32
    %c0_i32_1 = arith.constant 0 : i32
    return %c0_i32, %c0_i32_0 : i32, i32
  }
  func.func @transform_4(%arg0: i32) -> (i32, i32) {
    %c0_i32 = arith.constant 0 : i32
    %c0_i32_0 = arith.constant 0 : i32
    %c0_i32_1 = arith.constant 0 : i32
    return %c0_i32, %c0_i32_0 : i32, i32
  }
  func.func @transform_5(%arg0: i32) -> (i32, i32) {
    %c0_i32 = arith.constant 0 : i32
    %c0_i32_0 = arith.constant 0 : i32
    return %arg0, %c0_i32 : i32, i32
  }
}

module attributes {stable_mosaic.version = 11 : i64} {
  func.func @_attn_kernel(%arg0: i32, %arg1: memref<1x17x96xbf16, #tpu.memory_space<vmem>>, %arg2: memref<1x17x32xbf16, #tpu.memory_space<vmem>>) attributes {dimension_semantics = [#tpu.dimension_semantics<parallel>], iteration_bounds = array<i64: 2>, scalar_prefetch = 0 : i64, scratch_operands = 0 : i64, tpu.core_type = #tpu.core_type<tc>, window_params = [{transform_indices = @transform_0, window_bounds = array<i64: 1, 17, 96>}, {transform_indices = @transform_1, window_bounds = array<i64: 1, 17, 32>}]} {
    %c0 = arith.constant 0 : index
    %c0_0 = arith.constant 0 : index
    %c0_1 = arith.constant 0 : index
    %0 = vector.load %arg1[%c0, %c0_0, %c0_1] : memref<1x17x96xbf16, #tpu.memory_space<vmem>>, vector<1x17x8xbf16>
    %1 = vector.shape_cast %0 : vector<1x17x8xbf16> to vector<17x8xbf16>
    %c0_2 = arith.constant 0 : index
    %c0_3 = arith.constant 0 : index
    %c32 = arith.constant 32 : index
    %2 = vector.load %arg1[%c0_2, %c0_3, %c32] : memref<1x17x96xbf16, #tpu.memory_space<vmem>>, vector<1x17x8xbf16>
    %3 = vector.shape_cast %2 : vector<1x17x8xbf16> to vector<17x8xbf16>
    %c0_4 = arith.constant 0 : index
    %c0_5 = arith.constant 0 : index
    %c64 = arith.constant 64 : index
    %4 = vector.load %arg1[%c0_4, %c0_5, %c64] : memref<1x17x96xbf16, #tpu.memory_space<vmem>>, vector<1x17x8xbf16>
    %5 = vector.shape_cast %4 : vector<1x17x8xbf16> to vector<17x8xbf16>
    %cst = arith.constant dense<0.000000e+00> : vector<17x17xf32>
    %6 = tpu.matmul %1, %3, %cst {dimension_numbers = #tpu.dot_dimension_numbers<[1], [1], [0], [0], [0, 0, 1, 0], [], []>} : vector<17x8xbf16>, vector<17x8xbf16>, vector<17x17xf32> -> vector<17x17xf32>
    %cst_6 = arith.constant dense<0xFF800000> : vector<17xf32>
    %7 = vector.multi_reduction <maximumf>, %6, %cst_6 [1] : vector<17x17xf32> to vector<17xf32>
    %8 = vector.shape_cast %7 : vector<17xf32> to vector<17x1xf32>
    %9 = vector.broadcast %8 : vector<17x1xf32> to vector<17x17xf32>
    %10 = arith.subf %6, %9 : vector<17x17xf32>
    %11 = math.exp %10 : vector<17x17xf32>
    %cst_7 = arith.constant dense<0.000000e+00> : vector<17xf32>
    %12 = vector.multi_reduction <add>, %11, %cst_7 [1] : vector<17x17xf32> to vector<17xf32>
    %13 = vector.shape_cast %12 : vector<17xf32> to vector<17x1xf32>
    %14 = tpu.reciprocal %13 {approx = true} : vector<17x1xf32> -> vector<17x1xf32>
    %15 = vector.broadcast %14 : vector<17x1xf32> to vector<17x17xf32>
    %16 = arith.mulf %11, %15 : vector<17x17xf32>
    %17 = arith.truncf %16 : vector<17x17xf32> to vector<17x17xbf16>
    %cst_8 = arith.constant dense<0.000000e+00> : vector<17x8xf32>
    %18 = tpu.matmul %17, %5, %cst_8 {dimension_numbers = #tpu.dot_dimension_numbers<[1], [0], [0], [1], [0, 0, 1, 1], [], []>} : vector<17x17xbf16>, vector<17x8xbf16>, vector<17x8xf32> -> vector<17x8xf32>
    %19 = arith.truncf %18 : vector<17x8xf32> to vector<17x8xbf16>
    %c0_9 = arith.constant 0 : index
    %c0_10 = arith.constant 0 : index
    %c0_11 = arith.constant 0 : index
    %20 = vector.load %arg2[%c0_9, %c0_10, %c0_11] : memref<1x17x32xbf16, #tpu.memory_space<vmem>>, vector<1x17x8xbf16>
    %21 = vector.shape_cast %20 : vector<1x17x8xbf16> to vector<17x8xbf16>
    %22 = vector.shape_cast %19 : vector<17x8xbf16> to vector<1x17x8xbf16>
    tpu.vector_store %arg2[%c0_9, %c0_10, %c0_11], %22 {strides = array<i32>} : memref<1x17x32xbf16, #tpu.memory_space<vmem>>, vector<1x17x8xbf16>,
    %c0_12 = arith.constant 0 : index
    %c0_13 = arith.constant 0 : index
    %c8 = arith.constant 8 : index
    %23 = vector.load %arg1[%c0_12, %c0_13, %c8] : memref<1x17x96xbf16, #tpu.memory_space<vmem>>, vector<1x17x8xbf16>
    %24 = vector.shape_cast %23 : vector<1x17x8xbf16> to vector<17x8xbf16>
    %c0_14 = arith.constant 0 : index
    %c0_15 = arith.constant 0 : index
    %c40 = arith.constant 40 : index
    %25 = vector.load %arg1[%c0_14, %c0_15, %c40] : memref<1x17x96xbf16, #tpu.memory_space<vmem>>, vector<1x17x8xbf16>
    %26 = vector.shape_cast %25 : vector<1x17x8xbf16> to vector<17x8xbf16>
    %c0_16 = arith.constant 0 : index
    %c0_17 = arith.constant 0 : index
    %c72 = arith.constant 72 : index
    %27 = vector.load %arg1[%c0_16, %c0_17, %c72] : memref<1x17x96xbf16, #tpu.memory_space<vmem>>, vector<1x17x8xbf16>
    %28 = vector.shape_cast %27 : vector<1x17x8xbf16> to vector<17x8xbf16>
    %cst_18 = arith.constant dense<0.000000e+00> : vector<17x17xf32>
    %29 = tpu.matmul %24, %26, %cst_18 {dimension_numbers = #tpu.dot_dimension_numbers<[1], [1], [0], [0], [0, 0, 1, 0], [], []>} : vector<17x8xbf16>, vector<17x8xbf16>, vector<17x17xf32> -> vector<17x17xf32>
    %cst_19 = arith.constant dense<0xFF800000> : vector<17xf32>
    %30 = vector.multi_reduction <maximumf>, %29, %cst_19 [1] : vector<17x17xf32> to vector<17xf32>
    %31 = vector.shape_cast %30 : vector<17xf32> to vector<17x1xf32>
    %32 = vector.broadcast %31 : vector<17x1xf32> to vector<17x17xf32>
    %33 = arith.subf %29, %32 : vector<17x17xf32>
    %34 = math.exp %33 : vector<17x17xf32>
    %cst_20 = arith.constant dense<0.000000e+00> : vector<17xf32>
    %35 = vector.multi_reduction <add>, %34, %cst_20 [1] : vector<17x17xf32> to vector<17xf32>
    %36 = vector.shape_cast %35 : vector<17xf32> to vector<17x1xf32>
    %37 = tpu.reciprocal %36 {approx = true} : vector<17x1xf32> -> vector<17x1xf32>
    %38 = vector.broadcast %37 : vector<17x1xf32> to vector<17x17xf32>
    %39 = arith.mulf %34, %38 : vector<17x17xf32>
    %40 = arith.truncf %39 : vector<17x17xf32> to vector<17x17xbf16>
    %cst_21 = arith.constant dense<0.000000e+00> : vector<17x8xf32>
    %41 = tpu.matmul %40, %28, %cst_21 {dimension_numbers = #tpu.dot_dimension_numbers<[1], [0], [0], [1], [0, 0, 1, 1], [], []>} : vector<17x17xbf16>, vector<17x8xbf16>, vector<17x8xf32> -> vector<17x8xf32>
    %42 = arith.truncf %41 : vector<17x8xf32> to vector<17x8xbf16>
    %c0_22 = arith.constant 0 : index
    %c0_23 = arith.constant 0 : index
    %c8_24 = arith.constant 8 : index
    %43 = vector.load %arg2[%c0_22, %c0_23, %c8_24] : memref<1x17x32xbf16, #tpu.memory_space<vmem>>, vector<1x17x8xbf16>
    %44 = vector.shape_cast %43 : vector<1x17x8xbf16> to vector<17x8xbf16>
    %45 = vector.shape_cast %42 : vector<17x8xbf16> to vector<1x17x8xbf16>
    tpu.vector_store %arg2[%c0_22, %c0_23, %c8_24], %45 {strides = array<i32>} : memref<1x17x32xbf16, #tpu.memory_space<vmem>>, vector<1x17x8xbf16>,
    %c0_25 = arith.constant 0 : index
    %c0_26 = arith.constant 0 : index
    %c16 = arith.constant 16 : index
    %46 = vector.load %arg1[%c0_25, %c0_26, %c16] : memref<1x17x96xbf16, #tpu.memory_space<vmem>>, vector<1x17x8xbf16>
    %47 = vector.shape_cast %46 : vector<1x17x8xbf16> to vector<17x8xbf16>
    %c0_27 = arith.constant 0 : index
    %c0_28 = arith.constant 0 : index
    %c48 = arith.constant 48 : index
    %48 = vector.load %arg1[%c0_27, %c0_28, %c48] : memref<1x17x96xbf16, #tpu.memory_space<vmem>>, vector<1x17x8xbf16>
    %49 = vector.shape_cast %48 : vector<1x17x8xbf16> to vector<17x8xbf16>
    %c0_29 = arith.constant 0 : index
    %c0_30 = arith.constant 0 : index
    %c80 = arith.constant 80 : index
    %50 = vector.load %arg1[%c0_29, %c0_30, %c80] : memref<1x17x96xbf16, #tpu.memory_space<vmem>>, vector<1x17x8xbf16>
    %51 = vector.shape_cast %50 : vector<1x17x8xbf16> to vector<17x8xbf16>
    %cst_31 = arith.constant dense<0.000000e+00> : vector<17x17xf32>
    %52 = tpu.matmul %47, %49, %cst_31 {dimension_numbers = #tpu.dot_dimension_numbers<[1], [1], [0], [0], [0, 0, 1, 0], [], []>} : vector<17x8xbf16>, vector<17x8xbf16>, vector<17x17xf32> -> vector<17x17xf32>
    %cst_32 = arith.constant dense<0xFF800000> : vector<17xf32>
    %53 = vector.multi_reduction <maximumf>, %52, %cst_32 [1] : vector<17x17xf32> to vector<17xf32>
    %54 = vector.shape_cast %53 : vector<17xf32> to vector<17x1xf32>
    %55 = vector.broadcast %54 : vector<17x1xf32> to vector<17x17xf32>
    %56 = arith.subf %52, %55 : vector<17x17xf32>
    %57 = math.exp %56 : vector<17x17xf32>
    %cst_33 = arith.constant dense<0.000000e+00> : vector<17xf32>
    %58 = vector.multi_reduction <add>, %57, %cst_33 [1] : vector<17x17xf32> to vector<17xf32>
    %59 = vector.shape_cast %58 : vector<17xf32> to vector<17x1xf32>
    %60 = tpu.reciprocal %59 {approx = true} : vector<17x1xf32> -> vector<17x1xf32>
    %61 = vector.broadcast %60 : vector<17x1xf32> to vector<17x17xf32>
    %62 = arith.mulf %57, %61 : vector<17x17xf32>
    %63 = arith.truncf %62 : vector<17x17xf32> to vector<17x17xbf16>
    %cst_34 = arith.constant dense<0.000000e+00> : vector<17x8xf32>
    %64 = tpu.matmul %63, %51, %cst_34 {dimension_numbers = #tpu.dot_dimension_numbers<[1], [0], [0], [1], [0, 0, 1, 1], [], []>} : vector<17x17xbf16>, vector<17x8xbf16>, vector<17x8xf32> -> vector<17x8xf32>
    %65 = arith.truncf %64 : vector<17x8xf32> to vector<17x8xbf16>
    %c0_35 = arith.constant 0 : index
    %c0_36 = arith.constant 0 : index
    %c16_37 = arith.constant 16 : index
    %66 = vector.load %arg2[%c0_35, %c0_36, %c16_37] : memref<1x17x32xbf16, #tpu.memory_space<vmem>>, vector<1x17x8xbf16>
    %67 = vector.shape_cast %66 : vector<1x17x8xbf16> to vector<17x8xbf16>
    %68 = vector.shape_cast %65 : vector<17x8xbf16> to vector<1x17x8xbf16>
    tpu.vector_store %arg2[%c0_35, %c0_36, %c16_37], %68 {strides = array<i32>} : memref<1x17x32xbf16, #tpu.memory_space<vmem>>, vector<1x17x8xbf16>,
    %c0_38 = arith.constant 0 : index
    %c0_39 = arith.constant 0 : index
    %c24 = arith.constant 24 : index
    %69 = vector.load %arg1[%c0_38, %c0_39, %c24] : memref<1x17x96xbf16, #tpu.memory_space<vmem>>, vector<1x17x8xbf16>
    %70 = vector.shape_cast %69 : vector<1x17x8xbf16> to vector<17x8xbf16>
    %c0_40 = arith.constant 0 : index
    %c0_41 = arith.constant 0 : index
    %c56 = arith.constant 56 : index
    %71 = vector.load %arg1[%c0_40, %c0_41, %c56] : memref<1x17x96xbf16, #tpu.memory_space<vmem>>, vector<1x17x8xbf16>
    %72 = vector.shape_cast %71 : vector<1x17x8xbf16> to vector<17x8xbf16>
    %c0_42 = arith.constant 0 : index
    %c0_43 = arith.constant 0 : index
    %c88 = arith.constant 88 : index
    %73 = vector.load %arg1[%c0_42, %c0_43, %c88] : memref<1x17x96xbf16, #tpu.memory_space<vmem>>, vector<1x17x8xbf16>
    %74 = vector.shape_cast %73 : vector<1x17x8xbf16> to vector<17x8xbf16>
    %cst_44 = arith.constant dense<0.000000e+00> : vector<17x17xf32>
    %75 = tpu.matmul %70, %72, %cst_44 {dimension_numbers = #tpu.dot_dimension_numbers<[1], [1], [0], [0], [0, 0, 1, 0], [], []>} : vector<17x8xbf16>, vector<17x8xbf16>, vector<17x17xf32> -> vector<17x17xf32>
    %cst_45 = arith.constant dense<0xFF800000> : vector<17xf32>
    %76 = vector.multi_reduction <maximumf>, %75, %cst_45 [1] : vector<17x17xf32> to vector<17xf32>
    %77 = vector.shape_cast %76 : vector<17xf32> to vector<17x1xf32>
    %78 = vector.broadcast %77 : vector<17x1xf32> to vector<17x17xf32>
    %79 = arith.subf %75, %78 : vector<17x17xf32>
    %80 = math.exp %79 : vector<17x17xf32>
    %cst_46 = arith.constant dense<0.000000e+00> : vector<17xf32>
    %81 = vector.multi_reduction <add>, %80, %cst_46 [1] : vector<17x17xf32> to vector<17xf32>
    %82 = vector.shape_cast %81 : vector<17xf32> to vector<17x1xf32>
    %83 = tpu.reciprocal %82 {approx = true} : vector<17x1xf32> -> vector<17x1xf32>
    %84 = vector.broadcast %83 : vector<17x1xf32> to vector<17x17xf32>
    %85 = arith.mulf %80, %84 : vector<17x17xf32>
    %86 = arith.truncf %85 : vector<17x17xf32> to vector<17x17xbf16>
    %cst_47 = arith.constant dense<0.000000e+00> : vector<17x8xf32>
    %87 = tpu.matmul %86, %74, %cst_47 {dimension_numbers = #tpu.dot_dimension_numbers<[1], [0], [0], [1], [0, 0, 1, 1], [], []>} : vector<17x17xbf16>, vector<17x8xbf16>, vector<17x8xf32> -> vector<17x8xf32>
    %88 = arith.truncf %87 : vector<17x8xf32> to vector<17x8xbf16>
    %c0_48 = arith.constant 0 : index
    %c0_49 = arith.constant 0 : index
    %c24_50 = arith.constant 24 : index
    %89 = vector.load %arg2[%c0_48, %c0_49, %c24_50] : memref<1x17x32xbf16, #tpu.memory_space<vmem>>, vector<1x17x8xbf16>
    %90 = vector.shape_cast %89 : vector<1x17x8xbf16> to vector<17x8xbf16>
    %91 = vector.shape_cast %88 : vector<17x8xbf16> to vector<1x17x8xbf16>
    tpu.vector_store %arg2[%c0_48, %c0_49, %c24_50], %91 {strides = array<i32>} : memref<1x17x32xbf16, #tpu.memory_space<vmem>>, vector<1x17x8xbf16>,
    return
  }
  func.func @transform_0(%arg0: i32) -> (i32, i32, i32) {
    %c0_i32 = arith.constant 0 : i32
    %c0_i32_0 = arith.constant 0 : i32
    %c0_i32_1 = arith.constant 0 : i32
    return %arg0, %c0_i32, %c0_i32_0 : i32, i32, i32
  }
  func.func @transform_1(%arg0: i32) -> (i32, i32, i32) {
    %c0_i32 = arith.constant 0 : i32
    %c0_i32_0 = arith.constant 0 : i32
    %c0_i32_1 = arith.constant 0 : i32
    return %arg0, %c0_i32, %c0_i32_0 : i32, i32, i32
  }
}

module attributes {stable_mosaic.version = 11 : i64} {
  func.func @_linear_residual_kernel(%arg0: i32, %arg1: memref<34x32xbf16, #tpu.memory_space<vmem>>, %arg2: memref<32x32xbf16, #tpu.memory_space<vmem>>, %arg3: memref<1x32xf32, #tpu.memory_space<vmem>>, %arg4: memref<34x32xbf16, #tpu.memory_space<vmem>>, %arg5: memref<34x32xbf16, #tpu.memory_space<vmem>>) attributes {dimension_semantics = [#tpu.dimension_semantics<parallel>], iteration_bounds = array<i64: 1>, scalar_prefetch = 0 : i64, scratch_operands = 0 : i64, tpu.core_type = #tpu.core_type<tc>, window_params = [{transform_indices = @transform_0, window_bounds = array<i64: 34, 32>}, {pipeline_mode = #tpu.pipeline_mode<synchronous>, transform_indices = @transform_1, window_bounds = array<i64: 32, 32>}, {pipeline_mode = #tpu.pipeline_mode<synchronous>, transform_indices = @transform_2, window_bounds = array<i64: 1, 32>}, {transform_indices = @transform_3, window_bounds = array<i64: 34, 32>}, {transform_indices = @transform_4, window_bounds = array<i64: 34, 32>}]} {
    %c0 = arith.constant 0 : index
    %c0_0 = arith.constant 0 : index
    %0 = vector.load %arg1[%c0, %c0_0] : memref<34x32xbf16, #tpu.memory_space<vmem>>, vector<34x32xbf16>
    %c0_1 = arith.constant 0 : index
    %c0_2 = arith.constant 0 : index
    %1 = vector.load %arg2[%c0_1, %c0_2] : memref<32x32xbf16, #tpu.memory_space<vmem>>, vector<32x32xbf16>
    %cst = arith.constant dense<0.000000e+00> : vector<34x32xf32>
    %2 = tpu.matmul %0, %1, %cst {dimension_numbers = #tpu.dot_dimension_numbers<[1], [0], [0], [1], [0, 0, 1, 1], [], []>} : vector<34x32xbf16>, vector<32x32xbf16>, vector<34x32xf32> -> vector<34x32xf32>
    %c0_3 = arith.constant 0 : index
    %c0_4 = arith.constant 0 : index
    %3 = vector.load %arg3[%c0_3, %c0_4] : memref<1x32xf32, #tpu.memory_space<vmem>>, vector<1x32xf32>
    %4 = vector.broadcast %3 : vector<1x32xf32> to vector<34x32xf32>
    %5 = arith.addf %2, %4 : vector<34x32xf32>
    %c0_5 = arith.constant 0 : index
    %c0_6 = arith.constant 0 : index
    %6 = vector.load %arg4[%c0_5, %c0_6] : memref<34x32xbf16, #tpu.memory_space<vmem>>, vector<34x32xbf16>
    %7 = arith.extf %6 : vector<34x32xbf16> to vector<34x32xf32>
    %8 = arith.addf %5, %7 : vector<34x32xf32>
    %9 = arith.truncf %8 : vector<34x32xf32> to vector<34x32xbf16>
    %c0_7 = arith.constant 0 : index
    %c0_8 = arith.constant 0 : index
    %10 = vector.load %arg5[%c0_7, %c0_8] : memref<34x32xbf16, #tpu.memory_space<vmem>>, vector<34x32xbf16>
    tpu.vector_store %arg5[%c0_7, %c0_8], %9 {strides = array<i32>} : memref<34x32xbf16, #tpu.memory_space<vmem>>, vector<34x32xbf16>,
    return
  }
  func.func @transform_0(%arg0: i32) -> (i32, i32) {
    %c0_i32 = arith.constant 0 : i32
    %c0_i32_0 = arith.constant 0 : i32
    return %arg0, %c0_i32 : i32, i32
  }
  func.func @transform_1(%arg0: i32) -> (i32, i32) {
    %c0_i32 = arith.constant 0 : i32
    %c0_i32_0 = arith.constant 0 : i32
    %c0_i32_1 = arith.constant 0 : i32
    return %c0_i32, %c0_i32_0 : i32, i32
  }
  func.func @transform_2(%arg0: i32) -> (i32, i32) {
    %c0_i32 = arith.constant 0 : i32
    %c0_i32_0 = arith.constant 0 : i32
    %c0_i32_1 = arith.constant 0 : i32
    return %c0_i32, %c0_i32_0 : i32, i32
  }
  func.func @transform_3(%arg0: i32) -> (i32, i32) {
    %c0_i32 = arith.constant 0 : i32
    %c0_i32_0 = arith.constant 0 : i32
    return %arg0, %c0_i32 : i32, i32
  }
  func.func @transform_4(%arg0: i32) -> (i32, i32) {
    %c0_i32 = arith.constant 0 : i32
    %c0_i32_0 = arith.constant 0 : i32
    return %arg0, %c0_i32 : i32, i32
  }
}

module attributes {stable_mosaic.version = 11 : i64} {
  func.func @_layernorm_kernel(%arg0: i32, %arg1: memref<2x32xbf16, #tpu.memory_space<vmem>>, %arg2: memref<1x32xf32, #tpu.memory_space<vmem>>, %arg3: memref<1x32xf32, #tpu.memory_space<vmem>>, %arg4: memref<2x32xf32, #tpu.memory_space<vmem>>) attributes {dimension_semantics = [#tpu.dimension_semantics<parallel>], iteration_bounds = array<i64: 1>, scalar_prefetch = 0 : i64, scratch_operands = 0 : i64, tpu.core_type = #tpu.core_type<tc>, window_params = [{transform_indices = @transform_0, window_bounds = array<i64: 2, 32>}, {pipeline_mode = #tpu.pipeline_mode<synchronous>, transform_indices = @transform_1, window_bounds = array<i64: 1, 32>}, {pipeline_mode = #tpu.pipeline_mode<synchronous>, transform_indices = @transform_2, window_bounds = array<i64: 1, 32>}, {transform_indices = @transform_3, window_bounds = array<i64: 2, 32>}]} {
    %c0 = arith.constant 0 : index
    %c0_0 = arith.constant 0 : index
    %0 = vector.load %arg1[%c0, %c0_0] : memref<2x32xbf16, #tpu.memory_space<vmem>>, vector<2x32xbf16>
    %1 = arith.extf %0 : vector<2x32xbf16> to vector<2x32xf32>
    %cst = arith.constant dense<0.000000e+00> : vector<2xf32>
    %2 = vector.multi_reduction <add>, %1, %cst [1] : vector<2x32xf32> to vector<2xf32>
    %3 = vector.shape_cast %2 : vector<2xf32> to vector<2x1xf32>
    %cst_1 = arith.constant 3.200000e+01 : f32
    %4 = vector.broadcast %cst_1 : f32 to vector<2x1xf32>
    %5 = arith.divf %3, %4 : vector<2x1xf32>
    %6 = vector.broadcast %5 : vector<2x1xf32> to vector<2x32xf32>
    %7 = arith.subf %1, %6 : vector<2x32xf32>
    %8 = arith.mulf %7, %7 : vector<2x32xf32>
    %cst_2 = arith.constant dense<0.000000e+00> : vector<2xf32>
    %9 = vector.multi_reduction <add>, %8, %cst_2 [1] : vector<2x32xf32> to vector<2xf32>
    %10 = vector.shape_cast %9 : vector<2xf32> to vector<2x1xf32>
    %cst_3 = arith.constant 3.200000e+01 : f32
    %11 = vector.broadcast %cst_3 : f32 to vector<2x1xf32>
    %12 = arith.divf %10, %11 : vector<2x1xf32>
    %13 = vector.broadcast %5 : vector<2x1xf32> to vector<2x32xf32>
    %14 = arith.subf %1, %13 : vector<2x32xf32>
    %cst_4 = arith.constant 9.99999974E-6 : f32
    %15 = vector.broadcast %cst_4 : f32 to vector<2x1xf32>
    %16 = arith.addf %12, %15 : vector<2x1xf32>
    %17 = math.rsqrt %16 : vector<2x1xf32>
    %18 = vector.broadcast %17 : vector<2x1xf32> to vector<2x32xf32>
    %19 = arith.mulf %14, %18 : vector<2x32xf32>
    %c0_5 = arith.constant 0 : index
    %c0_6 = arith.constant 0 : index
    %20 = vector.load %arg2[%c0_5, %c0_6] : memref<1x32xf32, #tpu.memory_space<vmem>>, vector<1x32xf32>
    %21 = vector.broadcast %20 : vector<1x32xf32> to vector<2x32xf32>
    %22 = arith.mulf %19, %21 : vector<2x32xf32>
    %c0_7 = arith.constant 0 : index
    %c0_8 = arith.constant 0 : index
    %23 = vector.load %arg3[%c0_7, %c0_8] : memref<1x32xf32, #tpu.memory_space<vmem>>, vector<1x32xf32>
    %24 = vector.broadcast %23 : vector<1x32xf32> to vector<2x32xf32>
    %25 = arith.addf %22, %24 : vector<2x32xf32>
    %c0_9 = arith.constant 0 : index
    %c0_10 = arith.constant 0 : index
    %26 = vector.load %arg4[%c0_9, %c0_10] : memref<2x32xf32, #tpu.memory_space<vmem>>, vector<2x32xf32>
    tpu.vector_store %arg4[%c0_9, %c0_10], %25 {strides = array<i32>} : memref<2x32xf32, #tpu.memory_space<vmem>>, vector<2x32xf32>,
    return
  }
  func.func @transform_0(%arg0: i32) -> (i32, i32) {
    %c0_i32 = arith.constant 0 : i32
    %c0_i32_0 = arith.constant 0 : i32
    return %arg0, %c0_i32 : i32, i32
  }
  func.func @transform_1(%arg0: i32) -> (i32, i32) {
    %c0_i32 = arith.constant 0 : i32
    %c0_i32_0 = arith.constant 0 : i32
    %c0_i32_1 = arith.constant 0 : i32
    return %c0_i32, %c0_i32_0 : i32, i32
  }
  func.func @transform_2(%arg0: i32) -> (i32, i32) {
    %c0_i32 = arith.constant 0 : i32
    %c0_i32_0 = arith.constant 0 : i32
    %c0_i32_1 = arith.constant 0 : i32
    return %c0_i32, %c0_i32_0 : i32, i32
  }
  func.func @transform_3(%arg0: i32) -> (i32, i32) {
    %c0_i32 = arith.constant 0 : i32
    %c0_i32_0 = arith.constant 0 : i32
    return %arg0, %c0_i32 : i32, i32
  }
}

module attributes {stable_mosaic.version = 11 : i64} {
  func.func @_ln_mlp_residual_kernel(%arg0: i32, %arg1: i32, %arg2: memref<34x32xbf16, #tpu.memory_space<vmem>>, %arg3: memref<1x32xf32, #tpu.memory_space<vmem>>, %arg4: memref<1x32xf32, #tpu.memory_space<vmem>>, %arg5: memref<32x128xbf16, #tpu.memory_space<vmem>>, %arg6: memref<1x128xf32, #tpu.memory_space<vmem>>, %arg7: memref<128x32xbf16, #tpu.memory_space<vmem>>, %arg8: memref<1x32xf32, #tpu.memory_space<vmem>>, %arg9: memref<34x32xbf16, #tpu.memory_space<vmem>>, %arg10: memref<34x32xbf16, #tpu.memory_space<vmem>>, %arg11: memref<34x32xf32, #tpu.memory_space<vmem>>) attributes {dimension_semantics = [#tpu.dimension_semantics<parallel>, #tpu.dimension_semantics<arbitrary>], iteration_bounds = array<i64: 1, 1>, scalar_prefetch = 0 : i64, scratch_operands = 2 : i64, tpu.core_type = #tpu.core_type<tc>, window_params = [{transform_indices = @transform_0, window_bounds = array<i64: 34, 32>}, {pipeline_mode = #tpu.pipeline_mode<synchronous>, transform_indices = @transform_1, window_bounds = array<i64: 1, 32>}, {pipeline_mode = #tpu.pipeline_mode<synchronous>, transform_indices = @transform_2, window_bounds = array<i64: 1, 32>}, {transform_indices = @transform_3, window_bounds = array<i64: 32, 128>}, {transform_indices = @transform_4, window_bounds = array<i64: 1, 128>}, {transform_indices = @transform_5, window_bounds = array<i64: 128, 32>}, {pipeline_mode = #tpu.pipeline_mode<synchronous>, transform_indices = @transform_6, window_bounds = array<i64: 1, 32>}, {transform_indices = @transform_7, window_bounds = array<i64: 34, 32>}]} {
    %c0_i32 = arith.constant 0 : i32
    %0 = arith.cmpi eq, %arg1, %c0_i32 : i32
    %1 = arith.extui %0 : i1 to i32
    %c0_i32_0 = arith.constant 0 : i32
    %2 = arith.cmpi ne, %1, %c0_i32_0 : i32
    scf.if %2 {
      %c0_17 = arith.constant 0 : index
      %c0_18 = arith.constant 0 : index
      %26 = vector.load %arg2[%c0_17, %c0_18] : memref<34x32xbf16, #tpu.memory_space<vmem>>, vector<34x32xbf16>
      %27 = arith.extf %26 : vector<34x32xbf16> to vector<34x32xf32>
      %cst_19 = arith.constant dense<0.000000e+00> : vector<34xf32>
      %28 = vector.multi_reduction <add>, %27, %cst_19 [1] : vector<34x32xf32> to vector<34xf32>
      %29 = vector.shape_cast %28 : vector<34xf32> to vector<34x1xf32>
      %cst_20 = arith.constant 3.200000e+01 : f32
      %30 = vector.broadcast %cst_20 : f32 to vector<34x1xf32>
      %31 = arith.divf %29, %30 : vector<34x1xf32>
      %32 = vector.broadcast %31 : vector<34x1xf32> to vector<34x32xf32>
      %33 = arith.subf %27, %32 : vector<34x32xf32>
      %34 = arith.mulf %33, %33 : vector<34x32xf32>
      %cst_21 = arith.constant dense<0.000000e+00> : vector<34xf32>
      %35 = vector.multi_reduction <add>, %34, %cst_21 [1] : vector<34x32xf32> to vector<34xf32>
      %36 = vector.shape_cast %35 : vector<34xf32> to vector<34x1xf32>
      %cst_22 = arith.constant 3.200000e+01 : f32
      %37 = vector.broadcast %cst_22 : f32 to vector<34x1xf32>
      %38 = arith.divf %36, %37 : vector<34x1xf32>
      %39 = vector.broadcast %31 : vector<34x1xf32> to vector<34x32xf32>
      %40 = arith.subf %27, %39 : vector<34x32xf32>
      %cst_23 = arith.constant 9.99999974E-6 : f32
      %41 = vector.broadcast %cst_23 : f32 to vector<34x1xf32>
      %42 = arith.addf %38, %41 : vector<34x1xf32>
      %43 = math.rsqrt %42 : vector<34x1xf32>
      %44 = vector.broadcast %43 : vector<34x1xf32> to vector<34x32xf32>
      %45 = arith.mulf %40, %44 : vector<34x32xf32>
      %c0_24 = arith.constant 0 : index
      %c0_25 = arith.constant 0 : index
      %46 = vector.load %arg3[%c0_24, %c0_25] : memref<1x32xf32, #tpu.memory_space<vmem>>, vector<1x32xf32>
      %47 = vector.broadcast %46 : vector<1x32xf32> to vector<34x32xf32>
      %48 = arith.mulf %45, %47 : vector<34x32xf32>
      %c0_26 = arith.constant 0 : index
      %c0_27 = arith.constant 0 : index
      %49 = vector.load %arg4[%c0_26, %c0_27] : memref<1x32xf32, #tpu.memory_space<vmem>>, vector<1x32xf32>
      %50 = vector.broadcast %49 : vector<1x32xf32> to vector<34x32xf32>
      %51 = arith.addf %48, %50 : vector<34x32xf32>
      %52 = arith.truncf %51 : vector<34x32xf32> to vector<34x32xbf16>
      %c0_28 = arith.constant 0 : index
      %c0_29 = arith.constant 0 : index
      %53 = vector.load %arg10[%c0_28, %c0_29] : memref<34x32xbf16, #tpu.memory_space<vmem>>, vector<34x32xbf16>
      tpu.vector_store %arg10[%c0_28, %c0_29], %52 {strides = array<i32>} : memref<34x32xbf16, #tpu.memory_space<vmem>>, vector<34x32xbf16>,
      %cst_30 = arith.constant 0.000000e+00 : f32
      %54 = vector.broadcast %cst_30 : f32 to vector<34x32xf32>
      %c0_31 = arith.constant 0 : index
      %c0_32 = arith.constant 0 : index
      %55 = vector.load %arg11[%c0_31, %c0_32] : memref<34x32xf32, #tpu.memory_space<vmem>>, vector<34x32xf32>
      tpu.vector_store %arg11[%c0_31, %c0_32], %54 {strides = array<i32>} : memref<34x32xf32, #tpu.memory_space<vmem>>, vector<34x32xf32>,
    } else {
    }
    %c0 = arith.constant 0 : index
    %c0_1 = arith.constant 0 : index
    %3 = vector.load %arg10[%c0, %c0_1] : memref<34x32xbf16, #tpu.memory_space<vmem>>, vector<34x32xbf16>
    %c0_2 = arith.constant 0 : index
    %c0_3 = arith.constant 0 : index
    %4 = vector.load %arg5[%c0_2, %c0_3] : memref<32x128xbf16, #tpu.memory_space<vmem>>, vector<32x128xbf16>
    %cst = arith.constant dense<0.000000e+00> : vector<34x128xf32>
    %5 = tpu.matmul %3, %4, %cst {dimension_numbers = #tpu.dot_dimension_numbers<[1], [0], [0], [1], [0, 0, 1, 1], [], []>} : vector<34x32xbf16>, vector<32x128xbf16>, vector<34x128xf32> -> vector<34x128xf32>
    %c0_4 = arith.constant 0 : index
    %c0_5 = arith.constant 0 : index
    %6 = vector.load %arg6[%c0_4, %c0_5] : memref<1x128xf32, #tpu.memory_space<vmem>>, vector<1x128xf32>
    %7 = vector.broadcast %6 : vector<1x128xf32> to vector<34x128xf32>
    %8 = arith.addf %5, %7 : vector<34x128xf32>
    %cst_6 = arith.constant 1.702000e+00 : f32
    %9 = vector.broadcast %cst_6 : f32 to vector<34x128xf32>
    %10 = arith.mulf %9, %8 : vector<34x128xf32>
    %11 = arith.negf %10 : vector<34x128xf32>
    %12 = math.exp %11 : vector<34x128xf32>
    %cst_7 = arith.constant 1.000000e+00 : f32
    %13 = vector.broadcast %cst_7 : f32 to vector<34x128xf32>
    %14 = arith.addf %13, %12 : vector<34x128xf32>
    %15 = arith.divf %13, %14 : vector<34x128xf32>
    %16 = arith.mulf %8, %15 : vector<34x128xf32>
    %c0_8 = arith.constant 0 : index
    %c0_9 = arith.constant 0 : index
    %17 = vector.load %arg11[%c0_8, %c0_9] : memref<34x32xf32, #tpu.memory_space<vmem>>, vector<34x32xf32>
    %18 = arith.truncf %16 : vector<34x128xf32> to vector<34x128xbf16>
    %c0_10 = arith.constant 0 : index
    %c0_11 = arith.constant 0 : index
    %19 = vector.load %arg7[%c0_10, %c0_11] : memref<128x32xbf16, #tpu.memory_space<vmem>>, vector<128x32xbf16>
    %cst_12 = arith.constant dense<0.000000e+00> : vector<34x32xf32>
    %20 = tpu.matmul %18, %19, %cst_12 {dimension_numbers = #tpu.dot_dimension_numbers<[1], [0], [0], [1], [0, 0, 1, 1], [], []>} : vector<34x128xbf16>, vector<128x32xbf16>, vector<34x32xf32> -> vector<34x32xf32>
    %21 = arith.addf %17, %20 : vector<34x32xf32>
    %c0_13 = arith.constant 0 : index
    %c0_14 = arith.constant 0 : index
    %22 = vector.load %arg11[%c0_13, %c0_14] : memref<34x32xf32, #tpu.memory_space<vmem>>, vector<34x32xf32>
    tpu.vector_store %arg11[%c0_13, %c0_14], %21 {strides = array<i32>} : memref<34x32xf32, #tpu.memory_space<vmem>>, vector<34x32xf32>,
    %c0_i32_15 = arith.constant 0 : i32
    %23 = arith.cmpi eq, %arg1, %c0_i32_15 : i32
    %24 = arith.extui %23 : i1 to i32
    %c0_i32_16 = arith.constant 0 : i32
    %25 = arith.cmpi ne, %24, %c0_i32_16 : i32
    scf.if %25 {
      %c0_17 = arith.constant 0 : index
      %c0_18 = arith.constant 0 : index
      %26 = vector.load %arg11[%c0_17, %c0_18] : memref<34x32xf32, #tpu.memory_space<vmem>>, vector<34x32xf32>
      %c0_19 = arith.constant 0 : index
      %c0_20 = arith.constant 0 : index
      %27 = vector.load %arg8[%c0_19, %c0_20] : memref<1x32xf32, #tpu.memory_space<vmem>>, vector<1x32xf32>
      %28 = vector.broadcast %27 : vector<1x32xf32> to vector<34x32xf32>
      %29 = arith.addf %26, %28 : vector<34x32xf32>
      %c0_21 = arith.constant 0 : index
      %c0_22 = arith.constant 0 : index
      %30 = vector.load %arg2[%c0_21, %c0_22] : memref<34x32xbf16, #tpu.memory_space<vmem>>, vector<34x32xbf16>
      %31 = arith.extf %30 : vector<34x32xbf16> to vector<34x32xf32>
      %32 = arith.addf %29, %31 : vector<34x32xf32>
      %33 = arith.truncf %32 : vector<34x32xf32> to vector<34x32xbf16>
      %c0_23 = arith.constant 0 : index
      %c0_24 = arith.constant 0 : index
      %34 = vector.load %arg9[%c0_23, %c0_24] : memref<34x32xbf16, #tpu.memory_space<vmem>>, vector<34x32xbf16>
      tpu.vector_store %arg9[%c0_23, %c0_24], %33 {strides = array<i32>} : memref<34x32xbf16, #tpu.memory_space<vmem>>, vector<34x32xbf16>,
    } else {
    }
    return
  }
  func.func @transform_0(%arg0: i32, %arg1: i32) -> (i32, i32) {
    %c0_i32 = arith.constant 0 : i32
    %c0_i32_0 = arith.constant 0 : i32
    return %arg0, %c0_i32 : i32, i32
  }
  func.func @transform_1(%arg0: i32, %arg1: i32) -> (i32, i32) {
    %c0_i32 = arith.constant 0 : i32
    %c0_i32_0 = arith.constant 0 : i32
    %c0_i32_1 = arith.constant 0 : i32
    return %c0_i32, %c0_i32_0 : i32, i32
  }
  func.func @transform_2(%arg0: i32, %arg1: i32) -> (i32, i32) {
    %c0_i32 = arith.constant 0 : i32
    %c0_i32_0 = arith.constant 0 : i32
    %c0_i32_1 = arith.constant 0 : i32
    return %c0_i32, %c0_i32_0 : i32, i32
  }
  func.func @transform_3(%arg0: i32, %arg1: i32) -> (i32, i32) {
    %c0_i32 = arith.constant 0 : i32
    %c0_i32_0 = arith.constant 0 : i32
    return %c0_i32, %arg1 : i32, i32
  }
  func.func @transform_4(%arg0: i32, %arg1: i32) -> (i32, i32) {
    %c0_i32 = arith.constant 0 : i32
    %c0_i32_0 = arith.constant 0 : i32
    return %c0_i32, %arg1 : i32, i32
  }
  func.func @transform_5(%arg0: i32, %arg1: i32) -> (i32, i32) {
    %c0_i32 = arith.constant 0 : i32
    %c0_i32_0 = arith.constant 0 : i32
    return %arg1, %c0_i32 : i32, i32
  }
  func.func @transform_6(%arg0: i32, %arg1: i32) -> (i32, i32) {
    %c0_i32 = arith.constant 0 : i32
    %c0_i32_0 = arith.constant 0 : i32
    %c0_i32_1 = arith.constant 0 : i32
    return %c0_i32, %c0_i32_0 : i32, i32
  }
  func.func @transform_7(%arg0: i32, %arg1: i32) -> (i32, i32) {
    %c0_i32 = arith.constant 0 : i32
    %c0_i32_0 = arith.constant 0 : i32
    return %arg0, %c0_i32 : i32, i32
  }
}

module attributes {stable_mosaic.version = 11 : i64} {
  func.func @_linear_softmax_kernel(%arg0: i32, %arg1: memref<2x32xf32, #tpu.memory_space<vmem>>, %arg2: memref<32x128xbf16, #tpu.memory_space<vmem>>, %arg3: memref<1x128xf32, #tpu.memory_space<vmem>>, %arg4: memref<2x128xf32, #tpu.memory_space<vmem>>) attributes {dimension_semantics = [#tpu.dimension_semantics<parallel>], iteration_bounds = array<i64: 1>, scalar_prefetch = 0 : i64, scratch_operands = 0 : i64, tpu.core_type = #tpu.core_type<tc>, window_params = [{transform_indices = @transform_0, window_bounds = array<i64: 2, 32>}, {pipeline_mode = #tpu.pipeline_mode<synchronous>, transform_indices = @transform_1, window_bounds = array<i64: 32, 128>}, {pipeline_mode = #tpu.pipeline_mode<synchronous>, transform_indices = @transform_2, window_bounds = array<i64: 1, 128>}, {transform_indices = @transform_3, window_bounds = array<i64: 2, 128>}]} {
    %c0 = arith.constant 0 : index
    %c0_0 = arith.constant 0 : index
    %0 = vector.load %arg1[%c0, %c0_0] : memref<2x32xf32, #tpu.memory_space<vmem>>, vector<2x32xf32>
    %1 = arith.truncf %0 : vector<2x32xf32> to vector<2x32xbf16>
    %c0_1 = arith.constant 0 : index
    %c0_2 = arith.constant 0 : index
    %2 = vector.load %arg2[%c0_1, %c0_2] : memref<32x128xbf16, #tpu.memory_space<vmem>>, vector<32x128xbf16>
    %cst = arith.constant dense<0.000000e+00> : vector<2x128xf32>
    %3 = tpu.matmul %1, %2, %cst {dimension_numbers = #tpu.dot_dimension_numbers<[1], [0], [0], [1], [0, 0, 1, 1], [], []>} : vector<2x32xbf16>, vector<32x128xbf16>, vector<2x128xf32> -> vector<2x128xf32>
    %c0_3 = arith.constant 0 : index
    %c0_4 = arith.constant 0 : index
    %4 = vector.load %arg3[%c0_3, %c0_4] : memref<1x128xf32, #tpu.memory_space<vmem>>, vector<1x128xf32>
    %5 = vector.broadcast %4 : vector<1x128xf32> to vector<2x128xf32>
    %6 = arith.addf %3, %5 : vector<2x128xf32>
    %cst_5 = arith.constant dense<0xFF800000> : vector<2xf32>
    %7 = vector.multi_reduction <maximumf>, %6, %cst_5 [1] : vector<2x128xf32> to vector<2xf32>
    %8 = vector.shape_cast %7 : vector<2xf32> to vector<2x1xf32>
    %9 = vector.broadcast %8 : vector<2x1xf32> to vector<2x128xf32>
    %10 = arith.subf %6, %9 : vector<2x128xf32>
    %11 = math.exp %10 : vector<2x128xf32>
    %cst_6 = arith.constant dense<0.000000e+00> : vector<2xf32>
    %12 = vector.multi_reduction <add>, %11, %cst_6 [1] : vector<2x128xf32> to vector<2xf32>
    %13 = vector.shape_cast %12 : vector<2xf32> to vector<2x1xf32>
    %14 = vector.broadcast %13 : vector<2x1xf32> to vector<2x128xf32>
    %15 = arith.divf %11, %14 : vector<2x128xf32>
    %c0_7 = arith.constant 0 : index
    %c0_8 = arith.constant 0 : index
    %16 = vector.load %arg4[%c0_7, %c0_8] : memref<2x128xf32, #tpu.memory_space<vmem>>, vector<2x128xf32>
    tpu.vector_store %arg4[%c0_7, %c0_8], %15 {strides = array<i32>} : memref<2x128xf32, #tpu.memory_space<vmem>>, vector<2x128xf32>,
    return
  }
  func.func @transform_0(%arg0: i32) -> (i32, i32) {
    %c0_i32 = arith.constant 0 : i32
    %c0_i32_0 = arith.constant 0 : i32
    return %arg0, %c0_i32 : i32, i32
  }
  func.func @transform_1(%arg0: i32) -> (i32, i32) {
    %c0_i32 = arith.constant 0 : i32
    %c0_i32_0 = arith.constant 0 : i32
    %c0_i32_1 = arith.constant 0 : i32
    return %c0_i32, %c0_i32_0 : i32, i32
  }
  func.func @transform_2(%arg0: i32) -> (i32, i32) {
    %c0_i32 = arith.constant 0 : i32
    %c0_i32_0 = arith.constant 0 : i32
    %c0_i32_1 = arith.constant 0 : i32
    return %c0_i32, %c0_i32_0 : i32, i32
  }
  func.func @transform_3(%arg0: i32) -> (i32, i32) {
    %c0_i32 = arith.constant 0 : i32
    %c0_i32_0 = arith.constant 0 : i32
    return %arg0, %c0_i32 : i32, i32
  }
}

module attributes {stable_mosaic.version = 11 : i64} {
  func.func @_linear_kernel(%arg0: i32, %arg1: memref<2x32xf32, #tpu.memory_space<vmem>>, %arg2: memref<32x32xbf16, #tpu.memory_space<vmem>>, %arg3: memref<1x32xf32, #tpu.memory_space<vmem>>, %arg4: memref<2x32xf32, #tpu.memory_space<vmem>>) attributes {dimension_semantics = [#tpu.dimension_semantics<parallel>], iteration_bounds = array<i64: 1>, scalar_prefetch = 0 : i64, scratch_operands = 0 : i64, tpu.core_type = #tpu.core_type<tc>, window_params = [{transform_indices = @transform_0, window_bounds = array<i64: 2, 32>}, {pipeline_mode = #tpu.pipeline_mode<synchronous>, transform_indices = @transform_1, window_bounds = array<i64: 32, 32>}, {pipeline_mode = #tpu.pipeline_mode<synchronous>, transform_indices = @transform_2, window_bounds = array<i64: 1, 32>}, {transform_indices = @transform_3, window_bounds = array<i64: 2, 32>}]} {
    %c0 = arith.constant 0 : index
    %c0_0 = arith.constant 0 : index
    %0 = vector.load %arg1[%c0, %c0_0] : memref<2x32xf32, #tpu.memory_space<vmem>>, vector<2x32xf32>
    %1 = arith.truncf %0 : vector<2x32xf32> to vector<2x32xbf16>
    %c0_1 = arith.constant 0 : index
    %c0_2 = arith.constant 0 : index
    %2 = vector.load %arg2[%c0_1, %c0_2] : memref<32x32xbf16, #tpu.memory_space<vmem>>, vector<32x32xbf16>
    %cst = arith.constant dense<0.000000e+00> : vector<2x32xf32>
    %3 = tpu.matmul %1, %2, %cst {dimension_numbers = #tpu.dot_dimension_numbers<[1], [0], [0], [1], [0, 0, 1, 1], [], []>} : vector<2x32xbf16>, vector<32x32xbf16>, vector<2x32xf32> -> vector<2x32xf32>
    %c0_3 = arith.constant 0 : index
    %c0_4 = arith.constant 0 : index
    %4 = vector.load %arg3[%c0_3, %c0_4] : memref<1x32xf32, #tpu.memory_space<vmem>>, vector<1x32xf32>
    %5 = vector.broadcast %4 : vector<1x32xf32> to vector<2x32xf32>
    %6 = arith.addf %3, %5 : vector<2x32xf32>
    %c0_5 = arith.constant 0 : index
    %c0_6 = arith.constant 0 : index
    %7 = vector.load %arg4[%c0_5, %c0_6] : memref<2x32xf32, #tpu.memory_space<vmem>>, vector<2x32xf32>
    tpu.vector_store %arg4[%c0_5, %c0_6], %6 {strides = array<i32>} : memref<2x32xf32, #tpu.memory_space<vmem>>, vector<2x32xf32>,
    return
  }
  func.func @transform_0(%arg0: i32) -> (i32, i32) {
    %c0_i32 = arith.constant 0 : i32
    %c0_i32_0 = arith.constant 0 : i32
    return %arg0, %c0_i32 : i32, i32
  }
  func.func @transform_1(%arg0: i32) -> (i32, i32) {
    %c0_i32 = arith.constant 0 : i32
    %c0_i32_0 = arith.constant 0 : i32
    %c0_i32_1 = arith.constant 0 : i32
    return %c0_i32, %c0_i32_0 : i32, i32
  }
  func.func @transform_2(%arg0: i32) -> (i32, i32) {
    %c0_i32 = arith.constant 0 : i32
    %c0_i32_0 = arith.constant 0 : i32
    %c0_i32_1 = arith.constant 0 : i32
    return %c0_i32, %c0_i32_0 : i32, i32
  }
  func.func @transform_3(%arg0: i32) -> (i32, i32) {
    %c0_i32 = arith.constant 0 : i32
    %c0_i32_0 = arith.constant 0 : i32
    return %arg0, %c0_i32 : i32, i32
  }
}

</mosaic_0001>

<bundles_post_ra>
// kernel: vit_forward.13
= control target key start
LH: loop header
LB: loop body
LE: loop exit
PB: predicated region body
PF: predicated region fallthrough
CT: control target
= control target key end

     0   :  { %vm147_vm0 = vcmask 257024   ;;  %s273_s1 = inlined_call_operand.vmem [shape: bf16[128,32], index: 1, kind: input, shape index: {}]   ;;  %s274_s0 = inlined_call_operand.vmem [shape: f32[32,128], index: 0, kind: input, shape index: {}]   ;;  %s275_s2 = inlined_call_operand.vmem [shape: bf16[32,32], index: 2, kind: output, shape index: {}]  }
   0x1   :  { %v202_v0 = vld [vmem:[%s273_s1] sm:$0xff]   ;;  %v203_v1 = vld [vmem:[%s273_s1 + $0x8] sm:$0xff]   ;;  %v204_v2 = vld [vmem:[%s273_s1 + $0x10] sm:$0xff]  }
   0x2   :  { %182 = vmatprep.subr.bf16.mxu0 %v202_v0  ;;  %v205_v3 = vld [vmem:[%s273_s1 + $0x18] sm:$0xff]   ;;  %v12_v4 = vld [vmem:[%s274_s0] sm:$0xff]  ;;  %v13_v5 = vld [vmem:[%s274_s0 + $0x8] sm:$0xff] }
   0x3   :  { %183 = vmatpush3.bf16.msra.mxu0 %v202_v0  ;;  %v16_v6 = vpack.c.bf16 %v13_v5, %v12_v4  ;;  %v206_v7 = vld [vmem:[%s273_s1 + $0x20] sm:$0xff]   ;;  %v207_v8 = vld [vmem:[%s273_s1 + $0x28] sm:$0xff]   ;;  %v208_v9 = vld [vmem:[%s273_s1 + $0x30] sm:$0xff]  }
   0x4   :  { %184 = vmatprep.subr.bf16.mxu0 %v203_v1  ;;  %v209_v10 = vld [vmem:[%s273_s1 + $0x38] sm:$0xff]   ;;  %v14_v11 = vld [vmem:[%s274_s0 + $0x10] sm:$0xff] }
   0x5   :  { %198 = vmatprep.mubr.bf16.mxu0 %v16_v6  ;;  %v15_v12 = vld [vmem:[%s274_s0 + $0x18] sm:$0xff] }
   0x6   :  { %v17_v13 = vpack.c.bf16 %v15_v12, %v14_v11 }
   0x7   :  { %185 = vmatpush3.bf16.msra.mxu0 %v203_v1 }
   0x8   :  { %186 = vmatprep.subr.bf16.mxu0 %v204_v2 }
   0xb   :  { %187 = vmatpush3.bf16.msra.mxu0 %v204_v2 }
   0xc   :  { %188 = vmatprep.subr.bf16.mxu0 %v205_v3 }
   0xf   :  { %189 = vmatpush3.bf16.msra.mxu0 %v205_v3 }
  0x10   :  { %190 = vmatprep.subr.bf16.mxu0 %v206_v7 }
  0x13   :  { %191 = vmatpush3.bf16.msra.mxu0 %v206_v7 }
  0x14   :  { %192 = vmatprep.subr.bf16.mxu0 %v207_v8 }
  0x17   :  { %193 = vmatpush3.bf16.msra.mxu0 %v207_v8 }
  0x18   :  { %194 = vmatprep.subr.bf16.mxu0 %v208_v9 }
  0x1b   :  { %195 = vmatpush3.bf16.msra.mxu0 %v208_v9 }
  0x1c   :  { %196 = vmatprep.subr.bf16.mxu0 %v209_v10 }
  0x1f   :  { %197 = vmatpush3.bf16.msra.mxu0 %v209_v10 }
  0x22   :  { %199 = vmatmul.mubr.bf16.vlgmr.msra.gmra.mrb[0].mxu0 %v17_v13 }
  0xf5   :  { %v200_v14 = vpop.f32.mrb[0].mxu0 }
  0xf6   :  { %v170_v15 = vpack.c.bf16 %v200_v14, %v200_v14  ;;  %v116_v16 = vpop.f32.mrb[1].mxu0 }
  0xf7   :  { %v168_v17 = vpack.c.bf16 %v116_v16, %v116_v16  ;;  %v201_v18 = vpop.f32.mrb[2].mxu0 }
  0xf8   :  { %150 = vst.msk [vmem:[%s275_s2 + $0x8] sm:$0xf] %vm147_vm0, %v170_v15  ;;  %v171_v19 = vpack.c.bf16 %v201_v18, %v201_v18  ;;  %v119_v20 = vpop.f32.mrb[3].mxu0 }
  0xf9   :  { %148 = vst.msk [vmem:[%s275_s2] sm:$0xf] %vm147_vm0, %v168_v17  ;;  %v169_v21 = vpack.c.bf16 %v119_v20, %v119_v20 }
  0xfa   :  { %151 = vst.msk [vmem:[%s275_s2 + $0xc] sm:$0xf] %vm147_vm0, %v171_v19 }
  0xfb   :  { %149 = vst.msk [vmem:[%s275_s2 + $0x4] sm:$0xf] %vm147_vm0, %v169_v21 }

// kernel: vit_forward.15
= control target key start
LH: loop header
LB: loop body
LE: loop exit
PB: predicated region body
PF: predicated region fallthrough
CT: control target
= control target key end

     0   :  { %vm31_vm0 = vcmask 261120   ;;  %vm44_vm1 = vcmask 254976   ;;  %v312_v39 = vmov 0.0   ;;  %vm313_vm2 = vmmov 0   ;;  %s418_s0 = inlined_call_operand.vmem [shape: bf16[34,32], index: 0, kind: input, shape index: {}]   ;;  %s419_s3 = inlined_call_operand.vmem [shape: bf16[32,96], index: 3, kind: input, shape index: {}]   ;;  %s420_s1 = inlined_call_operand.vmem [shape: f32[1,32], index: 1, kind: input, shape index: {}]   ;;  %s421_s2 = inlined_call_operand.vmem [shape: f32[1,32], index: 2, kind: input, shape index: {}]   ;;  %s422_s4 = inlined_call_operand.vmem [shape: f32[1,96], index: 4, kind: input, shape index: {}]   ;;  %s423_s5 = inlined_call_operand.vmem [shape: bf16[34,96], index: 5, kind: output, shape index: {}]  }
   0x1   :  { %v272_v0 = vld [vmem:[%s418_s0 + $0x8] sm:$0xff]   ;;  %v265_v1 = vld [vmem:[%s418_s0] sm:$0xff]   ;;  %v25_v5 = vld [vmem:[%s418_s0 + $0x10] sm:$0x1]  ;;  %294 = vmatprep.subr.bf16.mxu1 %v312_v39  ;;  %278 = vmatprep.subr.bf16.mxu0 %v312_v39  ;;  %vm235_vm3 = vcmask 781312   ;;  %vm240_vm4 = vcmask 778240  }
   0x2   :  { %v270_v2 = vunpack.c.l.bf16 %v272_v0  ;;  %v271_v3 = vunpack.c.h.bf16 %v272_v0  ;;  %v266_v4 = vunpack.c.l.bf16 %v265_v1  ;;  %v267_v6 = vunpack.c.h.bf16 %v265_v1  ;;  %v300_v38 = vld [vmem:[%s419_s3] sm:$0xff]   ;;  %v301_v40 = vld [vmem:[%s419_s3 + $0x8] sm:$0xff]   ;;  %286 = vmatprep.mubr.msk.bf16.mxu1 %vm313_vm2, %v312_v39  ;;  %282 = vmatprep.mubr.msk.bf16.mxu0 %vm313_vm2, %v312_v39 }
   0x3   :  { %v30_v10 = vunpack.c.l.bf16 %v25_v5  ;;  %296 = vmatpush3.bf16.msra.mxu1 %v300_v38  ;;  %279 = vmatpush3.bf16.msra.mxu0 %v300_v38  ;;  %v246_v58 = vld [vmem:[%s420_s1] ss:$0 sm:$0xff] }
   0x4   :  { %v38_v7 = vsel %vm31_vm0, %v270_v2, 0.0  ;;  %v32_v8 = vsel %vm31_vm0, %v266_v4, 0.0  ;;  %v41_v9 = vsel %vm31_vm0, %v271_v3, 0.0  ;;  %v35_v11 = vsel %vm31_vm0, %v267_v6, 0.0  ;;  %295 = vmatprep.subr.bf16.mxu1 %v312_v39  ;;  %280 = vmatprep.subr.bf16.mxu0 %v312_v39  ;;  %v247_v0 = vld [vmem:[%s421_s2] ss:$0 sm:$0xff] }
   0x5   :  { %39 = vadd.xlane.f32.xlu0 %v38_v7  ;;  %33 = vadd.xlane.f32.xlu1 %v32_v8  ;;  %v45_v12 = vsel %vm44_vm1, %v30_v10, 0.0 }
   0x7   :  { %297 = vmatpush3.bf16.msra.mxu1 %v301_v40  ;;  %281 = vmatpush3.bf16.msra.mxu0 %v301_v40 }
   0x9   :  { %42 = vadd.xlane.f32.xlu0 %v41_v9  ;;  %36 = vadd.xlane.f32.xlu1 %v35_v11 }
   0xd   :  { %46 = vadd.xlane.f32.xlu0 %v45_v12 }
  0x92   :  { %v40_v13 = vpop.xlane.xlu0 %39  ;;  %v34_v14 = vpop.xlane.xlu1 %33 }
  0x93   :  { %v51_v15 = vmul.f32 0.03125, %v40_v13  ;;  %v49_v16 = vmul.f32 0.03125, %v34_v14 }
  0x95   :  { %v358_v17 = vsub.f32 %v270_v2, %v51_v15  ;;  %v360_v18 = vsub.f32 %v266_v4, %v49_v16 }
  0x96   :  { %v43_v19 = vpop.xlane.xlu0 %42  ;;  %v37_v20 = vpop.xlane.xlu1 %36 }
  0x97   :  { %v52_v21 = vmul.f32 0.03125, %v43_v19  ;;  %v61_v22 = vmul.f32 %v358_v17, %v358_v17  ;;  %v50_v23 = vmul.f32 0.03125, %v37_v20  ;;  %v59_v24 = vmul.f32 %v360_v18, %v360_v18 }
  0x99   :  { %v57_v25 = vsub.f32 %v271_v3, %v52_v21  ;;  %v70_v26 = vsel %vm31_vm0, %v61_v22, 0.0  ;;  %v367_v27 = vsub.f32 %v267_v6, %v50_v23  ;;  %v64_v31 = vsel %vm31_vm0, %v59_v24, 0.0 }
  0x9a   :  { %v47_v28 = vpop.xlane.xlu0 %46  ;;  %71 = vadd.xlane.f32.xlu1 %v70_v26 }
  0x9b   :  { %v53_v29 = vmul.f32 0.03125, %v47_v28  ;;  %v62_v30 = vmul.f32 %v57_v25, %v57_v25  ;;  %v60_v32 = vmul.f32 %v367_v27, %v367_v27 }
  0x9d   :  { %v58_v33 = vsub.f32 %v30_v10, %v53_v29  ;;  %v73_v34 = vsel %vm31_vm0, %v62_v30, 0.0  ;;  %v67_v36 = vsel %vm31_vm0, %v60_v32, 0.0 }
  0x9e   :  { %74 = vadd.xlane.f32.xlu0 %v73_v34  ;;  %65 = vadd.xlane.f32.xlu1 %v64_v31 }
  0x9f   :  { %v63_v35 = vmul.f32 %v58_v33, %v58_v33 }
  0xa1   :  { %v76_v37 = vsel %vm44_vm1, %v63_v35, 0.0 }
  0xa2   :  { %77 = vadd.xlane.f32.xlu1 %v76_v37  ;;  %68 = vadd.xlane.f32.xlu0 %v67_v36 }
 0x127   :  { %v72_v41 = vpop.xlane.xlu1 %71 }
 0x128   :  { %v81_v42 = vmul.f32 0.03125, %v72_v41 }
 0x12a   :  { %v86_v43 = vadd.f32 1e-05, %v81_v42 }
 0x12b   :  { %v75_v44 = vpop.xlane.xlu0 %74  ;;  %v66_v45 = vpop.xlane.xlu1 %65 }
 0x12c   :  { %302 = vrsqrt.f32 %v86_v43  ;;  %v82_v46 = vmul.f32 0.03125, %v75_v44  ;;  %v79_v47 = vmul.f32 0.03125, %v66_v45 }
 0x12e   :  { %v87_v48 = vadd.f32 1e-05, %v82_v46  ;;  %v84_v49 = vadd.f32 1e-05, %v79_v47 }
 0x12f   :  { %v69_v50 = vpop.xlane.xlu0 %68  ;;  %v78_v51 = vpop.xlane.xlu1 %77 }
 0x130   :  { %304 = vrsqrt.f32 %v87_v48  ;;  %v80_v52 = vmul.f32 0.03125, %v69_v50  ;;  %v83_v53 = vmul.f32 0.03125, %v78_v51 }
 0x131   :  { %306 = vrsqrt.f32 %v84_v49 }
 0x132   :  { %v85_v54 = vadd.f32 1e-05, %v80_v52  ;;  %v88_v55 = vadd.f32 1e-05, %v83_v53 }
 0x134   :  { %308 = vrsqrt.f32 %v85_v54 }
 0x135   :  { %310 = vrsqrt.f32 %v88_v55 }
 0x136   :  { %v303_v56 = vpop.eup %302 }
 0x137   :  { %v96_v57 = vmul.f32 %v303_v56, %v358_v17  ;;  %v248_v17 = vld [vmem:[%s422_s4] ss:$0 sm:$0xff] }
 0x139   :  { %v108_v62 = vmul.f32 %v246_v58, %v96_v57 }
 0x13a   :  { %v305_v59 = vpop.eup %304 }
 0x13b   :  { %v307_v60 = vpop.eup %306  ;;  %v97_v61 = vmul.f32 %v305_v59, %v57_v25  ;;  %v120_v5 = vadd.f32 %v247_v0, %v108_v62 }
 0x13c   :  { %v94_v63 = vmul.f32 %v307_v60, %v360_v18 }
 0x13d   :  { %v109_v1 = vmul.f32 %v246_v58, %v97_v61 }
 0x13e   :  { %v309_v2 = vpop.eup %308  ;;  %v106_v7 = vmul.f32 %v246_v58, %v94_v63 }
 0x13f   :  { %v311_v3 = vpop.eup %310  ;;  %v95_v4 = vmul.f32 %v309_v2, %v367_v27  ;;  %v121_v6 = vadd.f32 %v247_v0, %v109_v1 }
 0x140   :  { %v98_v8 = vmul.f32 %v311_v3, %v58_v33  ;;  %v118_v12 = vadd.f32 %v247_v0, %v106_v7 }
 0x141   :  { %v124_v9 = vpack.c.bf16 %v121_v6, %v120_v5  ;;  %v107_v10 = vmul.f32 %v246_v58, %v95_v4 }
 0x142   :  { %v110_v11 = vmul.f32 %v246_v58, %v98_v8 }
 0x143   :  { %287 = vmatmul.mubr.msk.bf16.vlgmr.msra.gmra.mrb[0].mxu1 %vm31_vm0, %v124_v9  ;;  %v119_v13 = vadd.f32 %v247_v0, %v107_v10 }
 0x144   :  { %290 = vmatprep.mubr.msk.bf16.mxu1 %vm313_vm2, %v312_v39  ;;  %v122_v15 = vadd.f32 %v247_v0, %v110_v11 }
 0x145   :  { %v123_v14 = vpack.c.bf16 %v119_v13, %v118_v12 }
 0x146   :  { %v125_v16 = vpack.c.bf16 %v122_v15, %v122_v15 }
 0x147   :  { %283 = vmatmul.mubr.msk.bf16.vlgmr.msra.gmra.mrb[0].mxu0 %vm31_vm0, %v123_v14 }
 0x14b   :  { %291 = vmatmul.mubr.msk.bf16.gmra.mrb[4].mxu1 %vm31_vm0, %v125_v16 }
 0x216   :  { %v200_v18 = vpop.f32.mrb[0].mxu1 }
 0x217   :  { %v201_v19 = vadd.f32 %v248_v17, %v200_v18  ;;  %v288_v20 = vpop.f32.mrb[1].mxu1 }
 0x218   :  { %v203_v21 = vpop.f32.mrb[2].mxu1 }
 0x219   :  { %v261_v22 = vpack.c.bf16 %v201_v19, %v201_v19  ;;  %v204_v23 = vadd.f32 %v248_v17, %v203_v21  ;;  %v289_v24 = vpop.f32.mrb[3].mxu1 }
 0x21a   :  { %v192_v25 = vpop.f32.mrb[0].mxu0 }
 0x21b   :  { %238 = vst.msk [vmem:[%s423_s5 + $0x8] sm:$0xf] %vm235_vm3, %v261_v22  ;;  %v262_v26 = vpack.c.bf16 %v204_v23, %v204_v23  ;;  %v193_v27 = vadd.f32 %v248_v17, %v192_v25  ;;  %v284_v28 = vpop.f32.mrb[1].mxu0 }
 0x21c   :  { %v195_v29 = vpop.f32.mrb[2].mxu0 }
 0x21d   :  { %239 = vst.msk [vmem:[%s423_s5 + $0xc] sm:$0xf] %vm235_vm3, %v262_v26  ;;  %v259_v30 = vpack.c.bf16 %v193_v27, %v193_v27  ;;  %v196_v31 = vadd.f32 %v248_v17, %v195_v29  ;;  %v285_v32 = vpop.f32.mrb[3].mxu0 }
 0x21e   :  { %v208_v33 = vpop.f32.mrb[4].mxu1 }
 0x21f   :  { %236 = vst.msk [vmem:[%s423_s5] sm:$0xf] %vm235_vm3, %v259_v30  ;;  %v260_v34 = vpack.c.bf16 %v196_v31, %v196_v31  ;;  %v209_v35 = vadd.f32 %v248_v17, %v208_v33  ;;  %v292_v36 = vpop.f32.mrb[5].mxu1 }
 0x220   :  { %v211_v37 = vpop.f32.mrb[6].mxu1 }
 0x221   :  { %237 = vst.msk [vmem:[%s423_s5 + $0x4] sm:$0xf] %vm235_vm3, %v260_v34  ;;  %v263_v38 = vpack.c.bf16 %v209_v35, %v209_v35  ;;  %v293_v39 = vpop.f32.mrb[7].mxu1 }
 0x223   :  { %241 = vst.msk [vmem:[%s423_s5 + $0x10] sm:$0x1] %vm240_vm4, %v263_v38 }

// kernel: vit_forward.14
= control target key start
LH: loop header
LB: loop body
LE: loop exit
PB: predicated region body
PF: predicated region fallthrough
CT: control target
= control target key end

     0   :  { %s418_s15 = smov 0   ;;  %s464_s0 = inlined_call_operand.vmem [shape: bf16[2,17,32], index: 0, kind: input, shape index: {}]   ;;  %s465_s1 = inlined_call_operand.vmem [shape: f32[17,32], index: 1, kind: input, shape index: {}]   ;;  %s466_s2 = inlined_call_operand.vmem [shape: f32[1,32], index: 2, kind: input, shape index: {}]   ;;  %s467_s3 = inlined_call_operand.vmem [shape: f32[1,32], index: 3, kind: input, shape index: {}]   ;;  %s468_s4 = inlined_call_operand.vmem [shape: bf16[2,17,32], index: 4, kind: output, shape index: {}]  }
   0x1 LB: > { %s349_s16 = sadd.s32 4294967295, %s391_s15   ;;  %p353_p0 = scmp.ge.s32.totalorder %s391_s15, 1  ;;  %s391_s15 = sphi %s418_s15, %s14_s15  }
   0x2   : > { %p162_p1 = scmp.lt.s32.totalorder %s391_s15, 3 }
   0x4   : > { %p163_p2 = pnand %p353_p0, %p162_p1 }
   0x5   : > { %p188_p3 = scmp.lt.s32.totalorder (!%p163_p2), %s349_s16, 1  ;;  %v206_v0 = vld [vmem:[%s465_s1 + $0x10] sm:$0x1] (!%p163_p2)  ;;  %v205_v1 = vld [vmem:[%s465_s1 + $0x8] sm:$0xff] (!%p163_p2)  ;;  %v204_v4 = vld [vmem:[%s465_s1] sm:$0xff] (!%p163_p2)  ;;  %vm217_vm0 = vcmask (!%p163_p2), 253952  }
   0x6   : > { %166 = sbr.rel (%p163_p2) target bundleno = 343 (0x157), region = 36  ;;  %vm210_vm1 = vcmask (!%p163_p2), 261120   ;;  %v356_v39 = vld [vmem:[%s466_s2] ss:$0 sm:$0xff] (!%p163_p2)  ;;  %vm289_vm2 = vsmask.f32 (!%p163_p2), 256 }
   0x7   : > { %v357_v41 = vld [vmem:[%s467_s3] ss:$0 sm:$0xff] (!%p163_p2)  ;;  %vm290_vm3 = vmand (!%p163_p2), %vm217_vm0, %vm289_vm2  ;;  %vm285_vm4 = vcmask (!%p163_p2), 257024  }
   0xd   : > { %s470_s16 = smov (!%p188_p3, %s349_s16), 1 }
   0xe   : > { %s370_s17 = smul.u32 12, %s470_s16 }
  0x10   : > { %s192_s20 = scalar_lea.vmem %s464_s0, %s370_s17  ;;  %s197_s7 = scalar_lea.vmem %s468_s4, %s370_s17 }
  0x11   : > { %v200_v2 = vld [vmem:[%s192_s20 + $0x8] sm:$0x1]  ;;  %v367_v3 = vld [vmem:[%s192_s20] sm:$0xff]  }
  0x12   : > { %v203_v5 = vunpack.c.l.bf16 %v200_v2  ;;  %v369_v6 = vunpack.c.h.bf16 %v367_v3  ;;  %v368_v7 = vunpack.c.l.bf16 %v367_v3  ;;  %v291_v47 = vld [vmem:[%s197_s7 + $0x8] sm:$0x1] }
  0x14   : > { %v209_v8 = vadd.f32 %v206_v0, %v203_v5  ;;  %v208_v9 = vadd.f32 %v369_v6, %v205_v1  ;;  %v207_v10 = vadd.f32 %v368_v7, %v204_v4 }
  0x16   : > { %v218_v11 = vsel %vm217_vm0, %v209_v8, 0.0  ;;  %v214_v12 = vsel %vm210_vm1, %v208_v9, 0.0  ;;  %v211_v13 = vsel %vm210_vm1, %v207_v10, 0.0 }
  0x17   : > { %219 = vadd.xlane.f32.xlu0 %v218_v11  ;;  %215 = vadd.xlane.f32.xlu1 %v214_v12 }
  0x1b   : > { %212 = vadd.xlane.f32.xlu0 %v211_v13 }
  0xa4   : > { %v220_v14 = vpop.xlane.xlu0 %219  ;;  %v216_v15 = vpop.xlane.xlu1 %215 }
  0xa5   : > { %v224_v16 = vmul.f32 0.03125, %v220_v14  ;;  %v223_v17 = vmul.f32 0.03125, %v216_v15 }
  0xa7   : > { %v227_v18 = vsub.f32 %v209_v8, %v224_v16  ;;  %v226_v19 = vsub.f32 %v208_v9, %v223_v17 }
  0xa8   : > { %v213_v20 = vpop.xlane.xlu0 %212 }
  0xa9   : > { %v222_v21 = vmul.f32 0.03125, %v213_v20  ;;  %v230_v22 = vmul.f32 %v227_v18, %v227_v18  ;;  %v229_v23 = vmul.f32 %v226_v19, %v226_v19 }
  0xab   : > { %v225_v24 = vsub.f32 %v207_v10, %v222_v21  ;;  %v237_v25 = vsel %vm217_vm0, %v230_v22, 0.0  ;;  %v234_v26 = vsel %vm210_vm1, %v229_v23, 0.0 }
  0xac   : > { %238 = vadd.xlane.f32.xlu1 %v237_v25 }
  0xad   : > { %v228_v27 = vmul.f32 %v225_v24, %v225_v24 }
  0xaf   : > { %v231_v28 = vsel %vm210_vm1, %v228_v27, 0.0 }
  0xb0   : > { %235 = vadd.xlane.f32.xlu1 %v234_v26  ;;  %232 = vadd.xlane.f32.xlu0 %v231_v28 }
 0x139   : > { %v239_v29 = vpop.xlane.xlu1 %238 }
 0x13a   : > { %v242_v30 = vmul.f32 0.03125, %v239_v29 }
 0x13c   : > { %v245_v31 = vadd.f32 1e-05, %v242_v30 }
 0x13d   : > { %v236_v32 = vpop.xlane.xlu1 %235  ;;  %v233_v33 = vpop.xlane.xlu0 %232 }
 0x13e   : > { %379 = vrsqrt.f32 %v245_v31  ;;  %v241_v34 = vmul.f32 0.03125, %v236_v32  ;;  %v240_v35 = vmul.f32 0.03125, %v233_v33 }
 0x140   : > { %v244_v36 = vadd.f32 1e-05, %v241_v34  ;;  %v243_v37 = vadd.f32 1e-05, %v240_v35 }
 0x142   : > { %381 = vrsqrt.f32 %v244_v36 }
 0x143   : > { %383 = vrsqrt.f32 %v243_v37 }
 0x148   : > { %v380_v38 = vpop.eup %379 }
 0x149   : > { %v251_v40 = vmul.f32 %v380_v38, %v227_v18 }
 0x14b   : > { %v261_v42 = vmul.f32 %v356_v39, %v251_v40 }
 0x14c   : > { %v382_v43 = vpop.eup %381 }
 0x14d   : > { %v384_v44 = vpop.eup %383  ;;  %v271_v45 = vadd.f32 %v357_v41, %v261_v42  ;;  %v250_v46 = vmul.f32 %v382_v43, %v226_v19 }
 0x14e   : > { %v249_v48 = vmul.f32 %v384_v44, %v225_v24 }
 0x14f   : > { %v365_v49 = vpack.c.bf16 %v271_v45, %v271_v45  ;;  %v260_v50 = vmul.f32 %v356_v39, %v250_v46 }
 0x150   : > { %v259_v51 = vmul.f32 %v356_v39, %v249_v48 }
 0x151   : > { %v292_v52 = vsel %vm290_vm3, %v365_v49, %v291_v47  ;;  %v270_v53 = vadd.f32 %v357_v41, %v260_v50 }
 0x152   : > { %293 = vst [vmem:[%s197_s7 + $0x8] sm:$0x1] %v292_v52  ;;  %v269_v54 = vadd.f32 %v357_v41, %v259_v51 }
 0x153   : > { %v364_v55 = vpack.c.bf16 %v270_v53, %v270_v53 }
 0x154   : > { %v363_v56 = vpack.c.bf16 %v269_v54, %v269_v54 }
 0x155   : > { %287 = vst.msk [vmem:[%s197_s7 + $0x4] sm:$0xf] %vm285_vm4, %v364_v55 }
 0x156   : > { %286 = vst.msk [vmem:[%s197_s7] sm:$0xf] %vm285_vm4, %v363_v56 }
 0x157 PF: > { %s14_s15 = sadd.s32 1, %s391_s15  }
 0x158   : > { %p11_p4 = scmp.ge.s32.totalorder %s14_s15, 4  }
 0x15a   :  { %13 = sbr.rel (!%p11_p4) target bundleno = 1 (0x1), region = 66 }

// kernel: vit_forward.16
= control target key start
LH: loop header
LB: loop body
LE: loop exit
PB: predicated region body
PF: predicated region fallthrough
CT: control target
= control target key end

     0   :  { %s1256_s6 = smov 0   ;;  %s1415_s0 = inlined_call_operand.vmem [shape: bf16[2,17,96], index: 0, kind: input, shape index: {}]   ;;  %s1416_s1 = inlined_call_operand.vmem [shape: bf16[2,17,32], index: 1, kind: output, shape index: {}]  }
   0x1 LB: > { %s982_s7 = sadd.s32 4294967295, %s1229_s6   ;;  %p986_p0 = scmp.ge.s32.totalorder %s1229_s6, 1  ;;  %s1229_s6 = sphi %s1256_s6, %s11_s6  }
   0x2   : > { %p87_p1 = scmp.lt.s32.totalorder %s1229_s6, 3 }
   0x4   : > { %p88_p2 = pnand %p986_p0, %p87_p1 }
   0x5   : > { %p107_p3 = scmp.lt.s32.totalorder (!%p88_p2), %s982_s7, 1  ;;  %vm133_vm0 = vcmask (!%p88_p2), 64512   ;;  %s1231_s12 = smov (!%p88_p2), 96   ;;  %vm201_vm1 = vcmask (!%p88_p2), 131072   ;;  %vm194_vm2 = vcmask (!%p88_p2), 138240   ;;  %vm242_vm3 = vcmask (!%p88_p2), 1040384  }
   0x6   : > { %91 = sbr.rel (%p88_p2) target bundleno = 2682 (0xa7a), region = 24  ;;  %s1232_s13 = smov (!%p88_p2), 64   ;;  %v1235_v34 = vmov (!%p88_p2), 0   ;;  %vm312_vm4 = vcmask (!%p88_p2), 57344   ;;  %vm313_vm5 = vsmask.f32 (!%p88_p2), 256 }
   0x7   : > { %s1233_s14 = smov (!%p88_p2), 88   ;;  %s1234_s15 = smov (!%p88_p2), 120   ;;  %v1298_v35 = vsel (!%p88_p2), %vm242_vm3, 65535, %v1235_v34  ;;  %vm314_vm6 = vmand (!%p88_p2), %vm312_vm4, %vm313_vm5  ;;  %vm309_vm7 = vcmask (!%p88_p2), 60416   ;;  %vm516_vm8 = vcmask (!%p88_p2), 122944   ;;  %vm719_vm10 = vcmask (!%p88_p2), 188544  }
   0x8   : > { %s1236_s19 = smov (!%p88_p2), 56   ;;  %s1237_s20 = smov (!%p88_p2), 80   ;;  %vm517_vm9 = vmand (!%p88_p2), %vm516_vm8, %vm313_vm5  ;;  %vm513_vm11 = vcmask (!%p88_p2), 126016   ;;  %vm716_vm13 = vcmask (!%p88_p2), 191616   ;;  %vm922_vm14 = vcmask (!%p88_p2), 254144  }
   0x9   : > { %s1238_s21 = smov (!%p88_p2), 112   ;;  %s1239_s22 = smov (!%p88_p2), 48   ;;  %vm720_vm12 = vmand (!%p88_p2), %vm719_vm10, %vm313_vm5 }
   0xa   : > { %s1240_s23 = smov (!%p88_p2), 72   ;;  %s1241_s24 = smov (!%p88_p2), 104   ;;  %vm923_vm15 = vmand (!%p88_p2), %vm922_vm14, %vm313_vm5 }
   0xb   : > { %s1242_s25 = smov (!%p88_p2), 40   ;;  %s1243_s26 = smov (!%p88_p2), 8  }
   0xc   : > { %s1244_s27 = smov (!%p88_p2), 16   ;;  %s1245_s28 = smov (!%p88_p2), 24  }
   0xd   : > { %s1418_s7 = smov (!%p107_p3, %s982_s7), 1 }
   0xe   : > { %s1143_s8 = smul.u32 12, %s1418_s7 }
  0x10   : > { %s1272_s11 = scalar_lea.vmem %s1415_s0, %s1143_s8  ;;  %s1314_s18 = scalar_lea.vmem %s1416_s1, %s1143_s8 }
  0x11   : > { %v1167_v0 = vld [vmem:[%s1272_s11] sm:$0xff]   ;;  %v1168_v1 = vld [vmem:[%s1272_s11 + $0x8] ss:$0 sps:$4 sm:$0x11]  }
  0x12   : > { %129 = vrot.lane.b32.xlu0 %v1167_v0, %s1231_s12  ;;  %1075 = vmatprep.mubr.msk.bf16.mxu0 %vm133_vm0, %v1167_v0  ;;  %v1286_v13 = vld [vmem:[%s1272_s11] sm:$0xff]   ;;  %v1293_v30 = vld [vmem:[%s1272_s11 + $0x8] ss:$0 sps:$4 sm:$0x11]  }
  0x13   : > { %v315_v53 = vld [vmem:[%s1314_s18 + $0x8] sm:$0x1] }
  0x16   : > { %131 = vrot.lane.b32.xlu0 %v1168_v1, %s1231_s12 }
  0x84   : > { %v130_v2 = vpop.permute.xlu0 %129 }
  0x85   : > { %1135 = vmatprep.subr.msk.bf16.mxu0 %vm133_vm0, %v130_v2  ;;  %v141_v3 = vsel %vm133_vm0, %v130_v2, 0 }
  0x86   : > { %1072 = vmatpush3.bf16.xpose.msra.mxu0 %v141_v3 }
  0x88   : > { %v132_v4 = vpop.permute.xlu0 %131 }
  0x89   : > { %1136 = vmatprep.subr.msk.bf16.mxu0 %vm133_vm0, %v132_v4  ;;  %v144_v5 = vsel %vm133_vm0, %v132_v4, 0 }
  0x8e   : > { %1074 = vmatpush3.bf16.xpose.msra.mxu0 %v144_v5 }
  0x95   : > { %1076 = vmatmul.mubr.msk.bf16.vlgmr.msra.gmra.mrb[0].mxu0 %vm133_vm0, %v1168_v1 }
 0x168   : > { %v1077_v6 = vpop.f32.mrb[0].mxu0 }
 0x169   : > { %v180_v7 = vpop.f32.mrb[1].mxu0  ;;  %v202_v8 = vsel %vm201_vm1, %v1077_v6, -inf }
 0x16a   : > { %203 = vmax.xlane.f32.xlu0 %v202_v8  ;;  %v1078_v9 = vpop.f32.mrb[2].mxu0  ;;  %v195_v10 = vsel %vm194_vm2, %v180_v7, -inf }
 0x16b   : > { %196 = vmax.xlane.f32.xlu1 %v195_v10  ;;  %v183_v11 = vpop.f32.mrb[3].mxu0 }
 0x16c   : > { %v198_v12 = vsel %vm194_vm2, %v183_v11, -inf }
 0x16f   : > { %199 = vmax.xlane.f32.xlu1 %v198_v12 }
 0x180   : > { %231 = vrot.lane.b32.xlu1 %v1167_v0, %s1232_s13  ;;  %333 = vrot.lane.b32.xlu0 %v1286_v13, %s1233_s14 }
 0x1f7   : > { %v204_v14 = vpop.xlane.xlu0 %203 }
 0x1f8   : > { %v207_v15 = vsub.f32 %v1077_v6, %v204_v14  ;;  %v197_v16 = vpop.xlane.xlu1 %196 }
 0x1f9   : > { %v205_v17 = vsub.f32 %v180_v7, %v197_v16 }
 0x1fa   : > { %v212_v18 = vmul.f32 1.442695, %v207_v15 }
 0x1fb   : > { %v208_v19 = vmul.f32 1.442695, %v205_v17  ;;  %v334_v38 = vpop.permute.xlu0 %333 }
 0x1fc   : > { %1175 = vpow2.f32 %v212_v18  ;;  %v200_v20 = vpop.xlane.xlu1 %199  ;;  %v344_v47 = vsel %vm133_vm0, %v334_v38, 0 }
 0x1fd   : > { %v206_v21 = vsub.f32 %v183_v11, %v200_v20  ;;  %1177 = vpow2.f32 %v208_v19  ;;  %v1171_v20 = vld [vmem:[%s1272_s11] sm:$0xff]  }
 0x1ff   : > { %v210_v22 = vmul.f32 1.442695, %v206_v21  ;;  %v1331_v21 = vld [vmem:[%s1272_s11 + $0x8] ss:$0 sps:$4 sm:$0x11]  }
 0x200   : > { %v232_v23 = vpop.permute.xlu1 %231 }
 0x201   : > { %1079 = vmatprep.subr.bf16.mxu1 %v232_v23  ;;  %1179 = vpow2.f32 %v210_v22 }
 0x202   : > { %1080 = vmatpush3.bf16.msra.mxu1 %v232_v23 }
 0x206   : > { %v1176_v24 = vpop.eup %1175 }
 0x207   : > { %v220_v25 = vsel %vm201_vm1, %v1176_v24, 0.0  ;;  %v1178_v26 = vpop.eup %1177 }
 0x208   : > { %221 = vadd.xlane.f32.xlu1 %v220_v25  ;;  %v214_v27 = vsel %vm194_vm2, %v1178_v26, 0.0 }
 0x20b   : > { %v1180_v28 = vpop.eup %1179 }
 0x20c   : > { %215 = vadd.xlane.f32.xlu1 %v214_v27  ;;  %v217_v29 = vsel %vm194_vm2, %v1180_v28, 0.0 }
 0x210   : > { %218 = vadd.xlane.f32.xlu1 %v217_v29 }
 0x221   : > { %233 = vrot.lane.b32.xlu1 %v1168_v1, %s1232_s13 }
 0x225   : > { %335 = vrot.lane.b32.xlu1 %v1293_v30, %s1233_s14 }
 0x229   : > { %329 = vrot.lane.b32.xlu1 %v1286_v13, %s1234_s15 }
 0x22d   : > { %331 = vrot.lane.b32.xlu1 %v1293_v30, %s1234_s15 }
 0x295   : > { %v222_v31 = vpop.xlane.xlu1 %221 }
 0x296   : > { %1181 = vrcp.f32 %v222_v31 }
 0x299   : > { %v216_v32 = vpop.xlane.xlu1 %215 }
 0x29a   : > { %1183 = vrcp.f32 %v216_v32 }
 0x29d   : > { %v219_v33 = vpop.xlane.xlu1 %218 }
 0x29e   : > { %1185 = vrcp.f32 %v219_v33 }
 0x2a0   : > { %v1182_v39 = vpop.eup %1181 }
 0x2a1   : > { %v234_v36 = vpop.permute.xlu1 %233  ;;  %v228_v43 = vmul.f32 %v1182_v39, %v1176_v24 }
 0x2a2   : > { %v246_v37 = vand.u32 %v1298_v35, %v234_v36 }
 0x2a3   : > { %v230_v48 = vpack.c.bf16 %v228_v43, %v228_v43 }
 0x2a4   : > { %1081 = vmatprep.subr.bf16.mxu1 %v246_v37  ;;  %v1184_v40 = vpop.eup %1183 }
 0x2a5   : > { %1082 = vmatpush3.bf16.msra.mxu1 %v246_v37  ;;  %v336_v41 = vpop.permute.xlu1 %335  ;;  %v226_v44 = vmul.f32 %v1184_v40, %v1178_v26 }
 0x2a6   : > { %1137 = vmatprep.subr.msk.bf16.mxu1 %vm133_vm0, %v334_v38  ;;  %v347_v50 = vsel %vm133_vm0, %v336_v41, 0 }
 0x2a8   : > { %v1186_v42 = vpop.eup %1185 }
 0x2a9   : > { %v227_v45 = vmul.f32 %v1186_v42, %v1180_v28  ;;  %v330_v49 = vpop.permute.xlu1 %329 }
 0x2ab   : > { %v229_v46 = vpack.c.bf16 %v227_v45, %v226_v44 }
 0x2ad   : > { %1083 = vmatprep.mubr.msk.bf16.mxu1 %vm194_vm2, %v229_v46  ;;  %v332_v51 = vpop.permute.xlu1 %331 }
 0x2ae   : > { %1084 = vmatmul.mubr.msk.bf16.vlgmr.msra.gmra.mrb[0].mxu1 %vm194_vm2, %v230_v48 }
 0x2af   : > { %1088 = vmatpush3.bf16.xpose.msra.mxu1 %v344_v47  ;;  %1091 = vmatprep.mubr.msk.bf16.mxu1 %vm133_vm0, %v330_v49 }
 0x2b0   : > { %1138 = vmatprep.subr.msk.bf16.mxu1 %vm133_vm0, %v336_v41 }
 0x2b7   : > { %1090 = vmatpush3.bf16.xpose.msra.mxu1 %v347_v50 }
 0x2be   : > { %1092 = vmatmul.mubr.msk.bf16.vlgmr.msra.gmra.mrb[4].mxu1 %vm133_vm0, %v332_v51 }
 0x381   : > { %v1085_v52 = vpop.f32.mrb[0].mxu1 }
 0x382   : > { %v1029_v54 = vpack.c.bf16 %v1085_v52, %v1085_v52  ;;  %v282_v55 = vpop.f32.mrb[1].mxu1 }
 0x383   : > { %v1027_v56 = vpack.c.bf16 %v282_v55, %v282_v55  ;;  %v1086_v57 = vpop.f32.mrb[2].mxu1 }
 0x384   : > { %v316_v58 = vsel %vm314_vm6, %v1029_v54, %v315_v53  ;;  %v285_v59 = vpop.f32.mrb[3].mxu1 }
 0x385   : > { %317 = vst [vmem:[%s1314_s18 + $0x8] sm:$0x1] %v316_v58  ;;  %310 = vst.msk [vmem:[%s1314_s18] sm:$0xf] %vm309_vm7, %v1027_v56  ;;  %v1028_v60 = vpack.c.bf16 %v285_v59, %v285_v59 }
 0x387   : > { %311 = vst.msk [vmem:[%s1314_s18 + $0x4] sm:$0xf] %vm309_vm7, %v1028_v60 }
 0x391   : > { %v1093_v61 = vpop.f32.mrb[4].mxu1 }
 0x392   : > { %v383_v62 = vpop.f32.mrb[5].mxu1  ;;  %v403_v3 = vsel %vm201_vm1, %v1093_v61, -inf }
 0x393   : > { %v1094_v63 = vpop.f32.mrb[6].mxu1  ;;  %v397_v0 = vsel %vm194_vm2, %v383_v62, -inf }
 0x394   : > { %398 = vmax.xlane.f32.xlu1 %v397_v0  ;;  %v386_v1 = vpop.f32.mrb[7].mxu1 }
 0x395   : > { %v400_v2 = vsel %vm194_vm2, %v386_v1, -inf }
 0x396   : > { %401 = vmax.xlane.f32.xlu0 %v400_v2 }
 0x398   : > { %404 = vmax.xlane.f32.xlu1 %v403_v3 }
 0x3a9   : > { %432 = vrot.lane.b32.xlu1 %v1286_v13, %s1236_s19 }
 0x421   : > { %v399_v4 = vpop.xlane.xlu1 %398 }
 0x422   : > { %v406_v6 = vsub.f32 %v383_v62, %v399_v4 }
 0x423   : > { %v402_v5 = vpop.xlane.xlu0 %401 }
 0x424   : > { %v407_v7 = vsub.f32 %v386_v1, %v402_v5  ;;  %v409_v11 = vmul.f32 1.442695, %v406_v6  ;;  %v1360_v5 = vld [vmem:[%s1272_s11] sm:$0xff]   ;;  %v1364_v6 = vld [vmem:[%s1272_s11 + $0x8] ss:$0 sps:$4 sm:$0x11]  }
 0x425   : > { %v405_v8 = vpop.xlane.xlu1 %404 }
 0x426   : > { %v411_v9 = vmul.f32 1.442695, %v407_v7  ;;  %v408_v10 = vsub.f32 %v1093_v61, %v405_v8 }
 0x428   : > { %1187 = vpow2.f32 %v411_v9  ;;  %v413_v12 = vmul.f32 1.442695, %v408_v10 }
 0x429   : > { %v433_v14 = vpop.permute.xlu1 %432 }
 0x42a   : > { %1189 = vpow2.f32 %v413_v12  ;;  %1095 = vmatprep.subr.bf16.mxu0 %v433_v14 }
 0x42b   : > { %1096 = vmatpush3.bf16.msra.mxu0 %v433_v14  ;;  %1191 = vpow2.f32 %v409_v11 }
 0x432   : > { %v1188_v15 = vpop.eup %1187 }
 0x433   : > { %v418_v13 = vsel %vm194_vm2, %v1188_v15, 0.0 }
 0x434   : > { %v1190_v16 = vpop.eup %1189  ;;  %419 = vadd.xlane.f32.xlu1 %v418_v13 }
 0x435   : > { %v421_v17 = vsel %vm201_vm1, %v1190_v16, 0.0  ;;  %v1192_v18 = vpop.eup %1191 }
 0x436   : > { %422 = vadd.xlane.f32.xlu0 %v421_v17  ;;  %v415_v19 = vsel %vm194_vm2, %v1192_v18, 0.0 }
 0x43a   : > { %416 = vadd.xlane.f32.xlu0 %v415_v19 }
 0x445   : > { %536 = vrot.lane.b32.xlu1 %v1171_v20, %s1237_s20 }
 0x449   : > { %538 = vrot.lane.b32.xlu1 %v1331_v21, %s1237_s20 }
 0x44d   : > { %534 = vrot.lane.b32.xlu1 %v1331_v21, %s1238_s21 }
 0x450   : > { %434 = vrot.lane.b32.xlu0 %v1293_v30, %s1236_s19 }
 0x454   : > { %532 = vrot.lane.b32.xlu0 %v1171_v20, %s1238_s21 }
 0x4c1   : > { %v420_v22 = vpop.xlane.xlu1 %419 }
 0x4c3   : > { %v423_v23 = vpop.xlane.xlu0 %422 }
 0x4c4   : > { %1193 = vrcp.f32 %v423_v23 }
 0x4c5   : > { %1195 = vrcp.f32 %v420_v22  ;;  %v537_v27 = vpop.permute.xlu1 %536 }
 0x4c6   : > { %v547_v36 = vsel %vm133_vm0, %v537_v27, 0 }
 0x4c7   : > { %v417_v24 = vpop.xlane.xlu0 %416 }
 0x4c8   : > { %1197 = vrcp.f32 %v417_v24 }
 0x4c9   : > { %v539_v39 = vpop.permute.xlu1 %538 }
 0x4ca   : > { %v550_v40 = vsel %vm133_vm0, %v539_v39, 0 }
 0x4cb   : > { %v435_v25 = vpop.permute.xlu0 %434 }
 0x4cc   : > { %v444_v26 = vand.u32 %v435_v25, %v1298_v35 }
 0x4cd   : > { %v535_v41 = vpop.permute.xlu1 %534 }
 0x4ce   : > { %1097 = vmatprep.subr.bf16.mxu0 %v444_v26  ;;  %v1194_v28 = vpop.eup %1193 }
 0x4cf   : > { %1098 = vmatpush3.bf16.msra.mxu0 %v444_v26  ;;  %v1196_v29 = vpop.eup %1195  ;;  %v429_v32 = vmul.f32 %v1194_v28, %v1190_v16  ;;  %v533_v38 = vpop.permute.xlu0 %532 }
 0x4d0   : > { %1139 = vmatprep.subr.msk.bf16.mxu0 %vm133_vm0, %v537_v27  ;;  %v428_v33 = vmul.f32 %v1196_v29, %v1188_v15 }
 0x4d1   : > { %v431_v37 = vpack.c.bf16 %v429_v32, %v429_v32 }
 0x4d2   : > { %v1198_v31 = vpop.eup %1197 }
 0x4d3   : > { %v427_v30 = vmul.f32 %v1198_v31, %v1192_v18 }
 0x4d5   : > { %v430_v34 = vpack.c.bf16 %v428_v33, %v427_v30 }
 0x4d7   : > { %1099 = vmatprep.mubr.msk.bf16.mxu0 %vm194_vm2, %v430_v34 }
 0x4d8   : > { %1100 = vmatmul.mubr.msk.bf16.vlgmr.msra.gmra.mrb[4].mxu0 %vm194_vm2, %v431_v37 }
 0x4d9   : > { %1104 = vmatpush3.bf16.xpose.msra.mxu0 %v547_v36  ;;  %1107 = vmatprep.mubr.msk.bf16.mxu0 %vm133_vm0, %v533_v38 }
 0x4da   : > { %1140 = vmatprep.subr.msk.bf16.mxu0 %vm133_vm0, %v539_v39 }
 0x4e1   : > { %1106 = vmatpush3.bf16.xpose.msra.mxu0 %v550_v40 }
 0x4e8   : > { %1108 = vmatmul.mubr.msk.bf16.vlgmr.msra.gmra.mrb[8].mxu0 %vm133_vm0, %v535_v41 }
 0x5ab   : > { %v1346_v42 = vpop.f32.mrb[4].mxu0 }
 0x5ac   : > { %v1348_v43 = vpop.f32.mrb[5].mxu0 }
 0x5ad   : > { %v1102_v44 = vpop.f32.mrb[6].mxu0 }
 0x5ae   : > { %v1350_v45 = vpop.f32.mrb[7].mxu0 }
 0x5bb   : > { %v1109_v46 = vpop.f32.mrb[8].mxu0 }
 0x5bc   : > { %v586_v47 = vpop.f32.mrb[9].mxu0  ;;  %v606_v52 = vsel %vm201_vm1, %v1109_v46, -inf }
 0x5bd   : > { %v1110_v48 = vpop.f32.mrb[10].mxu0  ;;  %v600_v49 = vsel %vm194_vm2, %v586_v47, -inf }
 0x5be   : > { %601 = vmax.xlane.f32.xlu0 %v600_v49  ;;  %v589_v50 = vpop.f32.mrb[11].mxu0 }
 0x5bf   : > { %v603_v51 = vsel %vm194_vm2, %v589_v50, -inf }
 0x5c0   : > { %604 = vmax.xlane.f32.xlu1 %v603_v51 }
 0x5c2   : > { %607 = vmax.xlane.f32.xlu0 %v606_v52 }
 0x5d1   : > { %635 = vrot.lane.b32.xlu1 %v1171_v20, %s1239_s22 }
 0x64b   : > { %v602_v53 = vpop.xlane.xlu0 %601 }
 0x64c   : > { %v609_v55 = vsub.f32 %v586_v47, %v602_v53 }
 0x64d   : > { %v605_v54 = vpop.xlane.xlu1 %604 }
 0x64e   : > { %v610_v56 = vsub.f32 %v589_v50, %v605_v54  ;;  %v612_v61 = vmul.f32 1.442695, %v609_v55 }
 0x64f   : > { %v608_v57 = vpop.xlane.xlu0 %607 }
 0x650   : > { %v614_v58 = vmul.f32 1.442695, %v610_v56  ;;  %v611_v59 = vsub.f32 %v1109_v46, %v608_v57  ;;  %v1032_v56 = vpack.c.bf16 %v1346_v42, %v1346_v42 }
 0x651   : > { %v636_v60 = vpop.permute.xlu1 %635 }
 0x652   : > { %1199 = vpow2.f32 %v614_v58  ;;  %v616_v62 = vmul.f32 1.442695, %v611_v59  ;;  %1111 = vmatprep.subr.bf16.mxu1 %v636_v60  ;;  %v1031_v58 = vpack.c.bf16 %v1350_v45, %v1350_v45  ;;  %v1030_v59 = vpack.c.bf16 %v1348_v43, %v1348_v43  ;;  %v518_v43 = vld [vmem:[%s1314_s18 + $0x8] sm:$0x1] }
 0x653   : > { %1112 = vmatpush3.bf16.msra.mxu1 %v636_v60 }
 0x654   : > { %1201 = vpow2.f32 %v616_v62 }
 0x655   : > { %1203 = vpow2.f32 %v612_v61 }
 0x65c   : > { %v1200_v63 = vpop.eup %1199 }
 0x65d   : > { %v621_v0 = vsel %vm194_vm2, %v1200_v63, 0.0 }
 0x65e   : > { %v1202_v1 = vpop.eup %1201  ;;  %622 = vadd.xlane.f32.xlu1 %v621_v0 }
 0x65f   : > { %v624_v2 = vsel %vm201_vm1, %v1202_v1, 0.0  ;;  %v1204_v3 = vpop.eup %1203 }
 0x660   : > { %625 = vadd.xlane.f32.xlu0 %v624_v2  ;;  %v618_v4 = vsel %vm194_vm2, %v1204_v3, 0.0 }
 0x664   : > { %619 = vadd.xlane.f32.xlu0 %v618_v4 }
 0x66f   : > { %739 = vrot.lane.b32.xlu1 %v1360_v5, %s1240_s23 }
 0x673   : > { %741 = vrot.lane.b32.xlu1 %v1364_v6, %s1240_s23 }
 0x677   : > { %737 = vrot.lane.b32.xlu1 %v1364_v6, %s1241_s24 }
 0x67a   : > { %637 = vrot.lane.b32.xlu0 %v1331_v21, %s1239_s22 }
 0x67e   : > { %735 = vrot.lane.b32.xlu0 %v1360_v5, %s1241_s24 }
 0x6eb   : > { %v623_v7 = vpop.xlane.xlu1 %622 }
 0x6ed   : > { %v626_v8 = vpop.xlane.xlu0 %625 }
 0x6ee   : > { %1205 = vrcp.f32 %v626_v8 }
 0x6ef   : > { %1207 = vrcp.f32 %v623_v7  ;;  %v740_v12 = vpop.permute.xlu1 %739 }
 0x6f0   : > { %v750_v20 = vsel %vm133_vm0, %v740_v12, 0 }
 0x6f1   : > { %v620_v9 = vpop.xlane.xlu0 %619 }
 0x6f2   : > { %1209 = vrcp.f32 %v620_v9 }
 0x6f3   : > { %v742_v23 = vpop.permute.xlu1 %741 }
 0x6f4   : > { %v753_v24 = vsel %vm133_vm0, %v742_v23, 0 }
 0x6f5   : > { %v638_v10 = vpop.permute.xlu0 %637 }
 0x6f6   : > { %v647_v11 = vand.u32 %v638_v10, %v1298_v35 }
 0x6f7   : > { %v738_v25 = vpop.permute.xlu1 %737 }
 0x6f8   : > { %1113 = vmatprep.subr.bf16.mxu1 %v647_v11  ;;  %v1206_v14 = vpop.eup %1205 }
 0x6f9   : > { %1114 = vmatpush3.bf16.msra.mxu1 %v647_v11  ;;  %v1208_v15 = vpop.eup %1207  ;;  %v632_v16 = vmul.f32 %v1206_v14, %v1202_v1  ;;  %v736_v22 = vpop.permute.xlu0 %735 }
 0x6fa   : > { %1141 = vmatprep.subr.msk.bf16.mxu1 %vm133_vm0, %v740_v12  ;;  %v631_v18 = vmul.f32 %v1208_v15, %v1200_v63 }
 0x6fb   : > { %v634_v21 = vpack.c.bf16 %v632_v16, %v632_v16 }
 0x6fc   : > { %v1210_v13 = vpop.eup %1209 }
 0x6fd   : > { %v630_v17 = vmul.f32 %v1210_v13, %v1204_v3 }
 0x6ff   : > { %v633_v19 = vpack.c.bf16 %v631_v18, %v630_v17 }
 0x701   : > { %1115 = vmatprep.mubr.msk.bf16.mxu1 %vm194_vm2, %v633_v19 }
 0x702   : > { %1116 = vmatmul.mubr.msk.bf16.vlgmr.msra.gmra.mrb[8].mxu1 %vm194_vm2, %v634_v21 }
 0x703   : > { %1120 = vmatpush3.bf16.xpose.msra.mxu1 %v750_v20  ;;  %1123 = vmatprep.mubr.msk.bf16.mxu1 %vm133_vm0, %v736_v22 }
 0x704   : > { %1142 = vmatprep.subr.msk.bf16.mxu1 %vm133_vm0, %v742_v23 }
 0x70b   : > { %1122 = vmatpush3.bf16.xpose.msra.mxu1 %v753_v24 }
 0x712   : > { %1124 = vmatmul.mubr.msk.bf16.vlgmr.msra.gmra.mrb[12].mxu1 %vm133_vm0, %v738_v25  ;;  %vm919_vm0 = vcmask 257216  }
 0x7d5   : > { %v1117_v26 = vpop.f32.mrb[8].mxu1 }
 0x7d6   : > { %v683_v27 = vpop.f32.mrb[9].mxu1  ;;  %v1035_v57 = vpack.c.bf16 %v1117_v26, %v1117_v26 }
 0x7d7   : > { %v1118_v28 = vpop.f32.mrb[10].mxu1  ;;  %v1033_v61 = vpack.c.bf16 %v683_v27, %v683_v27 }
 0x7d8   : > { %v686_v29 = vpop.f32.mrb[11].mxu1 }
 0x7d9   : > { %v1034_v60 = vpack.c.bf16 %v686_v29, %v686_v29 }
 0x7e5   : > { %v1125_v31 = vpop.f32.mrb[12].mxu1 }
 0x7e6   : > { %v789_v32 = vpop.f32.mrb[13].mxu1  ;;  %v809_v37 = vsel %vm201_vm1, %v1125_v31, -inf }
 0x7e7   : > { %v1126_v30 = vpop.f32.mrb[14].mxu1  ;;  %v803_v33 = vsel %vm194_vm2, %v789_v32, -inf }
 0x7e8   : > { %804 = vmax.xlane.f32.xlu0 %v803_v33  ;;  %v792_v34 = vpop.f32.mrb[15].mxu1 }
 0x7e9   : > { %v806_v36 = vsel %vm194_vm2, %v792_v34, -inf }
 0x7ea   : > { %807 = vmax.xlane.f32.xlu1 %v806_v36 }
 0x7ec   : > { %810 = vmax.xlane.f32.xlu0 %v809_v37 }
 0x875   : > { %v805_v38 = vpop.xlane.xlu0 %804 }
 0x876   : > { %v812_v40 = vsub.f32 %v789_v32, %v805_v38 }
 0x877   : > { %v808_v39 = vpop.xlane.xlu1 %807 }
 0x878   : > { %v813_v41 = vsub.f32 %v792_v34, %v808_v39  ;;  %v815_v48 = vmul.f32 1.442695, %v812_v40 }
 0x879   : > { %v811_v44 = vpop.xlane.xlu0 %810 }
 0x87a   : > { %v817_v46 = vmul.f32 1.442695, %v813_v41  ;;  %v814_v47 = vsub.f32 %v1125_v31, %v811_v44 }
 0x87c   : > { %1211 = vpow2.f32 %v817_v46  ;;  %v819_v49 = vmul.f32 1.442695, %v814_v47 }
 0x87e   : > { %1213 = vpow2.f32 %v819_v49 }
 0x87f   : > { %1215 = vpow2.f32 %v815_v48 }
 0x886   : > { %v1212_v50 = vpop.eup %1211 }
 0x887   : > { %v824_v51 = vsel %vm194_vm2, %v1212_v50, 0.0 }
 0x888   : > { %v1214_v52 = vpop.eup %1213  ;;  %825 = vadd.xlane.f32.xlu1 %v824_v51 }
 0x889   : > { %v827_v53 = vsel %vm201_vm1, %v1214_v52, 0.0  ;;  %v1216_v54 = vpop.eup %1215 }
 0x88a   : > { %828 = vadd.xlane.f32.xlu0 %v827_v53  ;;  %v821_v55 = vsel %vm194_vm2, %v1216_v54, 0.0 }
 0x88e   : > { %822 = vadd.xlane.f32.xlu0 %v821_v55 }
 0x899   : > { %838 = vrot.lane.b32.xlu1 %v1360_v5, %s1242_s25 }
 0x89d   : > { %508 = vrot.lane.b32.xlu1 %v1032_v56, %s1243_s26 }
 0x8a1   : > { %711 = vrot.lane.b32.xlu1 %v1035_v57, %s1244_s27 }
 0x8a4   : > { %840 = vrot.lane.b32.xlu0 %v1364_v6, %s1242_s25 }
 0x8a5   : > { %506 = vrot.lane.b32.xlu1 %v1031_v58, %s1243_s26 }
 0x8a8   : > { %504 = vrot.lane.b32.xlu0 %v1030_v59, %s1243_s26 }
 0x8a9   : > { %709 = vrot.lane.b32.xlu1 %v1034_v60, %s1244_s27 }
 0x8ac   : > { %707 = vrot.lane.b32.xlu0 %v1033_v61, %s1244_s27 }
 0x915   : > { %v826_v42 = vpop.xlane.xlu1 %825 }
 0x917   : > { %v829_v62 = vpop.xlane.xlu0 %828 }
 0x918   : > { %1217 = vrcp.f32 %v829_v62 }
 0x919   : > { %v839_v63 = vpop.permute.xlu1 %838  ;;  %1219 = vrcp.f32 %v826_v42 }
 0x91a   : > { %1127 = vmatprep.subr.bf16.mxu0 %v839_v63 }
 0x91b   : > { %v823_v45 = vpop.xlane.xlu0 %822  ;;  %1128 = vmatpush3.bf16.msra.mxu0 %v839_v63 }
 0x91c   : > { %1221 = vrcp.f32 %v823_v45 }
 0x91d   : > { %v509_v0 = vpop.permute.xlu1 %508 }
 0x91e   : > { %v519_v1 = vsel %vm517_vm9, %v509_v0, %v518_v43 }
 0x91f   : > { %520 = vst [vmem:[%s1314_s18 + $0x8] sm:$0x1] %v519_v1  ;;  %v841_v2 = vpop.permute.xlu0 %840 }
 0x920   : > { %v850_v3 = vand.u32 %v841_v2, %v1298_v35 }
 0x921   : > { %v712_v4 = vpop.permute.xlu1 %711 }
 0x922   : > { %1129 = vmatprep.subr.bf16.mxu0 %v850_v3  ;;  %v1218_v5 = vpop.eup %1217 }
 0x923   : > { %v505_v6 = vpop.permute.xlu0 %504  ;;  %1130 = vmatpush3.bf16.msra.mxu0 %v850_v3  ;;  %v1220_v7 = vpop.eup %1219  ;;  %v835_v10 = vmul.f32 %v1218_v5, %v1214_v52 }
 0x924   : > { %514 = vst.msk [vmem:[%s1314_s18] sm:$0xf] %vm513_vm11, %v505_v6  ;;  %v834_v15 = vmul.f32 %v1220_v7, %v1212_v50 }
 0x925   : > { %v507_v8 = vpop.permute.xlu1 %506  ;;  %v837_v17 = vpack.c.bf16 %v835_v10, %v835_v10 }
 0x926   : > { %v1222_v9 = vpop.eup %1221  ;;  %v721_v35 = vld [vmem:[%s1314_s18 + $0x8] sm:$0x1]  ;;  %515 = vst.msk [vmem:[%s1314_s18 + $0x4] sm:$0xf] %vm513_vm11, %v507_v8 }
 0x927   : > { %v722_v11 = vsel %vm720_vm12, %v712_v4, %v721_v35  ;;  %v708_v12 = vpop.permute.xlu0 %707  ;;  %v833_v14 = vmul.f32 %v1222_v9, %v1216_v54 }
 0x928   : > { %723 = vst [vmem:[%s1314_s18 + $0x8] sm:$0x1] %v722_v11  ;;  %717 = vst.msk [vmem:[%s1314_s18] sm:$0xf] %vm716_vm13, %v708_v12 }
 0x929   : > { %v710_v13 = vpop.permute.xlu1 %709  ;;  %v836_v16 = vpack.c.bf16 %v834_v15, %v833_v14 }
 0x92a   : > { %718 = vst.msk [vmem:[%s1314_s18 + $0x4] sm:$0xf] %vm716_vm13, %v710_v13 }
 0x92b   : > { %1131 = vmatprep.mubr.msk.bf16.mxu0 %vm194_vm2, %v836_v16 }
 0x92c   : > { %1132 = vmatmul.mubr.msk.bf16.vlgmr.msra.gmra.mrb[12].mxu0 %vm194_vm2, %v837_v17 }
 0x92f   : > { %v924_v26 = vld [vmem:[%s1314_s18 + $0x8] sm:$0x1] }
 0x9ff   : > { %v1133_v18 = vpop.f32.mrb[12].mxu0 }
 0xa00   : > { %v1038_v19 = vpack.c.bf16 %v1133_v18, %v1133_v18  ;;  %v886_v20 = vpop.f32.mrb[13].mxu0 }
 0xa01   : > { %v1036_v21 = vpack.c.bf16 %v886_v20, %v886_v20  ;;  %v1134_v22 = vpop.f32.mrb[14].mxu0 }
 0xa02   : > { %914 = vrot.lane.b32.xlu0 %v1038_v19, %s1245_s28  ;;  %v889_v23 = vpop.f32.mrb[15].mxu0 }
 0xa03   : > { %v1037_v24 = vpack.c.bf16 %v889_v23, %v889_v23  ;;  %910 = vrot.lane.b32.xlu1 %v1036_v21, %s1245_s28 }
 0xa06   : > { %912 = vrot.lane.b32.xlu0 %v1037_v24, %s1245_s28 }
 0xa74   : > { %v915_v25 = vpop.permute.xlu0 %914 }
 0xa75   : > { %v925_v27 = vsel %vm923_vm15, %v915_v25, %v924_v26  ;;  %v911_v28 = vpop.permute.xlu1 %910 }
 0xa76   : > { %926 = vst [vmem:[%s1314_s18 + $0x8] sm:$0x1] %v925_v27  ;;  %920 = vst.msk [vmem:[%s1314_s18] sm:$0xf] %vm919_vm0, %v911_v28 }
 0xa78   : > { %v913_v29 = vpop.permute.xlu0 %912 }
 0xa79   : > { %921 = vst.msk [vmem:[%s1314_s18 + $0x4] sm:$0xf] %vm919_vm0, %v913_v29 }
 0xa7a PF: > { %s11_s6 = sadd.s32 1, %s1229_s6  }
 0xa7b   : > { %p8_p4 = scmp.ge.s32.totalorder %s11_s6, 4  }
 0xa7d   :  { %10 = sbr.rel (!%p8_p4) target bundleno = 1 (0x1), region = 54 }

// kernel: vit_forward.17
= control target key start
LH: loop header
LB: loop body
LE: loop exit
PB: predicated region body
PF: predicated region fallthrough
CT: control target
= control target key end

     0   :  { %v232_v0 = vmov 0.0   ;;  %vm233_vm0 = vmmov 0   ;;  %vm59_vm1 = vcmask 261120   ;;  %vm161_vm2 = vcmask 257024   ;;  %s304_s1 = inlined_call_operand.vmem [shape: bf16[32,32], index: 1, kind: input, shape index: {}]   ;;  %s305_s0 = inlined_call_operand.vmem [shape: bf16[34,32], index: 0, kind: input, shape index: {}]   ;;  %s306_s3 = inlined_call_operand.vmem [shape: bf16[34,32], index: 3, kind: input, shape index: {}]   ;;  %s307_s2 = inlined_call_operand.vmem [shape: f32[1,32], index: 2, kind: input, shape index: {}]   ;;  %s308_s4 = inlined_call_operand.vmem [shape: bf16[34,32], index: 4, kind: output, shape index: {}]  }
   0x1   :  { %221 = vmatprep.subr.bf16.mxu1 %v232_v0  ;;  %v227_v1 = vld [vmem:[%s304_s1] sm:$0xff]   ;;  %205 = vmatprep.subr.bf16.mxu0 %v232_v0  ;;  %v228_v2 = vld [vmem:[%s304_s1 + $0x8] sm:$0xff]   ;;  %v231_v5 = vld [vmem:[%s305_s0 + $0x10] ss:$0 sps:$4 sm:$0x11]   ;;  %vm166_vm3 = vcmask 253952  }
   0x2   :  { %213 = vmatprep.mubr.msk.bf16.mxu1 %vm233_vm0, %v232_v0  ;;  %209 = vmatprep.mubr.msk.bf16.mxu0 %vm233_vm0, %v232_v0  ;;  %v229_v3 = vld [vmem:[%s305_s0 + $0x8] sm:$0xff]   ;;  %v230_v4 = vld [vmem:[%s305_s0] sm:$0xff]   ;;  %v129_v27 = vld [vmem:[%s306_s3 + $0x10] sm:$0x1] }
   0x3   :  { %223 = vmatpush3.bf16.msra.mxu1 %v227_v1  ;;  %206 = vmatpush3.bf16.msra.mxu0 %v227_v1  ;;  %v199_v6 = vld [vmem:[%s306_s3 + $0x8] sm:$0xff]   ;;  %v192_v7 = vld [vmem:[%s306_s3] sm:$0xff]   ;;  %v134_v34 = vunpack.c.l.bf16 %v129_v27 }
   0x4   :  { %222 = vmatprep.subr.bf16.mxu1 %v232_v0  ;;  %207 = vmatprep.subr.bf16.mxu0 %v232_v0  ;;  %v172_v8 = vld [vmem:[%s307_s2] ss:$0 sm:$0xff]  ;;  %v197_v9 = vunpack.c.l.bf16 %v199_v6  ;;  %v193_v10 = vunpack.c.l.bf16 %v192_v7  ;;  %v198_v15 = vunpack.c.h.bf16 %v199_v6  ;;  %v194_v18 = vunpack.c.h.bf16 %v192_v7 }
   0x7   :  { %224 = vmatpush3.bf16.msra.mxu1 %v228_v2  ;;  %208 = vmatpush3.bf16.msra.mxu0 %v228_v2 }
   0xa   :  { %214 = vmatmul.mubr.msk.bf16.vlgmr.msra.gmra.mrb[0].mxu1 %vm59_vm1, %v229_v3  ;;  %210 = vmatmul.mubr.msk.bf16.vlgmr.msra.gmra.mrb[0].mxu0 %vm59_vm1, %v230_v4 }
   0xb   :  { %217 = vmatprep.mubr.msk.bf16.mxu1 %vm233_vm0, %v232_v0 }
  0x12   :  { %218 = vmatmul.mubr.msk.bf16.gmra.mrb[4].mxu1 %vm59_vm1, %v231_v5 }
  0xdd   :  { %v111_v11 = vpop.f32.mrb[0].mxu1  ;;  %v103_v12 = vpop.f32.mrb[0].mxu0 }
  0xde   :  { %v112_v13 = vadd.f32 %v172_v8, %v111_v11  ;;  %v215_v14 = vpop.f32.mrb[1].mxu1  ;;  %v104_v16 = vadd.f32 %v172_v8, %v103_v12  ;;  %v211_v17 = vpop.f32.mrb[1].mxu0 }
  0xdf   :  { %v114_v19 = vpop.f32.mrb[2].mxu1  ;;  %v106_v20 = vpop.f32.mrb[2].mxu0 }
  0xe0   :  { %v137_v21 = vadd.f32 %v197_v9, %v112_v13  ;;  %v115_v22 = vadd.f32 %v172_v8, %v114_v19  ;;  %v135_v23 = vadd.f32 %v193_v10, %v104_v16  ;;  %v216_v24 = vpop.f32.mrb[3].mxu1  ;;  %v107_v25 = vadd.f32 %v172_v8, %v106_v20  ;;  %v212_v26 = vpop.f32.mrb[3].mxu0 }
  0xe2   :  { %v188_v28 = vpack.c.bf16 %v137_v21, %v137_v21  ;;  %v138_v29 = vadd.f32 %v198_v15, %v115_v22  ;;  %v186_v30 = vpack.c.bf16 %v135_v23, %v135_v23  ;;  %v136_v31 = vadd.f32 %v194_v18, %v107_v25 }
  0xe4   :  { %164 = vst.msk [vmem:[%s308_s4 + $0x8] sm:$0xf] %vm161_vm2, %v188_v28  ;;  %v189_v32 = vpack.c.bf16 %v138_v29, %v138_v29  ;;  %162 = vst.msk [vmem:[%s308_s4] sm:$0xf] %vm161_vm2, %v186_v30  ;;  %v187_v33 = vpack.c.bf16 %v136_v31, %v136_v31 }
  0xe5   :  { %v119_v35 = vpop.f32.mrb[4].mxu1 }
  0xe6   :  { %165 = vst.msk [vmem:[%s308_s4 + $0xc] sm:$0xf] %vm161_vm2, %v189_v32  ;;  %163 = vst.msk [vmem:[%s308_s4 + $0x4] sm:$0xf] %vm161_vm2, %v187_v33  ;;  %v120_v36 = vadd.f32 %v172_v8, %v119_v35  ;;  %v219_v37 = vpop.f32.mrb[5].mxu1 }
  0xe7   :  { %v122_v38 = vpop.f32.mrb[6].mxu1 }
  0xe8   :  { %v139_v39 = vadd.f32 %v134_v34, %v120_v36  ;;  %v220_v40 = vpop.f32.mrb[7].mxu1 }
  0xea   :  { %v190_v41 = vpack.c.bf16 %v139_v39, %v139_v39 }
  0xec   :  { %167 = vst.msk [vmem:[%s308_s4 + $0x10] sm:$0x1] %vm166_vm3, %v190_v41 }

// kernel: vit_forward.23
= control target key start
LH: loop header
LB: loop body
LE: loop exit
PB: predicated region body
PF: predicated region fallthrough
CT: control target
= control target key end

     0   :  { %vm16_vm0 = vcmask 254976   ;;  %s91_s0 = inlined_call_operand.vmem [shape: bf16[2,32], index: 0, kind: input, shape index: {}]   ;;  %s92_s1 = inlined_call_operand.vmem [shape: f32[1,32], index: 1, kind: input, shape index: {}]   ;;  %s93_s2 = inlined_call_operand.vmem [shape: f32[1,32], index: 2, kind: input, shape index: {}]   ;;  %s94_s3 = inlined_call_operand.vmem [shape: f32[2,32], index: 3, kind: output, shape index: {}]  }
   0x1   :  { %v14_v0 = vld [vmem:[%s91_s0] sm:$0x1] }
   0x2   :  { %v15_v1 = vunpack.c.l.bf16 %v14_v0  ;;  %v52_v12 = vld [vmem:[%s92_s1] ss:$0 sm:$0xff] }
   0x3   :  { %v53_v14 = vld [vmem:[%s93_s2] ss:$0 sm:$0xff] }
   0x4   :  { %v17_v2 = vsel %vm16_vm0, %v15_v1, 0.0 }
   0x5   :  { %18 = vadd.xlane.f32.xlu0 %v17_v2 }
  0x92   :  { %v19_v3 = vpop.xlane.xlu0 %18 }
  0x93   :  { %v21_v4 = vmul.f32 0.03125, %v19_v3 }
  0x95   :  { %v22_v5 = vsub.f32 %v15_v1, %v21_v4 }
  0x97   :  { %v23_v6 = vmul.f32 %v22_v5, %v22_v5 }
  0x99   :  { %v24_v7 = vsel %vm16_vm0, %v23_v6, 0.0 }
  0x9a   :  { %25 = vadd.xlane.f32.xlu0 %v24_v7 }
 0x127   :  { %v26_v8 = vpop.xlane.xlu0 %25 }
 0x128   :  { %v27_v9 = vmul.f32 0.03125, %v26_v8 }
 0x12a   :  { %v28_v10 = vadd.f32 1e-05, %v27_v9 }
 0x12c   :  { %54 = vrsqrt.f32 %v28_v10 }
 0x136   :  { %v55_v11 = vpop.eup %54 }
 0x137   :  { %v30_v13 = vmul.f32 %v55_v11, %v22_v5 }
 0x139   :  { %v38_v15 = vmul.f32 %v52_v12, %v30_v13 }
 0x13b   :  { %v46_v16 = vadd.f32 %v53_v14, %v38_v15 }
 0x13d   :  { %47 = vst.msk [vmem:[%s94_s3] sm:$0x3] %vm16_vm0, %v46_v16 }

// kernel: vit_forward.24
= control target key start
LH: loop header
LB: loop body
LE: loop exit
PB: predicated region body
PF: predicated region fallthrough
CT: control target
= control target key end

     0   :  { %v160_v1 = vmov 0.0   ;;  %vm161_vm0 = vmmov 0   ;;  %s207_s0 = inlined_call_operand.vmem [shape: f32[2,32], index: 0, kind: input, shape index: {}]   ;;  %s208_s1 = inlined_call_operand.vmem [shape: bf16[32,128], index: 1, kind: input, shape index: {}]   ;;  %s209_s2 = inlined_call_operand.vmem [shape: f32[1,128], index: 2, kind: input, shape index: {}]   ;;  %s210_s3 = inlined_call_operand.hbm [shape: f32[2,128], index: 3, kind: output, shape index: {}]  }
   0x1   :  { %v130_v0 = vld [vmem:[%s208_s1] sm:$0xff]   ;;  %119 = vmatprep.subr.bf16.mxu0 %v160_v1  ;;  %v131_v2 = vld [vmem:[%s208_s1 + $0x8] sm:$0xff]   ;;  %123 = vmatprep.mubr.msk.bf16.mxu0 %vm161_vm0, %v160_v1 }
   0x2   :  { %120 = vmatpush3.bf16.msra.mxu0 %v130_v0  ;;  %v16_v3 = vld [vmem:[%s207_s0] sm:$0x3] }
   0x3   :  { %121 = vmatprep.subr.bf16.mxu0 %v160_v1 }
   0x4   :  { %8 = vsyncpa [#allocation3], 0  ;;  %v17_v4 = vpack.c.bf16 %v16_v3, %v16_v3  ;;  %vm41_vm1 = vcmask 261120   ;;  %v112_v5 = vld [vmem:[%s209_s2] ss:$0 sm:$0xff]  ;;  %vm85_vm2 = vcmask 1041408  }
   0x5   :  { %s162_s0 = smov [#allocation2]  }
   0x6   :  { %122 = vmatpush3.bf16.msra.mxu0 %v131_v2  ;;  %s104_s1 = sshll.u32 %s162_s0, 4  ;;  %s105_s1 = int_to_ptr.vmem [resolvable:$true] %s104_s1 }
   0x7   :  { %s136_s2 = scalar_lea.vmem %s105_s1, 32  ;;  %p141_p1 = scmp.lt.s32.totalorder %s105_s1, %s105_s1 }
   0x8   :  { %p137_p0 = scmp.ne.s32.totalorder %s105_s1, %s136_s2  ;;  %p142_p2 = scmp.lt.s32.totalorder %s136_s2, %s136_s2 }
   0x9   :  { %124 = vmatmul.mubr.msk.bf16.vlgmr.msra.gmra.mrb[0].mxu0 %vm41_vm1, %v17_v4 }
   0xa   :  { %p143_p3 = por %p142_p2, %p141_p1 }
   0xc   :  { %p144_p4 = pnand %p143_p3, %p137_p0 }
  0xdc   :  { %v79_v6 = vpop.f32.mrb[0].mxu0 }
  0xdd   :  { %v80_v7 = vadd.f32 %v112_v5, %v79_v6  ;;  %v125_v8 = vpop.f32.mrb[1].mxu0 }
  0xde   :  { %v82_v9 = vpop.f32.mrb[2].mxu0 }
  0xdf   :  { %v126_v10 = vpop.f32.mrb[3].mxu0  ;;  %v86_v11 = vsel %vm85_vm2, %v80_v7, -inf }
  0xe0   :  { %87 = vmax.xlane.f32.xlu0 %v86_v11 }
 0x16d   :  { %v88_v12 = vpop.xlane.xlu0 %87 }
 0x16e   :  { %v89_v13 = vsub.f32 %v80_v7, %v88_v12 }
 0x170   :  { %v90_v14 = vmul.f32 1.442695, %v89_v13 }
 0x172   :  { %132 = vpow2.f32 %v90_v14 }
 0x17c   :  { %v133_v15 = vpop.eup %132 }
 0x17d   :  { %v92_v16 = vsel %vm85_vm2, %v133_v15, 0.0 }
 0x17e   :  { %93 = vadd.xlane.f32.xlu0 %v92_v16 }
 0x20b   :  { %v94_v17 = vpop.xlane.xlu0 %93 }
 0x20c   :  { %134 = vrcp.f32 %v94_v17 }
 0x216   :  { %v135_v18 = vpop.eup %134 }
 0x217   :  { %v96_v19 = vmul.f32 %v135_v18, %v133_v15 }
 0x219   :  { %97 = vst [vmem:[#allocation2] sm:$0x3] %v96_v19 }
 0x21a   :  { %147 = shalt.err (!%p144_p4)
}
 0x21b   :  { %s148_s22 = scalar_lea.hbm %s210_s3, 32 }
 0x21c   :  { %p149_p5 = scmp.ne.s32.totalorder %s210_s3, %s148_s22  ;;  %p152_p6 = scmp.lt.u32.totalorder %s148_s22, %s210_s3 }
 0x21e   :  { %p154_p7 = pnand %p152_p6, %p149_p5 }
 0x220   :  { %157 = shalt.err (!%p154_p7)
}
 0x221   :  { %107 = dma.vmem_to_hbm [thread:$0]  %s105_s1, 32, %s210_s3, [#allocation3]  }
 0x222   :  { %158 = dma.done.wait [#allocation3], 32  }
 0x223   :  { %159 = vsyncadd [#allocation3], 4294967264 }
 0x224   :  { %111 = vsyncpa [#allocation3], 1 }

// kernel: vit_forward.25
= control target key start
LH: loop header
LB: loop body
LE: loop exit
PB: predicated region body
PF: predicated region fallthrough
CT: control target
= control target key end

     0   :  { %v145_v1 = vmov 0.0   ;;  %vm146_vm0 = vmmov 0   ;;  %s192_s0 = inlined_call_operand.vmem [shape: f32[2,32], index: 0, kind: input, shape index: {}]   ;;  %s193_s1 = inlined_call_operand.vmem [shape: bf16[32,32], index: 1, kind: input, shape index: {}]   ;;  %s194_s2 = inlined_call_operand.vmem [shape: f32[1,32], index: 2, kind: input, shape index: {}]   ;;  %s195_s3 = inlined_call_operand.hbm [shape: f32[2,32], index: 3, kind: output, shape index: {}]  }
   0x1   :  { %v119_v0 = vld [vmem:[%s193_s1] sm:$0xff]   ;;  %108 = vmatprep.subr.bf16.mxu0 %v145_v1  ;;  %v120_v2 = vld [vmem:[%s193_s1 + $0x8] sm:$0xff]   ;;  %112 = vmatprep.mubr.msk.bf16.mxu0 %vm146_vm0, %v145_v1 }
   0x2   :  { %109 = vmatpush3.bf16.msra.mxu0 %v119_v0  ;;  %v16_v3 = vld [vmem:[%s192_s0] sm:$0x3] }
   0x3   :  { %110 = vmatprep.subr.bf16.mxu0 %v145_v1 }
   0x4   :  { %8 = vsyncpa [#allocation3], 0  ;;  %v17_v4 = vpack.c.bf16 %v16_v3, %v16_v3  ;;  %vm41_vm1 = vcmask 261120   ;;  %v101_v5 = vld [vmem:[%s194_s2] ss:$0 sm:$0xff]  ;;  %s147_s20 = smov [#allocation2]  }
   0x5   :  { %s93_s21 = sshll.u32 %s147_s20, 4  ;;  %vm85_vm2 = vcmask 254976   ;;  %s94_s21 = int_to_ptr.vmem [resolvable:$true] %s93_s21 }
   0x6   :  { %111 = vmatpush3.bf16.msra.mxu0 %v120_v2  ;;  %s121_s0 = scalar_lea.vmem %s94_s21, 32  ;;  %p126_p1 = scmp.lt.s32.totalorder %s94_s21, %s94_s21 }
   0x7   :  { %p122_p0 = scmp.ne.s32.totalorder %s94_s21, %s121_s0  ;;  %p127_p2 = scmp.lt.s32.totalorder %s121_s0, %s121_s0 }
   0x9   :  { %113 = vmatmul.mubr.msk.bf16.vlgmr.msra.gmra.mrb[0].mxu0 %vm41_vm1, %v17_v4  ;;  %p128_p3 = por %p127_p2, %p126_p1 }
   0xb   :  { %p129_p4 = pnand %p128_p3, %p122_p0 }
  0xdc   :  { %v79_v6 = vpop.f32.mrb[0].mxu0 }
  0xdd   :  { %v80_v7 = vadd.f32 %v101_v5, %v79_v6  ;;  %v114_v8 = vpop.f32.mrb[1].mxu0 }
  0xde   :  { %v82_v9 = vpop.f32.mrb[2].mxu0 }
  0xdf   :  { %v115_v10 = vpop.f32.mrb[3].mxu0  ;;  %86 = vst.msk [vmem:[#allocation2] sm:$0x3] %vm85_vm2, %v80_v7 }
  0xe0   :  { %132 = shalt.err (!%p129_p4)
}
  0xe1   :  { %s133_s2 = scalar_lea.hbm %s195_s3, 32 }
  0xe2   :  { %p134_p5 = scmp.ne.s32.totalorder %s195_s3, %s133_s2  ;;  %p137_p6 = scmp.lt.u32.totalorder %s133_s2, %s195_s3 }
  0xe4   :  { %p139_p7 = pnand %p137_p6, %p134_p5 }
  0xe6   :  { %142 = shalt.err (!%p139_p7)
}
  0xe7   :  { %96 = dma.vmem_to_hbm [thread:$0]  %s94_s21, 32, %s195_s3, [#allocation3]  }
  0xe8   :  { %143 = dma.done.wait [#allocation3], 32  }
  0xe9   :  { %144 = vsyncadd [#allocation3], 4294967264 }
  0xea   :  { %100 = vsyncpa [#allocation3], 1 }

// kernel: vit_forward.18
= control target key start
LH: loop header
LB: loop body
LE: loop exit
PB: predicated region body
PF: predicated region fallthrough
CT: control target
= control target key end

     0   :  { %vm41_vm0 = vcmask 261120   ;;  %vm54_vm1 = vcmask 254976   ;;  %v703_v2 = vmov 0.0   ;;  %vm704_vm2 = vmmov 0   ;;  %s912_s0 = inlined_call_operand.vmem [shape: bf16[34,32], index: 0, kind: input, shape index: {}]   ;;  %s913_s3 = inlined_call_operand.vmem [shape: bf16[32,128], index: 3, kind: input, shape index: {}]   ;;  %s914_s1 = inlined_call_operand.vmem [shape: f32[1,32], index: 1, kind: input, shape index: {}]   ;;  %s915_s2 = inlined_call_operand.vmem [shape: f32[1,32], index: 2, kind: input, shape index: {}]   ;;  %s916_s5 = inlined_call_operand.vmem [shape: bf16[128,32], index: 5, kind: input, shape index: {}]   ;;  %s917_s4 = inlined_call_operand.vmem [shape: f32[1,128], index: 4, kind: input, shape index: {}]   ;;  %s918_s6 = inlined_call_operand.vmem [shape: f32[1,32], index: 6, kind: input, shape index: {}]   ;;  %s919_s7 = inlined_call_operand.vmem [shape: bf16[34,32], index: 7, kind: output, shape index: {}]  }
   0x1   :  { %v565_v0 = vld [vmem:[%s912_s0] sm:$0xff]   ;;  %v581_v1 = vld [vmem:[%s912_s0 + $0x8] sm:$0xff]   ;;  %165 = vst.msk [vmem:[#allocation3 + $0x20] sm:$0x3] %vm54_vm1, %v703_v2  ;;  %598 = vmatprep.subr.bf16.mxu0 %v703_v2  ;;  %642 = vmatprep.subr.bf16.mxu1 %v703_v2  ;;  %v35_v7 = vld [vmem:[%s912_s0 + $0x10] sm:$0x1] }
   0x2   :  { %161 = vst.msk [vmem:[#allocation3] sm:$0xff] %vm41_vm0, %v703_v2  ;;  %162 = vst.msk [vmem:[#allocation3 + $0x8] sm:$0xff] %vm41_vm0, %v703_v2  ;;  %v763_v3 = vunpack.c.l.bf16 %v565_v0  ;;  %v765_v4 = vunpack.c.h.bf16 %v565_v0  ;;  %v767_v5 = vunpack.c.l.bf16 %v581_v1  ;;  %v769_v6 = vunpack.c.h.bf16 %v581_v1  ;;  %v660_v39 = vld [vmem:[%s913_s3] sm:$0xff]   ;;  %v661_v40 = vld [vmem:[%s913_s3 + $0x8] sm:$0xff]   ;;  %602 = vmatprep.mubr.msk.bf16.mxu0 %vm704_vm2, %v703_v2  ;;  %634 = vmatprep.mubr.msk.bf16.mxu1 %vm704_vm2, %v703_v2 }
   0x3   :  { %163 = vst.msk [vmem:[#allocation3 + $0x10] sm:$0xff] %vm41_vm0, %v703_v2  ;;  %164 = vst.msk [vmem:[#allocation3 + $0x18] sm:$0xff] %vm41_vm0, %v703_v2  ;;  %v40_v12 = vunpack.c.l.bf16 %v35_v7  ;;  %599 = vmatpush3.bf16.msra.mxu0 %v660_v39  ;;  %v519_v57 = vld [vmem:[%s914_s1] ss:$0 sm:$0xff]  ;;  %vm154_vm3 = vcmask 257024   ;;  %vm159_vm4 = vcmask 253952  }
   0x4   :  { %v42_v8 = vsel %vm41_vm0, %v763_v3, 0.0  ;;  %v48_v9 = vsel %vm41_vm0, %v767_v5, 0.0  ;;  %v45_v10 = vsel %vm41_vm0, %v765_v4, 0.0  ;;  %v51_v11 = vsel %vm41_vm0, %v769_v6, 0.0  ;;  %600 = vmatprep.subr.bf16.mxu0 %v703_v2  ;;  %v520_v59 = vld [vmem:[%s915_s2] ss:$0 sm:$0xff] }
   0x5   :  { %43 = vadd.xlane.f32.xlu0 %v42_v8  ;;  %49 = vadd.xlane.f32.xlu1 %v48_v9  ;;  %v55_v13 = vsel %vm54_vm1, %v40_v12, 0.0 }
   0x7   :  { %601 = vmatpush3.bf16.msra.mxu0 %v661_v40 }
   0x8   :  { %614 = vmatprep.subr.bf16.mxu0 %v703_v2 }
   0x9   :  { %46 = vadd.xlane.f32.xlu0 %v45_v10  ;;  %52 = vadd.xlane.f32.xlu1 %v51_v11 }
   0xd   :  { %56 = vadd.xlane.f32.xlu0 %v55_v13 }
  0x92   :  { %v44_v14 = vpop.xlane.xlu0 %43  ;;  %v50_v15 = vpop.xlane.xlu1 %49 }
  0x93   :  { %v59_v16 = vmul.f32 0.03125, %v44_v14  ;;  %v61_v17 = vmul.f32 0.03125, %v50_v15 }
  0x95   :  { %v64_v18 = vsub.f32 %v763_v3, %v59_v16  ;;  %v785_v19 = vsub.f32 %v767_v5, %v61_v17 }
  0x96   :  { %v47_v20 = vpop.xlane.xlu0 %46  ;;  %v53_v21 = vpop.xlane.xlu1 %52 }
  0x97   :  { %v60_v22 = vmul.f32 0.03125, %v47_v20  ;;  %v62_v23 = vmul.f32 0.03125, %v53_v21  ;;  %v69_v24 = vmul.f32 %v64_v18, %v64_v18  ;;  %v71_v25 = vmul.f32 %v785_v19, %v785_v19 }
  0x99   :  { %v65_v26 = vsub.f32 %v765_v4, %v60_v22  ;;  %v791_v27 = vsub.f32 %v769_v6, %v62_v23  ;;  %v74_v28 = vsel %vm41_vm0, %v69_v24, 0.0  ;;  %v80_v31 = vsel %vm41_vm0, %v71_v25, 0.0 }
  0x9a   :  { %75 = vadd.xlane.f32.xlu1 %v74_v28  ;;  %v57_v29 = vpop.xlane.xlu0 %56  ;;  %v666_v28 = vld [vmem:[%s916_s5 + $0x8] sm:$0xff]  }
  0x9b   :  { %v63_v30 = vmul.f32 0.03125, %v57_v29  ;;  %v70_v32 = vmul.f32 %v65_v26, %v65_v26  ;;  %v72_v33 = vmul.f32 %v791_v27, %v791_v27  ;;  %v667_v29 = vld [vmem:[%s916_s5 + $0x10] sm:$0xff]  }
  0x9d   :  { %v68_v34 = vsub.f32 %v40_v12, %v63_v30  ;;  %v77_v35 = vsel %vm41_vm0, %v70_v32, 0.0  ;;  %v83_v36 = vsel %vm41_vm0, %v72_v33, 0.0  ;;  %v668_v30 = vld [vmem:[%s916_s5 + $0x18] sm:$0xff]   ;;  %v670_v32 = vld [vmem:[%s916_s5 + $0x28] sm:$0xff]   ;;  %v671_v33 = vld [vmem:[%s916_s5 + $0x30] sm:$0xff]  }
  0x9e   :  { %81 = vadd.xlane.f32.xlu1 %v80_v31  ;;  %78 = vadd.xlane.f32.xlu0 %v77_v35  ;;  %v669_v31 = vld [vmem:[%s916_s5 + $0x20] sm:$0xff]  }
  0x9f   :  { %v73_v37 = vmul.f32 %v68_v34, %v68_v34  ;;  %v526_v35 = vld [vmem:[%s917_s4] ss:$0 sm:$0xff] }
  0xa1   :  { %v86_v38 = vsel %vm54_vm1, %v73_v37, 0.0 }
  0xa2   :  { %84 = vadd.xlane.f32.xlu0 %v83_v36  ;;  %87 = vadd.xlane.f32.xlu1 %v86_v38 }
 0x127   :  { %v76_v41 = vpop.xlane.xlu1 %75 }
 0x128   :  { %v89_v42 = vmul.f32 0.03125, %v76_v41 }
 0x12a   :  { %v94_v43 = vadd.f32 1e-05, %v89_v42 }
 0x12b   :  { %v82_v44 = vpop.xlane.xlu1 %81  ;;  %v79_v45 = vpop.xlane.xlu0 %78 }
 0x12c   :  { %673 = vrsqrt.f32 %v94_v43  ;;  %v91_v46 = vmul.f32 0.03125, %v82_v44  ;;  %v90_v47 = vmul.f32 0.03125, %v79_v45 }
 0x12e   :  { %v96_v48 = vadd.f32 1e-05, %v91_v46  ;;  %v95_v49 = vadd.f32 1e-05, %v90_v47 }
 0x12f   :  { %v88_v50 = vpop.xlane.xlu1 %87  ;;  %v85_v51 = vpop.xlane.xlu0 %84 }
 0x130   :  { %675 = vrsqrt.f32 %v96_v48  ;;  %v93_v52 = vmul.f32 0.03125, %v88_v50  ;;  %v92_v53 = vmul.f32 0.03125, %v85_v51 }
 0x131   :  { %677 = vrsqrt.f32 %v95_v49 }
 0x132   :  { %v98_v54 = vadd.f32 1e-05, %v93_v52  ;;  %v97_v55 = vadd.f32 1e-05, %v92_v53 }
 0x134   :  { %679 = vrsqrt.f32 %v98_v54 }
 0x135   :  { %681 = vrsqrt.f32 %v97_v55 }
 0x136   :  { %v674_v56 = vpop.eup %673 }
 0x137   :  { %v104_v58 = vmul.f32 %v674_v56, %v64_v18 }
 0x139   :  { %v116_v60 = vmul.f32 %v519_v57, %v104_v58 }
 0x13a   :  { %v676_v61 = vpop.eup %675 }
 0x13b   :  { %v678_v62 = vpop.eup %677  ;;  %v128_v63 = vadd.f32 %v520_v59, %v116_v60  ;;  %v106_v0 = vmul.f32 %v676_v61, %v785_v19 }
 0x13c   :  { %v105_v1 = vmul.f32 %v678_v62, %v65_v26 }
 0x13d   :  { %v554_v7 = vpack.c.bf16 %v128_v63, %v128_v63  ;;  %v118_v8 = vmul.f32 %v519_v57, %v106_v0 }
 0x13e   :  { %v680_v9 = vpop.eup %679  ;;  %v117_v10 = vmul.f32 %v519_v57, %v105_v1 }
 0x13f   :  { %v682_v11 = vpop.eup %681  ;;  %155 = vst.msk [vmem:[#allocation2] sm:$0xf] %vm154_vm3, %v554_v7  ;;  %v130_v12 = vadd.f32 %v520_v59, %v118_v8  ;;  %v108_v13 = vmul.f32 %v680_v9, %v68_v34  ;;  %v672_v34 = vld [vmem:[%s916_s5 + $0x38] sm:$0xff]  }
 0x140   :  { %v129_v14 = vadd.f32 %v520_v59, %v117_v10  ;;  %v107_v15 = vmul.f32 %v682_v11, %v791_v27  ;;  %v665_v27 = vld [vmem:[%s916_s5] sm:$0xff]  }
 0x141   :  { %v556_v16 = vpack.c.bf16 %v130_v12, %v130_v12  ;;  %v120_v17 = vmul.f32 %v519_v57, %v108_v13  ;;  %650 = vmatpush3.bf16.msra.mxu1 %v665_v27 }
 0x142   :  { %v555_v18 = vpack.c.bf16 %v129_v14, %v129_v14  ;;  %v119_v20 = vmul.f32 %v519_v57, %v107_v15  ;;  %643 = vmatprep.subr.bf16.mxu1 %v703_v2 }
 0x143   :  { %157 = vst.msk [vmem:[#allocation2 + $0x8] sm:$0xf] %vm154_vm3, %v556_v16  ;;  %v132_v19 = vadd.f32 %v520_v59, %v120_v17 }
 0x144   :  { %156 = vst.msk [vmem:[#allocation2 + $0x4] sm:$0xf] %vm154_vm3, %v555_v18  ;;  %v131_v21 = vadd.f32 %v520_v59, %v119_v20 }
 0x145   :  { %v558_v22 = vpack.c.bf16 %v132_v19, %v132_v19  ;;  %651 = vmatpush3.bf16.msra.mxu1 %v666_v28 }
 0x146   :  { %v557_v23 = vpack.c.bf16 %v131_v21, %v131_v21  ;;  %644 = vmatprep.subr.bf16.mxu1 %v703_v2 }
 0x147   :  { %160 = vst.msk [vmem:[#allocation2 + $0x10] sm:$0x1] %vm159_vm4, %v558_v22 }
 0x148   :  { %158 = vst.msk [vmem:[#allocation2 + $0xc] sm:$0xf] %vm154_vm3, %v557_v23 }
 0x149   :  { %652 = vmatpush3.bf16.msra.mxu1 %v667_v29 }
 0x14a   :  { %645 = vmatprep.subr.bf16.mxu1 %v703_v2 }
 0x14b   :  { %v662_v24 = vld [vmem:[#allocation2] sm:$0xff]  }
 0x14c   :  { %603 = vmatmul.mubr.msk.bf16.vlgmr.msra.gmra.mrb[0].mxu0 %vm41_vm0, %v662_v24 }
 0x14d   :  { %606 = vmatprep.mubr.msk.bf16.mxu0 %vm704_vm2, %v703_v2  ;;  %615 = vmatpush3.bf16.msra.mxu0 %v665_v27  ;;  %v313_v27 = vld [vmem:[#allocation3] sm:$0xff] }
 0x14e   :  { %v664_v26 = vld [vmem:[#allocation2 + $0x10] ss:$0 sps:$4 sm:$0x11]   ;;  %616 = vmatprep.subr.bf16.mxu0 %v703_v2  ;;  %653 = vmatpush3.bf16.msra.mxu1 %v668_v30 }
 0x14f   :  { %v663_v25 = vld [vmem:[#allocation2 + $0x8] sm:$0xff]   ;;  %646 = vmatprep.subr.bf16.mxu1 %v703_v2 }
 0x151   :  { %617 = vmatpush3.bf16.msra.mxu0 %v666_v28 }
 0x152   :  { %618 = vmatprep.subr.bf16.mxu0 %v703_v2  ;;  %654 = vmatpush3.bf16.msra.mxu1 %v669_v31 }
 0x153   :  { %647 = vmatprep.subr.bf16.mxu1 %v703_v2 }
 0x154   :  { %607 = vmatmul.mubr.msk.bf16.gmra.mrb[4].mxu0 %vm41_vm0, %v663_v25 }
 0x155   :  { %610 = vmatprep.mubr.msk.bf16.mxu0 %vm704_vm2, %v703_v2  ;;  %619 = vmatpush3.bf16.msra.mxu0 %v667_v29  ;;  %v314_v29 = vld [vmem:[#allocation3 + $0x8] sm:$0xff] }
 0x156   :  { %620 = vmatprep.subr.bf16.mxu0 %v703_v2  ;;  %655 = vmatpush3.bf16.msra.mxu1 %v670_v32 }
 0x157   :  { %648 = vmatprep.subr.bf16.mxu1 %v703_v2 }
 0x159   :  { %621 = vmatpush3.bf16.msra.mxu0 %v668_v30 }
 0x15a   :  { %622 = vmatprep.subr.bf16.mxu0 %v703_v2  ;;  %656 = vmatpush3.bf16.msra.mxu1 %v671_v33 }
 0x15b   :  { %649 = vmatprep.subr.bf16.mxu1 %v703_v2 }
 0x15c   :  { %611 = vmatmul.mubr.msk.bf16.gmra.mrb[8].mxu0 %vm41_vm0, %v664_v26 }
 0x15d   :  { %630 = vmatprep.mubr.msk.bf16.mxu0 %vm704_vm2, %v703_v2  ;;  %623 = vmatpush3.bf16.msra.mxu0 %v669_v31 }
 0x15e   :  { %624 = vmatprep.subr.bf16.mxu0 %v703_v2  ;;  %657 = vmatpush3.bf16.msra.mxu1 %v672_v34 }
 0x161   :  { %625 = vmatpush3.bf16.msra.mxu0 %v670_v32 }
 0x162   :  { %626 = vmatprep.subr.bf16.mxu0 %v703_v2 }
 0x165   :  { %627 = vmatpush3.bf16.msra.mxu0 %v671_v33 }
 0x166   :  { %628 = vmatprep.subr.bf16.mxu0 %v703_v2 }
 0x169   :  { %629 = vmatpush3.bf16.msra.mxu0 %v672_v34 }
 0x21f   :  { %v251_v36 = vpop.f32.mrb[0].mxu0 }
 0x220   :  { %v252_v37 = vadd.f32 %v526_v35, %v251_v36  ;;  %v604_v38 = vpop.f32.mrb[1].mxu0 }
 0x221   :  { %v254_v39 = vpop.f32.mrb[2].mxu0 }
 0x222   :  { %v535_v40 = vmul.f32 -1.702, %v252_v37  ;;  %v255_v41 = vadd.f32 %v526_v35, %v254_v39  ;;  %v605_v42 = vpop.f32.mrb[3].mxu0 }
 0x224   :  { %v283_v43 = vmul.f32 1.442695, %v535_v40  ;;  %v536_v44 = vmul.f32 -1.702, %v255_v41 }
 0x226   :  { %683 = vpow2.f32 %v283_v43  ;;  %v285_v45 = vmul.f32 1.442695, %v536_v44 }
 0x227   :  { %v259_v46 = vpop.f32.mrb[4].mxu0 }
 0x228   :  { %685 = vpow2.f32 %v285_v45  ;;  %v260_v47 = vadd.f32 %v526_v35, %v259_v46  ;;  %v608_v48 = vpop.f32.mrb[5].mxu0 }
 0x229   :  { %v262_v49 = vpop.f32.mrb[6].mxu0  ;;  %v317_v48 = vld [vmem:[#allocation3 + $0x20] sm:$0x3] }
 0x22a   :  { %v537_v50 = vmul.f32 -1.702, %v260_v47  ;;  %v263_v51 = vadd.f32 %v526_v35, %v262_v49  ;;  %v609_v52 = vpop.f32.mrb[7].mxu0 }
 0x22c   :  { %v287_v53 = vmul.f32 1.442695, %v537_v50  ;;  %v538_v54 = vmul.f32 -1.702, %v263_v51 }
 0x22e   :  { %687 = vpow2.f32 %v287_v53  ;;  %v289_v55 = vmul.f32 1.442695, %v538_v54 }
 0x22f   :  { %v267_v56 = vpop.f32.mrb[8].mxu0 }
 0x230   :  { %v684_v57 = vpop.eup %683  ;;  %689 = vpow2.f32 %v289_v55  ;;  %v268_v58 = vadd.f32 %v526_v35, %v267_v56  ;;  %v612_v59 = vpop.f32.mrb[9].mxu0  ;;  %v315_v35 = vld [vmem:[#allocation3 + $0x10] sm:$0xff] }
 0x231   :  { %v293_v60 = vadd.f32 1.0, %v684_v57  ;;  %v270_v61 = vpop.f32.mrb[10].mxu0 }
 0x232   :  { %v686_v62 = vpop.eup %685  ;;  %v539_v63 = vmul.f32 -1.702, %v268_v58  ;;  %v613_v0 = vpop.f32.mrb[11].mxu0 }
 0x233   :  { %691 = vrcp.f32 %v293_v60  ;;  %v294_v1 = vadd.f32 1.0, %v686_v62  ;;  %v476_v60 = vld [vmem:[%s912_s0 + $0x10] sm:$0x1] }
 0x234   :  { %v291_v7 = vmul.f32 1.442695, %v539_v63  ;;  %v481_v63 = vunpack.c.l.bf16 %v476_v60 }
 0x235   :  { %693 = vrcp.f32 %v294_v1 }
 0x236   :  { %695 = vpow2.f32 %v291_v7 }
 0x238   :  { %v688_v8 = vpop.eup %687 }
 0x239   :  { %v295_v9 = vadd.f32 1.0, %v688_v8 }
 0x23a   :  { %v690_v10 = vpop.eup %689 }
 0x23b   :  { %697 = vrcp.f32 %v295_v9  ;;  %v296_v11 = vadd.f32 1.0, %v690_v10 }
 0x23d   :  { %v692_v12 = vpop.eup %691  ;;  %699 = vrcp.f32 %v296_v11 }
 0x23e   :  { %v308_v15 = vmul.f32 %v692_v12, %v252_v37  ;;  %v316_v37 = vld [vmem:[#allocation3 + $0x18] sm:$0xff] }
 0x23f   :  { %v694_v13 = vpop.eup %693 }
 0x240   :  { %v696_v14 = vpop.eup %695  ;;  %v309_v16 = vmul.f32 %v694_v13, %v255_v41 }
 0x241   :  { %v297_v17 = vadd.f32 1.0, %v696_v14 }
 0x242   :  { %v318_v18 = vpack.c.bf16 %v309_v16, %v308_v15 }
 0x243   :  { %701 = vrcp.f32 %v297_v17 }
 0x244   :  { %631 = vmatmul.mubr.bf16.vlgmr.msra.gmra.mrb[12].mxu0 %v318_v18 }
 0x245   :  { %v698_v20 = vpop.eup %697 }
 0x246   :  { %v310_v21 = vmul.f32 %v698_v20, %v260_v47 }
 0x247   :  { %v700_v19 = vpop.eup %699 }
 0x248   :  { %v311_v22 = vmul.f32 %v700_v19, %v263_v51 }
 0x24a   :  { %v319_v23 = vpack.c.bf16 %v311_v22, %v310_v21 }
 0x24c   :  { %635 = vmatmul.mubr.bf16.vlgmr.msra.gmra.mrb[0].mxu1 %v319_v23 }
 0x24d   :  { %v702_v24 = vpop.eup %701  ;;  %638 = vmatprep.mubr.msk.bf16.mxu1 %vm704_vm2, %v703_v2  ;;  %v548_v2 = vld [vmem:[%s918_s6] ss:$0 sm:$0xff] }
 0x24e   :  { %v312_v25 = vmul.f32 %v702_v24, %v268_v58 }
 0x250   :  { %v320_v26 = vpack.c.bf16 %v312_v25, %v312_v25 }
 0x254   :  { %639 = vmatmul.mubr.bf16.gmra.mrb[4].mxu1 %v320_v26 }
 0x317   :  { %v419_v28 = vpop.f32.mrb[12].mxu0 }
 0x318   :  { %v441_v30 = vadd.f32 %v419_v28, %v313_v27  ;;  %v632_v31 = vpop.f32.mrb[13].mxu0 }
 0x319   :  { %v422_v32 = vpop.f32.mrb[14].mxu0 }
 0x31a   :  { %446 = vst.msk [vmem:[#allocation3] sm:$0xff] %vm41_vm0, %v441_v30  ;;  %v442_v33 = vadd.f32 %v422_v32, %v314_v29  ;;  %v633_v34 = vpop.f32.mrb[15].mxu0 }
 0x31c   :  { %447 = vst.msk [vmem:[#allocation3 + $0x8] sm:$0xff] %vm41_vm0, %v442_v33 }
 0x31f   :  { %v427_v36 = vpop.f32.mrb[0].mxu1 }
 0x320   :  { %v443_v38 = vadd.f32 %v427_v36, %v315_v35  ;;  %v636_v39 = vpop.f32.mrb[1].mxu1 }
 0x321   :  { %v455_v40 = vld [vmem:[#allocation3] sm:$0xff]  ;;  %v430_v41 = vpop.f32.mrb[2].mxu1 }
 0x322   :  { %v467_v42 = vadd.f32 %v548_v2, %v455_v40  ;;  %448 = vst.msk [vmem:[#allocation3 + $0x10] sm:$0xff] %vm41_vm0, %v443_v38  ;;  %v444_v43 = vadd.f32 %v430_v41, %v316_v37  ;;  %v637_v44 = vpop.f32.mrb[3].mxu1 }
 0x323   :  { %v456_v45 = vld [vmem:[#allocation3 + $0x8] sm:$0xff] }
 0x324   :  { %v482_v46 = vadd.f32 %v763_v3, %v467_v42  ;;  %v468_v47 = vadd.f32 %v548_v2, %v456_v45  ;;  %449 = vst.msk [vmem:[#allocation3 + $0x18] sm:$0xff] %vm41_vm0, %v444_v43 }
 0x326   :  { %v559_v49 = vpack.c.bf16 %v482_v46, %v482_v46  ;;  %v483_v50 = vadd.f32 %v765_v4, %v468_v47 }
 0x327   :  { %v435_v51 = vpop.f32.mrb[4].mxu1 }
 0x328   :  { %509 = vst.msk [vmem:[%s919_s7] sm:$0xf] %vm154_vm3, %v559_v49  ;;  %v560_v52 = vpack.c.bf16 %v483_v50, %v483_v50  ;;  %v445_v53 = vadd.f32 %v435_v51, %v317_v48  ;;  %v640_v54 = vpop.f32.mrb[5].mxu1 }
 0x329   :  { %v457_v55 = vld [vmem:[#allocation3 + $0x10] sm:$0xff]  ;;  %v438_v56 = vpop.f32.mrb[6].mxu1 }
 0x32a   :  { %510 = vst.msk [vmem:[%s919_s7 + $0x4] sm:$0xf] %vm154_vm3, %v560_v52  ;;  %v469_v3 = vadd.f32 %v548_v2, %v457_v55  ;;  %v641_v4 = vpop.f32.mrb[7].mxu1 }
 0x32b   :  { %451 = vst.msk [vmem:[#allocation3 + $0x20] sm:$0x3] %vm54_vm1, %v445_v53  ;;  %v458_v57 = vld [vmem:[#allocation3 + $0x18] sm:$0xff] }
 0x32c   :  { %v484_v58 = vadd.f32 %v767_v5, %v469_v3  ;;  %v470_v59 = vadd.f32 %v548_v2, %v458_v57 }
 0x32e   :  { %v561_v61 = vpack.c.bf16 %v484_v58, %v484_v58  ;;  %v485_v62 = vadd.f32 %v769_v6, %v470_v59 }
 0x330   :  { %511 = vst.msk [vmem:[%s919_s7 + $0x8] sm:$0xf] %vm154_vm3, %v561_v61  ;;  %v562_v0 = vpack.c.bf16 %v485_v62, %v485_v62 }
 0x332   :  { %v459_v1 = vld [vmem:[#allocation3 + $0x20] sm:$0x3]  ;;  %512 = vst.msk [vmem:[%s919_s7 + $0xc] sm:$0xf] %vm154_vm3, %v562_v0 }
 0x333   :  { %v471_v5 = vadd.f32 %v548_v2, %v459_v1 }
 0x335   :  { %v486_v7 = vadd.f32 %v481_v63, %v471_v5 }
 0x337   :  { %v563_v8 = vpack.c.bf16 %v486_v7, %v486_v7 }
 0x339   :  { %514 = vst.msk [vmem:[%s919_s7 + $0x10] sm:$0x1] %vm159_vm4, %v563_v8 }

</bundles_post_ra>
